<compile_context>
chip_gen: v5e
topology: v5e:2x2
jax: 0.10.0
libtpu: 0.0.40
codegen_flags: <defaults>
</compile_context>

<pallas_src>
import jax
import jax.numpy as jnp
from jax.experimental import pallas as pl
from jax.experimental.pallas import tpu as pltpu


def mlp_kernel(x_ref, w1_ref, b1_ref, w2_ref, b2_ref, w3_ref, b3_ref, o_ref):
    """Three fused Linear+bias+ReLU stages; BN already folded into W2/b2, W3/b3."""
    w_dtype = w1_ref.dtype

    # In-kernel cast of the f32 activations to the weight dtype (free VPU work,
    # halves x HBM traffic vs. casting in the wrapper).
    x = x_ref[...].astype(w_dtype)

    # ---- Linear(F, 512) + ReLU ----
    h = jnp.dot(x, w1_ref[...], preferred_element_type=jnp.float32)
    h = jnp.maximum(h + b1_ref[...], 0.0)

    # ---- (BN1 folded) Linear(512, 512) + ReLU ----
    h = jnp.dot(h.astype(w_dtype), w2_ref[...],
                preferred_element_type=jnp.float32)
    h = jnp.maximum(h + b2_ref[...], 0.0)

    # ---- Dropout: identity in eval mode ----

    # ---- (BN2 folded) Linear(512, E) + ReLU ----
    h = jnp.dot(h.astype(w_dtype), w3_ref[...],
                preferred_element_type=jnp.float32)
    o_ref[...] = jnp.maximum(h + b3_ref[...], 0.0).astype(o_ref.dtype)


def _round_up(n, m):
    return ((n + m - 1) // m) * m


def _fold_batchnorm(params, eps=1e-5):
    """Fold eval-mode BN1/BN2 into the following Linear layers (exact)."""
    s1 = params["bn1_gamma"] / jnp.sqrt(params["bn1_var"] + eps)
    t1 = params["bn1_beta"] - params["bn1_mean"] * s1
    s2 = params["bn2_gamma"] / jnp.sqrt(params["bn2_var"] + eps)
    t2 = params["bn2_beta"] - params["bn2_mean"] * s2
    w2 = params["w2"] * s1[:, None]
    b2 = t1 @ params["w2"] + params["b2"]
    w3 = params["w3"] * s2[:, None]
    b3 = t2 @ params["w3"] + params["b3"]
    return params["w1"], params["b1"], w2, b2, w3, b3


def prepare_params(params, *, eps=1e-5, weight_dtype=jnp.bfloat16):
    """One-time BN fold + low-precision weight cast (hoisted out of forward).

    Call once and reuse the result across forward calls; this removes ~5-8 MiB
    of per-call XLA elementwise traffic plus a 512x512 GEMV from the hot path.
    """
    w1, b1, w2, b2, w3, b3 = _fold_batchnorm(params, eps)
    row = lambda v: v.reshape(1, -1).astype(jnp.float32)   # lane-wise broadcast
    return {
        "w1": w1.astype(weight_dtype), "b1": row(b1),
        "w2": w2.astype(weight_dtype), "b2": row(b2),
        "w3": w3.astype(weight_dtype), "b3": row(b3),
    }


def _choose_tile(batch, tb):
    """Batch tile: multiple of 16 (bf16 sublanes), >=2 grid steps for B>256."""
    tb = max(16, _round_up(min(tb, max(batch, 16)), 16))
    if batch > 256:
        # v7x has 2 TensorCores; ("parallel",) only helps if the grid has >=2
        # steps.  Split the batch across at least two 256-aligned tiles.
        tb = min(tb, _round_up(pl.cdiv(batch, 2), 256))
    return tb


def drug_fp_mlp_forward(x, prepared, *, tb=512):
    """x: (B, 1, F) float32, prepared = prepare_params(params) -> (B, E) float32."""
    x2 = jnp.squeeze(x, axis=1)                               # glue: x.squeeze(1)
    B, F = x2.shape

    w1, b1 = prepared["w1"], prepared["b1"]
    w2, b2 = prepared["w2"], prepared["b2"]
    w3, b3 = prepared["w3"], prepared["b3"]
    H = w1.shape[1]
    E = w3.shape[1]
    assert w1.shape[0] == F, "input feature mismatch"

    tb = _choose_tile(B, tb)
    grid = (pl.cdiv(B, tb),)

    # VMEM budget: double-buffered weights + x/out tiles + f32 intermediates,
    # 25% + 4 MiB margin, capped below v7x's 64 MiB physical VMEM.
    w_item = jnp.dtype(w1.dtype).itemsize
    weight_bytes = 2 * ((F * H + H * H + H * E) * w_item + (2 * H + E) * 4)
    io_bytes = 2 * tb * F * 4 + 2 * tb * E * 4
    interm_bytes = 3 * tb * H * 4
    vmem_limit = int(1.25 * (weight_bytes + io_bytes + interm_bytes)) + (4 << 20)
    vmem_limit = min(max(vmem_limit, 24 << 20), 56 << 20)

    full = lambda i: (0, 0)

    return pl.pallas_call(
        mlp_kernel,
        out_shape=jax.ShapeDtypeStruct((B, E), jnp.float32),
        grid_spec=pltpu.PrefetchScalarGridSpec(
            num_scalar_prefetch=0,
            grid=grid,
            in_specs=[
                pl.BlockSpec((tb, F), lambda i: (i, 0)),   # x block (f32)
                pl.BlockSpec((F, H), full),                # W1 (bf16)
                pl.BlockSpec((1, H), full),                # b1
                pl.BlockSpec((H, H), full),                # W2 (BN1 folded)
                pl.BlockSpec((1, H), full),                # b2 (BN1 folded)
                pl.BlockSpec((H, E), full),                # W3 (BN2 folded)
                pl.BlockSpec((1, E), full),                # b3 (BN2 folded)
            ],
            out_specs=pl.BlockSpec((tb, E), lambda i: (i, 0)),
        ),
        compiler_params=pltpu.CompilerParams(
            dimension_semantics=("parallel",),
            vmem_limit_bytes=vmem_limit,
        ),
    )(x2, w1, b1, w2, b2, w3, b3)


def init_params(key, input_features=2048, hidden=512, embed_dim=128):
    ks = jax.random.split(key, 14)
    scale1 = 1.0 / jnp.sqrt(input_features)
    scale2 = 1.0 / jnp.sqrt(hidden)
    params = {
        # Linear weights stored as (in, out)  == PyTorch weight.T
        "w1": jax.random.uniform(ks[0], (input_features, hidden), jnp.float32,
                                 -scale1, scale1),
        "b1": jax.random.uniform(ks[1], (hidden,), jnp.float32, -scale1, scale1),
        "w2": jax.random.uniform(ks[2], (hidden, hidden), jnp.float32,
                                 -scale2, scale2),
        "b2": jax.random.uniform(ks[3], (hidden,), jnp.float32, -scale2, scale2),
        "w3": jax.random.uniform(ks[4], (hidden, embed_dim), jnp.float32,
                                 -scale2, scale2),
        "b3": jax.random.uniform(ks[5], (embed_dim,), jnp.float32, -scale2, scale2),
        # BatchNorm1d params / running stats (non-trivial so the BN fold is tested)
        "bn1_gamma": 1.0 + 0.2 * jax.random.normal(ks[6], (hidden,), jnp.float32),
        "bn1_beta": 0.1 * jax.random.normal(ks[7], (hidden,), jnp.float32),
        "bn1_mean": 0.1 * jax.random.normal(ks[8], (hidden,), jnp.float32),
        "bn1_var": jax.random.uniform(ks[9], (hidden,), jnp.float32, 0.5, 1.5),
        "bn2_gamma": 1.0 + 0.2 * jax.random.normal(ks[10], (hidden,), jnp.float32),
        "bn2_beta": 0.1 * jax.random.normal(ks[11], (hidden,), jnp.float32),
        "bn2_mean": 0.1 * jax.random.normal(ks[12], (hidden,), jnp.float32),
        "bn2_var": jax.random.uniform(ks[13], (hidden,), jnp.float32, 0.5, 1.5),
    }
    return params


def reference_forward(x, params):
    """Pure-JAX f32 reference (eval-mode semantics, un-folded BN)."""
    eps = 1e-5
    h = jnp.squeeze(x, axis=1)
    h = jnp.maximum(h @ params["w1"] + params["b1"], 0.0)
    h = (h - params["bn1_mean"]) / jnp.sqrt(params["bn1_var"] + eps) * \
        params["bn1_gamma"] + params["bn1_beta"]
    h = jnp.maximum(h @ params["w2"] + params["b2"], 0.0)
    h = (h - params["bn2_mean"]) / jnp.sqrt(params["bn2_var"] + eps) * \
        params["bn2_gamma"] + params["bn2_beta"]
    h = jnp.maximum(h @ params["w3"] + params["b3"], 0.0)
    return h


if __name__ == "__main__":
    key = jax.random.PRNGKey(0)
    kx, kp = jax.random.split(key)

    # Small batch; F=2048 / hidden=512 are fixed by the module definition.
    B, F, E = 72, 2048, 128
    x = jax.random.normal(kx, (B, 1, F), dtype=jnp.float32)
    params = init_params(kp, input_features=F, hidden=512, embed_dim=E)

    # One-time BN fold + bf16 cast, reused across calls (hoisted hot-path work).
    prepared = prepare_params(params)

    # tb=32 exercises a multi-step grid with a ragged tail block; a production
    # batch would use the default tb=512.
    out = drug_fp_mlp_forward(x, prepared, tb=32)
    out = jax.block_until_ready(out)

    ref = reference_forward(x, params)
    assert out.shape == (B, E)
    # bf16 weights/activations (f32 MXU accumulation) vs. f32 reference.
    assert jnp.allclose(out, ref, atol=3e-2, rtol=3e-2), "mismatch vs reference"

    print("KERNEL_OK")
</pallas_src>

<mosaic_0001>
module attributes {stable_mosaic.version = 11 : i64} {
  func.func @mlp_kernel(%arg0: i32, %arg1: memref<32x2048xf32, #tpu.memory_space<vmem>>, %arg2: memref<2048x512xbf16, #tpu.memory_space<vmem>>, %arg3: memref<1x512xf32, #tpu.memory_space<vmem>>, %arg4: memref<512x512xbf16, #tpu.memory_space<vmem>>, %arg5: memref<1x512xf32, #tpu.memory_space<vmem>>, %arg6: memref<512x128xbf16, #tpu.memory_space<vmem>>, %arg7: memref<1x128xf32, #tpu.memory_space<vmem>>, %arg8: memref<32x128xf32, #tpu.memory_space<vmem>>) attributes {dimension_semantics = [#tpu.dimension_semantics<parallel>], iteration_bounds = array<i64: 3>, scalar_prefetch = 0 : i64, scratch_operands = 0 : i64, tpu.core_type = #tpu.core_type<tc>, window_params = [{transform_indices = @transform_0, window_bounds = array<i64: 32, 2048>}, {pipeline_mode = #tpu.pipeline_mode<synchronous>, transform_indices = @transform_1, window_bounds = array<i64: 2048, 512>}, {pipeline_mode = #tpu.pipeline_mode<synchronous>, transform_indices = @transform_2, window_bounds = array<i64: 1, 512>}, {pipeline_mode = #tpu.pipeline_mode<synchronous>, transform_indices = @transform_3, window_bounds = array<i64: 512, 512>}, {pipeline_mode = #tpu.pipeline_mode<synchronous>, transform_indices = @transform_4, window_bounds = array<i64: 1, 512>}, {pipeline_mode = #tpu.pipeline_mode<synchronous>, transform_indices = @transform_5, window_bounds = array<i64: 512, 128>}, {pipeline_mode = #tpu.pipeline_mode<synchronous>, transform_indices = @transform_6, window_bounds = array<i64: 1, 128>}, {transform_indices = @transform_7, window_bounds = array<i64: 32, 128>}]} {
    %c0 = arith.constant 0 : index
    %c0_0 = arith.constant 0 : index
    %0 = vector.load %arg1[%c0, %c0_0] : memref<32x2048xf32, #tpu.memory_space<vmem>>, vector<32x2048xf32>
    %1 = arith.truncf %0 : vector<32x2048xf32> to vector<32x2048xbf16>
    %c0_1 = arith.constant 0 : index
    %c0_2 = arith.constant 0 : index
    %2 = vector.load %arg2[%c0_1, %c0_2] : memref<2048x512xbf16, #tpu.memory_space<vmem>>, vector<2048x512xbf16>
    %cst = arith.constant dense<0.000000e+00> : vector<32x512xf32>
    %3 = tpu.matmul %1, %2, %cst {dimension_numbers = #tpu.dot_dimension_numbers<[1], [0], [0], [1], [0, 0, 1, 1], [], []>} : vector<32x2048xbf16>, vector<2048x512xbf16>, vector<32x512xf32> -> vector<32x512xf32>
    %c0_3 = arith.constant 0 : index
    %c0_4 = arith.constant 0 : index
    %4 = vector.load %arg3[%c0_3, %c0_4] : memref<1x512xf32, #tpu.memory_space<vmem>>, vector<1x512xf32>
    %5 = vector.broadcast %4 : vector<1x512xf32> to vector<32x512xf32>
    %6 = arith.addf %3, %5 : vector<32x512xf32>
    %cst_5 = arith.constant 0.000000e+00 : f32
    %7 = vector.broadcast %cst_5 : f32 to vector<32x512xf32>
    %8 = arith.maximumf %6, %7 : vector<32x512xf32>
    %9 = arith.truncf %8 : vector<32x512xf32> to vector<32x512xbf16>
    %c0_6 = arith.constant 0 : index
    %c0_7 = arith.constant 0 : index
    %10 = vector.load %arg4[%c0_6, %c0_7] : memref<512x512xbf16, #tpu.memory_space<vmem>>, vector<512x512xbf16>
    %cst_8 = arith.constant dense<0.000000e+00> : vector<32x512xf32>
    %11 = tpu.matmul %9, %10, %cst_8 {dimension_numbers = #tpu.dot_dimension_numbers<[1], [0], [0], [1], [0, 0, 1, 1], [], []>} : vector<32x512xbf16>, vector<512x512xbf16>, vector<32x512xf32> -> vector<32x512xf32>
    %c0_9 = arith.constant 0 : index
    %c0_10 = arith.constant 0 : index
    %12 = vector.load %arg5[%c0_9, %c0_10] : memref<1x512xf32, #tpu.memory_space<vmem>>, vector<1x512xf32>
    %13 = vector.broadcast %12 : vector<1x512xf32> to vector<32x512xf32>
    %14 = arith.addf %11, %13 : vector<32x512xf32>
    %cst_11 = arith.constant 0.000000e+00 : f32
    %15 = vector.broadcast %cst_11 : f32 to vector<32x512xf32>
    %16 = arith.maximumf %14, %15 : vector<32x512xf32>
    %17 = arith.truncf %16 : vector<32x512xf32> to vector<32x512xbf16>
    %c0_12 = arith.constant 0 : index
    %c0_13 = arith.constant 0 : index
    %18 = vector.load %arg6[%c0_12, %c0_13] : memref<512x128xbf16, #tpu.memory_space<vmem>>, vector<512x128xbf16>
    %cst_14 = arith.constant dense<0.000000e+00> : vector<32x128xf32>
    %19 = tpu.matmul %17, %18, %cst_14 {dimension_numbers = #tpu.dot_dimension_numbers<[1], [0], [0], [1], [0, 0, 1, 1], [], []>} : vector<32x512xbf16>, vector<512x128xbf16>, vector<32x128xf32> -> vector<32x128xf32>
    %c0_15 = arith.constant 0 : index
    %c0_16 = arith.constant 0 : index
    %20 = vector.load %arg7[%c0_15, %c0_16] : memref<1x128xf32, #tpu.memory_space<vmem>>, vector<1x128xf32>
    %21 = vector.broadcast %20 : vector<1x128xf32> to vector<32x128xf32>
    %22 = arith.addf %19, %21 : vector<32x128xf32>
    %cst_17 = arith.constant 0.000000e+00 : f32
    %23 = vector.broadcast %cst_17 : f32 to vector<32x128xf32>
    %24 = arith.maximumf %22, %23 : vector<32x128xf32>
    %c0_18 = arith.constant 0 : index
    %c0_19 = arith.constant 0 : index
    %25 = vector.load %arg8[%c0_18, %c0_19] : memref<32x128xf32, #tpu.memory_space<vmem>>, vector<32x128xf32>
    tpu.vector_store %arg8[%c0_18, %c0_19], %24 {strides = array<i32>} : memref<32x128xf32, #tpu.memory_space<vmem>>, vector<32x128xf32>,
    return
  }
  func.func @transform_0(%arg0: i32) -> (i32, i32) {
    %c0_i32 = arith.constant 0 : i32
    %c0_i32_0 = arith.constant 0 : i32
    return %arg0, %c0_i32 : i32, i32
  }
  func.func @transform_1(%arg0: i32) -> (i32, i32) {
    %c0_i32 = arith.constant 0 : i32
    %c0_i32_0 = arith.constant 0 : i32
    %c0_i32_1 = arith.constant 0 : i32
    return %c0_i32, %c0_i32_0 : i32, i32
  }
  func.func @transform_2(%arg0: i32) -> (i32, i32) {
    %c0_i32 = arith.constant 0 : i32
    %c0_i32_0 = arith.constant 0 : i32
    %c0_i32_1 = arith.constant 0 : i32
    return %c0_i32, %c0_i32_0 : i32, i32
  }
  func.func @transform_3(%arg0: i32) -> (i32, i32) {
    %c0_i32 = arith.constant 0 : i32
    %c0_i32_0 = arith.constant 0 : i32
    %c0_i32_1 = arith.constant 0 : i32
    return %c0_i32, %c0_i32_0 : i32, i32
  }
  func.func @transform_4(%arg0: i32) -> (i32, i32) {
    %c0_i32 = arith.constant 0 : i32
    %c0_i32_0 = arith.constant 0 : i32
    %c0_i32_1 = arith.constant 0 : i32
    return %c0_i32, %c0_i32_0 : i32, i32
  }
  func.func @transform_5(%arg0: i32) -> (i32, i32) {
    %c0_i32 = arith.constant 0 : i32
    %c0_i32_0 = arith.constant 0 : i32
    %c0_i32_1 = arith.constant 0 : i32
    return %c0_i32, %c0_i32_0 : i32, i32
  }
  func.func @transform_6(%arg0: i32) -> (i32, i32) {
    %c0_i32 = arith.constant 0 : i32
    %c0_i32_0 = arith.constant 0 : i32
    %c0_i32_1 = arith.constant 0 : i32
    return %c0_i32, %c0_i32_0 : i32, i32
  }
  func.func @transform_7(%arg0: i32) -> (i32, i32) {
    %c0_i32 = arith.constant 0 : i32
    %c0_i32_0 = arith.constant 0 : i32
    return %arg0, %c0_i32 : i32, i32
  }
}

</mosaic_0001>

<bundles_post_ra>
// kernel: tpu_custom_call.1
= control target key start
LH: loop header
LB: loop body
LE: loop exit
PB: predicated region body
PF: predicated region fallthrough
CT: control target
= control target key end

     0   :  { %s11165_s0 = inlined_call_operand.hbm [shape: f32[72,2048], index: 0, kind: input, shape index: {}]   ;;  %s11166_s1 = inlined_call_operand.hbm [shape: bf16[2048,512], index: 1, kind: input, shape index: {}]   ;;  %s11167_s2 = inlined_call_operand.hbm [shape: f32[1,512], index: 2, kind: input, shape index: {}]   ;;  %s11168_s3 = inlined_call_operand.hbm [shape: bf16[512,512], index: 3, kind: input, shape index: {}]   ;;  %s11169_s4 = inlined_call_operand.hbm [shape: f32[1,512], index: 4, kind: input, shape index: {}]   ;;  %s11170_s5 = inlined_call_operand.hbm [shape: bf16[512,128], index: 5, kind: input, shape index: {}]   ;;  %s11171_s6 = inlined_call_operand.hbm [shape: f32[1,128], index: 6, kind: input, shape index: {}]   ;;  %s11172_s7 = inlined_call_operand.hbm [shape: f32[72,128], index: 7, kind: output, shape index: {}]  }
   0x1   :  { %11191 = sst [smem:[#allocation30_spill]] %s11166_s1 }
   0x2   :  { %11192 = sst [smem:[#allocation31_spill]] %s11168_s3 }
   0x3   :  { %11193 = sst [smem:[#allocation32_spill]] %s11170_s5 }
   0x4   :  { %12 = vsyncpa [#allocation3], 0 }
   0x5   :  { %14 = vsyncpa [#allocation3 + $0x1], 0 }
   0x6   :  { %15 = vsyncpa [#allocation6], 0 }
   0x7   :  { %16 = vsyncpa [#allocation9], 0 }
   0x8   :  { %17 = vsyncpa [#allocation12], 0 }
   0x9   :  { %18 = vsyncpa [#allocation4], 0 }
   0xa   :  { %20 = vsyncpa [#allocation4 + $0x1], 0  ;;  %s10311_s24 = smov 0   ;;  %s10313_s25 = smov 0  }
   0xb   :  { %s10315_s26 = smov 0   ;;  %s10317_s27 = smov 0  }
   0xc LB: > { %s10332_s28 = sadd.s32 4294967295, %s10253_s27   ;;  %s6433_s29 = sadd.s32 4294967294, %s10253_s27   ;;  %s10253_s27 = sphi %s10317_s27, %s11237_s27   ;;  %s10249_s26 = sphi %s10315_s26, %s11241_s26   ;;  %s10245_s25 = sphi %s10313_s25, %s11240_s25   ;;  %s10241_s24 = sphi %s10311_s24, %s11239_s24  }
   0xd   : > { %s10336_s30 = sadd.s32 1, %s10253_s27   ;;  %s33_s8 = sadd.s32 1, %s10249_s26 }
   0xe   : > { %11194 = sst [smem:[#allocation20_spill]] %s10336_s30  ;;  %s30_s9 = ssub.s32 %s10253_s27, %s10336_s30 }
   0xf   : > { %p40_p0 = scmp.ne.s32.totalorder %s10249_s26, %s10245_s25  ;;  %p31_p1 = scmp.eq.s32.totalorder %s30_s9, 0 }
  0x10   : > { %p41_p2 = scmp.eq.s32.totalorder %s10253_s27, 0  ;;  %p46_p3 = scmp.ne.s32.totalorder %s10245_s25, %s10241_s24 }
  0x11   : > { %p11176_p4 = scmp.eq.s32.totalorder %s10332_s28, 0  ;;  %p196_p7 = scmp.eq.s32.totalorder %s10332_s28, 2 }
  0x12   : > { %s10348_s10 = scalar_select %p31_p1, %s10249_s26, %s33_s8  }
  0x13   : > { %p10350_p5 = por %p41_p2, %p40_p0  ;;  %p10356_p6 = por %p11176_p4, %p46_p3 }
  0x14   : > { %11195 = sst [smem:[#allocation21_spill]] %s10348_s10  ;;  %p202_p8 = scmp.eq.s32.totalorder %s6433_s29, 2 }
  0x15   : > { %p6434_p9 = scmp.ge.s32.totalorder %s10253_s27, 1  ;;  %p209_p10 = scmp.lt.s32.totalorder %s10253_s27, 4 }
  0x16   : > { %p10363_p11 = por %p196_p7, %p40_p0  ;;  %p10367_p12 = por %p202_p8, %p46_p3 }
  0x17   : > { %p10371_p13 = pnand %p6434_p9, %p209_p10  ;;  %s11202_s1 = sld [smem:[#allocation30_spill]] }
  0x18   : > { %s11199_s14 = scalar_select %p10367_p12, 1, 0 }
  0x19   : > { %p9859_p1 = pneg %p10371_p13  ;;  %s10255_s19 = smov [#allocation5]  }
  0x1a   : > { %11200 = sst [smem:[#allocation22_spill]] %s11199_s14  ;;  %s222_s20 = sshll.u32 %s10255_s19, 4  ;;  %s223_s20 = int_to_ptr.vmem [resolvable:$true] %s222_s20 }
  0x1b   : > { %p10382_p0 = pnand %p9859_p1, %p11176_p4  ;;  %s11204_s3 = sld [smem:[#allocation31_spill]] }
  0x1c   : > { %s10256_s8 = smov 256   ;;  %s10257_s9 = smov 16  }
  0x1d   : > { %s220_s18 = sshll.u32 %s11202_s1, 4  ;;  %s11205_s5 = sld [smem:[#allocation32_spill]]  ;;  %s221_s18 = int_to_ptr.hbm [resolvable:$true] %s220_s18 }
  0x1e   : > { %9862 = dma.hbm_to_vmem [thread:$0]  (!%p10382_p0), %s221_s18, 65536, %s223_s20, [#allocation6], %s10256_s8, %s10256_s8, %s10257_s9  }
  0x1f   : > { %s10258_s1 = smov [#allocation8]   ;;  %s10259_s22 = smov [#allocation11]  }
  0x20   : > { %s248_s10 = sshll.u32 %s10258_s1, 4  ;;  %s274_s23 = sshll.u32 %s10259_s22, 4  ;;  %s249_s10 = int_to_ptr.vmem [resolvable:$true] %s248_s10  ;;  %s275_s23 = int_to_ptr.vmem [resolvable:$true] %s274_s23 }
  0x21   : > { %s246_s29 = sshll.u32 %s11204_s3, 4  ;;  %s10260_s3 = smov 64   ;;  %s247_s29 = int_to_ptr.hbm [resolvable:$true] %s246_s29 }
  0x22   : > { %9868 = dma.hbm_to_vmem [thread:$0]  (!%p10382_p0), %s247_s29, 16384, %s249_s10, [#allocation9], %s10256_s8, %s10256_s8, %s10257_s9  }
  0x23   : > { %s272_s19 = sshll.u32 %s11205_s5, 4  ;;  %s10261_s30 = smov 4   ;;  %s273_s19 = int_to_ptr.hbm [resolvable:$true] %s272_s19 }
  0x24   : > { %9874 = dma.hbm_to_vmem [thread:$0]  (!%p10382_p0), %s273_s19, 4096, %s275_s23, [#allocation12], %s10260_s3, %s10260_s3, %s10261_s30  }
  0x25   : > { %s235_s16 = sshll.u32 %s11167_s2, 4  ;;  %s10262_s1 = smov [#allocation7]   ;;  %s236_s16 = int_to_ptr.hbm [resolvable:$true] %s235_s16 }
  0x26   : > { %s237_s17 = sshll.u32 %s10262_s1, 4  ;;  %s261_s10 = sshll.u32 %s11169_s4, 4  ;;  %s238_s17 = int_to_ptr.vmem [resolvable:$true] %s237_s17  ;;  %s262_s10 = int_to_ptr.hbm [resolvable:$true] %s261_s10 }
  0x27   : > { %9865 = dma.hbm_to_vmem [thread:$0]  (!%p10382_p0), %s236_s16, 64, %s238_s17, [#allocation6]  }
  0x28   : > { %s10263_s29 = smov [#allocation10]   ;;  %s287_s30 = sshll.u32 %s11171_s6, 4  ;;  %s288_s30 = int_to_ptr.hbm [resolvable:$true] %s287_s30 }
  0x29   : > { %s263_s8 = sshll.u32 %s10263_s29, 4  ;;  %s10264_s19 = smov [#allocation13]   ;;  %s264_s8 = int_to_ptr.vmem [resolvable:$true] %s263_s8 }
  0x2a   : > { %9871 = dma.hbm_to_vmem [thread:$0]  (!%p10382_p0), %s262_s10, 64, %s264_s8, [#allocation9]  }
  0x2b   : > { %s289_s22 = sshll.u32 %s10264_s19, 4  ;;  %p6441_p2 = scmp.ge.s32.totalorder %s10253_s27, 3  ;;  %s290_s22 = int_to_ptr.vmem [resolvable:$true] %s289_s22 }
  0x2c   : > { %9877 = dma.hbm_to_vmem [thread:$0]  (!%p10382_p0), %s288_s30, 16, %s290_s22, [#allocation12]  }
  0x2d   : > { %296 = sbr.rel (%p6441_p2) target bundleno = 86 (0x56), region = 40 }
  0x32   : > { %299 = sbr.rel (!%p10350_p5) target bundleno = 86 (0x56), region = 44  ;;  %s300_s5 = sand.u32 (%p10350_p5), 1, %s10249_s26  }
  0x33   : > { %s6443_s14 = sshll.u32 (%p10350_p5), %s10253_s27, 2  ;;  %s6442_s23 = sshll.u32 (%p10350_p5), %s300_s5, 9 }
  0x34   : > { %s306_s18 = ssub.s32 (%p10350_p5), 9, %s6443_s14  ;;  %s10421_s1 = scalar_lea.sflag (%p10350_p5), [#allocation3], %s300_s5 }
  0x35   : > { %p307_p3 = scmp.lt.s32.totalorder (%p10350_p5), %s306_s18, 4  ;;  %s304_s17 = scalar_lea.vmem (%p10350_p5), [#allocation2], %s6442_s23 }
  0x37   : > { %s11243_s18 = smov (!%p307_p3, %s306_s18), 4 }
  0x38   : > { %s9157_s20 = sshll.u32 %s11243_s18, 7 }
  0x39   : > { %s311_s16 = ssub.s32 512, %s9157_s20 }
  0x3a   : > { %s312_s21 = sshll.u32 %s311_s16, 4 }
  0x3b   : > { %313 = vsyncadd %s10421_s1, %s312_s21  ;;  %p10424_p5 = scmp.ne.s32.totalorder %s9157_s20, 0  ;;  %s9159_s10 = sshll.u32 %s10253_s27, 9 }
  0x3c   : > { %s317_s9 = scalar_lea.hbm %s11165_s0, %s9159_s10  ;;  %s10432_s3 = sshll.u32 %s304_s17, 4  ;;  %s322_s3 = int_to_ptr.vmem [resolvable:$true] %s10432_s3 }
  0x3d   : > { %s319_s30 = sshll.u32 %s317_s9, 4  ;;  %s6450_s19 = sshll.u32 %s11243_s18, 11  ;;  %s10435_s30 = int_to_ptr.hbm [resolvable:$true] %s319_s30 }
  0x3e   : > { %s10125_s22 = sshra.s32 %s10435_s30, 4  ;;  %s10127_s5 = sshrl.u32 %s6450_s19, 4  ;;  %s10126_s22 = int_to_ptr.hbm [resolvable:$true] %s10125_s22 }
  0x3f   : > { %s10132_s14 = scalar_lea.hbm %s10126_s22, %s10127_s5  ;;  %s10136_s16 = scalar_lea.hbm %s11165_s0, 1152 }
  0x40   : > { %p10133_p7 = scmp.ne.s32.totalorder %s10126_s22, %s10132_s14  ;;  %p10137_p10 = scmp.lt.s32.totalorder %s10126_s22, %s11165_s0 }
  0x41   : > { %p10138_p1 = scmp.lt.s32.totalorder %s10136_s16, %s10132_s14 }
  0x42   : > { %p10134_p8 = pnand %p10133_p7, %p10424_p5 }
  0x43   : > { %p10139_p0 = por %p10138_p1, %p10137_p10 }
  0x44   : > { %p10135_p9 = pneg %p10134_p8 }
  0x46   : > { %p10140_p2 = pnand %p10139_p0, %p10135_p9 }
  0x48   : > { %10143 = shalt.err (!%p10140_p2)
}
  0x49   : > { %s10144_s10 = sshra.s32 %s322_s3, 4  ;;  %s10265_s8 = smov [#allocation2]   ;;  %s10145_s10 = int_to_ptr.vmem [resolvable:$true] %s10144_s10 }
  0x4a   : > { %s10151_s29 = scalar_lea.vmem %s10145_s10, %s10127_s5  ;;  %s10155_s9 = scalar_lea.vmem %s10265_s8, 1024 }
  0x4b   : > { %p10152_p3 = scmp.ne.s32.totalorder %s10145_s10, %s10151_s29  ;;  %p10157_p4 = scmp.lt.s32.totalorder %s10155_s9, %s10151_s29 }
  0x4d   : > { %p10153_p7 = pnand %p10152_p3, %p10424_p5 }
  0x4f   : > { %p10154_p8 = pneg %p10153_p7 }
  0x51   : > { %p10159_p12 = pnand %p10157_p4, %p10154_p8 }
  0x53   : > { %10162 = shalt.err (!%p10159_p12)
}
  0x54   : > { %s10266_s22 = smov 2048   ;;  %s10267_s14 = smov 128  }
  0x55   : > { %327 = dma.hbm_to_vmem [thread:$0]  (%p10424_p5), %s10435_s30, %s6450_s19, %s322_s3, %s10421_s1, %s10266_s22, %s10266_s22, %s10267_s14  }
  0x56 PF: > { %333 = sbr.rel (%p10371_p13) target bundleno = 1223 (0x4c7), region = 48 }
  0x5b   : > { %s10464_s5 = sand.u32 1, %s10245_s25  }
  0x5c   : > { %s6452_s23 = sshll.u32 %s10464_s5, 9  ;;  %s336_s20 = scalar_lea.sflag [#allocation3], %s10464_s5 }
  0x5d   : > { %s10468_s16 = scalar_lea.vmem [#allocation2], %s6452_s23 }
  0x5e   : > { %10220 = dma.done.wait (%p10356_p6), %s336_s20, 8192  }
  0x5f   : > { %10222 = vsyncadd (%p10356_p6), %s336_s20, 4294959104  ;;  %p11207_p4 = scmp.eq.s32.totalorder %s10332_s28, 0 }
  0x61   : > { %10224 = dma.done.wait (%p11207_p4), [#allocation6], 65600   ;;  %p11208_p12 = pmov %p11207_p4 }
  0x62   : > { %p11209_p13 = pmov %p11207_p4 }
  0x63   : > { %10226 = vsyncadd (%p11208_p12), [#allocation6], 4294901696 }
  0x64   : > { %10228 = dma.done.wait (%p11209_p13), [#allocation9], 16448   ;;  %p11210_p5 = pmov %p11207_p4 }
  0x65   : > { %p11211_p9 = pmov %p11207_p4 }
  0x66   : > { %10230 = vsyncadd (%p11210_p5), [#allocation9], 4294950848 }
  0x67   : > { %10232 = dma.done.wait (%p11211_p9), [#allocation12], 4112   ;;  %p11212_p10 = pmov %p11207_p4 }
  0x68   : > { %v6574_v0 = vld [vmem:[#allocation5 + $0xe0] sm:$0xf]  ;;  %v9190_v1 = vld [vmem:[#allocation5 + $0xec] sm:$0xf0]  ;;  %s6459_s12 = sshll.u32 %s10464_s5, 5  ;;  %s6281_s18 = scalar_lea.sflag [#allocation4], %s10464_s5 }
  0x69   : > { %10234 = vsyncadd (%p11212_p10), [#allocation12], 4294963184  ;;  %v6702_v2 = vld [vmem:[#allocation5 + $0x1e0] sm:$0xf]  ;;  %v6575_v3 = vor.u32 %v9190_v1, %v6574_v0  ;;  %v9222_v4 = vld [vmem:[#allocation5 + $0x1ec] sm:$0xf0] }
  0x6a   : > { %v6830_v5 = vld [vmem:[#allocation5 + $0x2e0] sm:$0xf]  ;;  %v9254_v6 = vld [vmem:[#allocation5 + $0x2ec] sm:$0xf0]  ;;  %v6703_v7 = vor.u32 %v9222_v4, %v6702_v2  ;;  %s11097_s15 = scalar_lea.vmem [#allocation14], %s6459_s12  ;;  %s9149_s1 = sshll.u32 (%p10363_p11), %s10332_s28, 2 }
  0x6b   : > { %v6831_v8 = vor.u32 %v9254_v6, %v6830_v5  ;;  %v6958_v9 = vld [vmem:[#allocation5 + $0x3e0] sm:$0xf]  ;;  %v9286_v10 = vld [vmem:[#allocation5 + $0x3ec] sm:$0xf0]  ;;  %3590 = vmatpush.bf16.msra.mxu0 %v6575_v3  ;;  %s6289_s11 = ssub.s32 (%p10363_p11), 9, %s9149_s1 }
  0x6c   : > { %v6558_v11 = vld [vmem:[#allocation5 + $0xc0] sm:$0xf]  ;;  %v6959_v12 = vor.u32 %v9286_v10, %v6958_v9  ;;  %v9186_v13 = vld [vmem:[#allocation5 + $0xcc] sm:$0xf0]  ;;  %3609 = vmatpush.bf16.msra.mxu1 %v6703_v7  ;;  %p6290_p6 = scmp.lt.s32.totalorder (%p10363_p11), %s6289_s11, 4 }
  0x6d   : > { %v6686_v14 = vld [vmem:[#allocation5 + $0x1c0] sm:$0xf]  ;;  %v9218_v15 = vld [vmem:[#allocation5 + $0x1cc] sm:$0xf0]  ;;  %3628 = vmatpush.bf16.msra.mxu2 %v6831_v8  ;;  %v6559_v16 = vor.u32 %v9186_v13, %v6558_v11 }
  0x6e   : > { %v6687_v17 = vor.u32 %v9218_v15, %v6686_v14  ;;  %v6814_v18 = vld [vmem:[#allocation5 + $0x2c0] sm:$0xf]  ;;  %v9250_v19 = vld [vmem:[#allocation5 + $0x2cc] sm:$0xf0]  ;;  %3647 = vmatpush.bf16.msra.mxu3 %v6959_v12 }
  0x6f   : > { %v6942_v20 = vld [vmem:[#allocation5 + $0x3c0] sm:$0xf]  ;;  %v6815_v21 = vor.u32 %v9250_v19, %v6814_v18  ;;  %v9282_v22 = vld [vmem:[#allocation5 + $0x3cc] sm:$0xf0]  ;;  %3591 = vmatpush.bf16.msra.mxu0 %v6559_v16 }
  0x70   : > { %v6542_v23 = vld [vmem:[#allocation5 + $0xa0] sm:$0xf]  ;;  %v9182_v24 = vld [vmem:[#allocation5 + $0xac] sm:$0xf0]  ;;  %v6943_v25 = vor.u32 %v9282_v22, %v6942_v20  ;;  %3610 = vmatpush.bf16.msra.mxu1 %v6687_v17 }
  0x71   : > { %v6670_v26 = vld [vmem:[#allocation5 + $0x1a0] sm:$0xf]  ;;  %v9214_v27 = vld [vmem:[#allocation5 + $0x1ac] sm:$0xf0]  ;;  %v6543_v29 = vor.u32 %v9182_v24, %v6542_v23  ;;  %3629 = vmatpush.bf16.msra.mxu2 %v6815_v21 }
  0x72   : > { %v6798_v28 = vld [vmem:[#allocation5 + $0x2a0] sm:$0xf]  ;;  %v9246_v30 = vld [vmem:[#allocation5 + $0x2ac] sm:$0xf0]  ;;  %v6671_v33 = vor.u32 %v9214_v27, %v6670_v26  ;;  %3648 = vmatpush.bf16.msra.mxu3 %v6943_v25 }
  0x73   : > { %v6926_v31 = vld [vmem:[#allocation5 + $0x3a0] sm:$0xf]  ;;  %v9278_v32 = vld [vmem:[#allocation5 + $0x3ac] sm:$0xf0]  ;;  %v6799_v34 = vor.u32 %v9246_v30, %v6798_v28  ;;  %3592 = vmatpush.bf16.msra.mxu0 %v6543_v29  ;;  %v413_v30 = vld [vmem:[%s10468_s16 + $0x8] sm:$0xff] }
  0x74   : > { %v6526_v35 = vld [vmem:[#allocation5 + $0x80] sm:$0xf]  ;;  %v9178_v36 = vld [vmem:[#allocation5 + $0x8c] sm:$0xf0]  ;;  %v6927_v38 = vor.u32 %v9278_v32, %v6926_v31  ;;  %3611 = vmatpush.bf16.msra.mxu1 %v6671_v33  ;;  %v429_v31 = vld [vmem:[%s10468_s16 + $0x88] sm:$0xff] }
  0x75   : > { %v6654_v37 = vld [vmem:[#allocation5 + $0x180] sm:$0xf]  ;;  %v9210_v39 = vld [vmem:[#allocation5 + $0x18c] sm:$0xf0]  ;;  %v6527_v44 = vor.u32 %v9178_v36, %v6526_v35  ;;  %3630 = vmatpush.bf16.msra.mxu2 %v6799_v34 }
  0x76   : > { %v6782_v40 = vld [vmem:[#allocation5 + $0x280] sm:$0xf]  ;;  %v9242_v41 = vld [vmem:[#allocation5 + $0x28c] sm:$0xf0]  ;;  %v6655_v45 = vor.u32 %v9210_v39, %v6654_v37  ;;  %3649 = vmatpush.bf16.msra.mxu3 %v6927_v38 }
  0x77   : > { %v6910_v42 = vld [vmem:[#allocation5 + $0x380] sm:$0xf]  ;;  %v9274_v43 = vld [vmem:[#allocation5 + $0x38c] sm:$0xf0]  ;;  %v6783_v46 = vor.u32 %v9242_v41, %v6782_v40  ;;  %3593 = vmatpush.bf16.msra.mxu0 %v6527_v44  ;;  %v415_v41 = vld [vmem:[%s10468_s16 + $0x18] sm:$0xff] }
  0x78   : > { %v6510_v47 = vld [vmem:[#allocation5 + $0x60] sm:$0xf]  ;;  %v9174_v48 = vld [vmem:[#allocation5 + $0x6c] sm:$0xf0]  ;;  %v6911_v50 = vor.u32 %v9274_v43, %v6910_v42  ;;  %3612 = vmatpush.bf16.msra.mxu1 %v6655_v45  ;;  %v431_v42 = vld [vmem:[%s10468_s16 + $0x98] sm:$0xff] }
  0x79   : > { %v6638_v49 = vld [vmem:[#allocation5 + $0x160] sm:$0xf]  ;;  %v9206_v51 = vld [vmem:[#allocation5 + $0x16c] sm:$0xf0]  ;;  %v6511_v56 = vor.u32 %v9174_v48, %v6510_v47  ;;  %3631 = vmatpush.bf16.msra.mxu2 %v6783_v46 }
  0x7a   : > { %v6766_v52 = vld [vmem:[#allocation5 + $0x260] sm:$0xf]  ;;  %v9238_v53 = vld [vmem:[#allocation5 + $0x26c] sm:$0xf0]  ;;  %v6639_v57 = vor.u32 %v9206_v51, %v6638_v49  ;;  %3650 = vmatpush.bf16.msra.mxu3 %v6911_v50 }
  0x7b   : > { %v6894_v54 = vld [vmem:[#allocation5 + $0x360] sm:$0xf]  ;;  %v9270_v55 = vld [vmem:[#allocation5 + $0x36c] sm:$0xf0]  ;;  %v6767_v58 = vor.u32 %v9238_v53, %v6766_v52  ;;  %3594 = vmatpush.bf16.msra.mxu0 %v6511_v56  ;;  %v10496_v53 = vpack.c.bf16 %v429_v31, %v413_v30 }
  0x7c   : > { %v6494_v59 = vld [vmem:[#allocation5 + $0x40] sm:$0xf]  ;;  %v9170_v60 = vld [vmem:[#allocation5 + $0x4c] sm:$0xf0]  ;;  %v6895_v62 = vor.u32 %v9270_v55, %v6894_v54  ;;  %3613 = vmatpush.bf16.msra.mxu1 %v6639_v57  ;;  %v10500_v57 = vpack.c.bf16 %v431_v42, %v415_v41 }
  0x7d   : > { %v6622_v61 = vld [vmem:[#allocation5 + $0x140] sm:$0xf]  ;;  %v9202_v63 = vld [vmem:[#allocation5 + $0x14c] sm:$0xf0]  ;;  %v6495_v4 = vor.u32 %v9170_v60, %v6494_v59  ;;  %3632 = vmatpush.bf16.msra.mxu2 %v6767_v58 }
  0x7e   : > { %v6750_v0 = vld [vmem:[#allocation5 + $0x240] sm:$0xf]  ;;  %v9234_v1 = vld [vmem:[#allocation5 + $0x24c] sm:$0xf0]  ;;  %v6623_v5 = vor.u32 %v9202_v63, %v6622_v61  ;;  %3651 = vmatpush.bf16.msra.mxu3 %v6895_v62  ;;  %11213 = vst [vmem:[#allocation23_spill] sm:$0xff] %v10500_v57 }
  0x7f   : > { %v6878_v2 = vld [vmem:[#allocation5 + $0x340] sm:$0xf]  ;;  %v9266_v3 = vld [vmem:[#allocation5 + $0x34c] sm:$0xf0]  ;;  %v6751_v6 = vor.u32 %v9234_v1, %v6750_v0  ;;  %3595 = vmatpush.bf16.msra.mxu0 %v6495_v4 }
  0x80   : > { %v6478_v7 = vld [vmem:[#allocation5 + $0x20] sm:$0xf]  ;;  %v9166_v8 = vld [vmem:[#allocation5 + $0x2c] sm:$0xf0]  ;;  %v6879_v10 = vor.u32 %v9266_v3, %v6878_v2  ;;  %3614 = vmatpush.bf16.msra.mxu1 %v6623_v5 }
  0x81   : > { %v6606_v9 = vld [vmem:[#allocation5 + $0x120] sm:$0xf]  ;;  %v9198_v11 = vld [vmem:[#allocation5 + $0x12c] sm:$0xf0]  ;;  %v6479_v17 = vor.u32 %v9166_v8, %v6478_v7  ;;  %3633 = vmatpush.bf16.msra.mxu2 %v6751_v6 }
  0x82   : > { %v6734_v12 = vld [vmem:[#allocation5 + $0x220] sm:$0xf]  ;;  %v9230_v13 = vld [vmem:[#allocation5 + $0x22c] sm:$0xf0]  ;;  %v6607_v21 = vor.u32 %v9198_v11, %v6606_v9  ;;  %3652 = vmatpush.bf16.msra.mxu3 %v6879_v10 }
  0x83   : > { %v6862_v14 = vld [vmem:[#allocation5 + $0x320] sm:$0xf]  ;;  %v9262_v15 = vld [vmem:[#allocation5 + $0x32c] sm:$0xf0]  ;;  %v6735_v22 = vor.u32 %v9230_v13, %v6734_v12  ;;  %3596 = vmatpush.bf16.msra.mxu0 %v6479_v17 }
  0x84   : > { %v6462_v16 = vld [vmem:[#allocation5] sm:$0xf]  ;;  %v9162_v18 = vld [vmem:[#allocation5 + $0xc] sm:$0xf0]  ;;  %v6863_v26 = vor.u32 %v9262_v15, %v6862_v14  ;;  %3615 = vmatpush.bf16.msra.mxu1 %v6607_v21 }
  0x85   : > { %v6590_v19 = vld [vmem:[#allocation5 + $0x100] sm:$0xf]  ;;  %v9194_v20 = vld [vmem:[#allocation5 + $0x10c] sm:$0xf0]  ;;  %v6463_v34 = vor.u32 %v9162_v18, %v6462_v16  ;;  %3634 = vmatpush.bf16.msra.mxu2 %v6735_v22 }
  0x86   : > { %v6718_v23 = vld [vmem:[#allocation5 + $0x200] sm:$0xf]  ;;  %v9226_v24 = vld [vmem:[#allocation5 + $0x20c] sm:$0xf0]  ;;  %v6591_v38 = vor.u32 %v9194_v20, %v6590_v19  ;;  %3653 = vmatpush.bf16.msra.mxu3 %v6863_v26 }
  0x87   : > { %v6846_v25 = vld [vmem:[#allocation5 + $0x300] sm:$0xf]  ;;  %v9258_v27 = vld [vmem:[#allocation5 + $0x30c] sm:$0xf0]  ;;  %v6719_v39 = vor.u32 %v9226_v24, %v6718_v23  ;;  %3597 = vmatpush.bf16.msra.mxu0 %v6463_v34 }
  0x88   : > { %v412_v28 = vld [vmem:[%s10468_s16] sm:$0xff]  ;;  %v9382_v33 = vld [vmem:[#allocation5 + $0x6ec] sm:$0xf0]  ;;  %v6847_v43 = vor.u32 %v9258_v27, %v6846_v25  ;;  %3616 = vmatpush.bf16.msra.mxu1 %v6591_v38  ;;  %v463_v38 = vld [vmem:[%s10468_s16 + $0x198] sm:$0xff] }
  0x89   : > { %v428_v29 = vld [vmem:[%s10468_s16 + $0x80] sm:$0xff]  ;;  %v414_v35 = vld [vmem:[%s10468_s16 + $0x10] sm:$0xff]  ;;  %3635 = vmatpush.bf16.msra.mxu2 %v6719_v39 }
  0x8a   : > { %v7342_v32 = vld [vmem:[#allocation5 + $0x6e0] sm:$0xf]  ;;  %v9350_v37 = vld [vmem:[#allocation5 + $0x5ec] sm:$0xf0]  ;;  %v10494_v48 = vpack.c.bf16 %v428_v29, %v412_v28  ;;  %3654 = vmatpush.bf16.msra.mxu3 %v6847_v43  ;;  %v445_v28 = vld [vmem:[%s10468_s16 + $0x108] sm:$0xff] }
  0x8b   : > { %v7214_v36 = vld [vmem:[#allocation5 + $0x5e0] sm:$0xf]  ;;  %v430_v40 = vld [vmem:[%s10468_s16 + $0x90] sm:$0xff]  ;;  %v7343_v44 = vor.u32 %v9382_v33, %v7342_v32  ;;  %3617 = vmatmul.bf16.vlgmr.msra.gmra.mxu1 %v10496_v53  ;;  %v461_v29 = vld [vmem:[%s10468_s16 + $0x188] sm:$0xff] }
  0x8c   : > { %v7086_v45 = vld [vmem:[#allocation5 + $0x4e0] sm:$0xf]  ;;  %v9318_v46 = vld [vmem:[#allocation5 + $0x4ec] sm:$0xf0]  ;;  %v7215_v49 = vor.u32 %v9350_v37, %v7214_v36  ;;  %v10498_v54 = vpack.c.bf16 %v430_v40, %v414_v35  ;;  %3598 = vmatmul.bf16.vlgmr.msra.gmra.mxu0 %v10494_v48  ;;  %v447_v37 = vld [vmem:[%s10468_s16 + $0x118] sm:$0xff] }
  0x8d   : > { %v7470_v47 = vld [vmem:[#allocation5 + $0x7e0] sm:$0xf]  ;;  %v9414_v50 = vld [vmem:[#allocation5 + $0x7ec] sm:$0xf0]  ;;  %v7087_v58 = vor.u32 %v9318_v46, %v7086_v45  ;;  %3704 = vmatpush.bf16.msrb.mxu2 %v7343_v44  ;;  %3655 = vmatmul.bf16.vlgmr.msra.gmra.mxu3 %v10500_v57 }
  0x8e   : > { %v7326_v51 = vld [vmem:[#allocation5 + $0x6c0] sm:$0xf]  ;;  %v9378_v52 = vld [vmem:[#allocation5 + $0x6cc] sm:$0xf0]  ;;  %v7471_v59 = vor.u32 %v9414_v50, %v7470_v47  ;;  %3685 = vmatpush.bf16.msrb.mxu1 %v7215_v49  ;;  %3636 = vmatmul.bf16.vlgmr.msra.gmra.mxu2 %v10498_v54  ;;  %v10516_v50 = vpack.c.bf16 %v461_v29, %v445_v28 }
  0x8f   : > { %v7198_v55 = vld [vmem:[#allocation5 + $0x5c0] sm:$0xf]  ;;  %v9346_v56 = vld [vmem:[#allocation5 + $0x5cc] sm:$0xf0]  ;;  %v7327_v60 = vor.u32 %v9378_v52, %v7326_v51  ;;  %3666 = vmatpush.bf16.msrb.mxu0 %v7087_v58 }
  0x90   : > { %v7070_v61 = vld [vmem:[#allocation5 + $0x4c0] sm:$0xf]  ;;  %v9314_v62 = vld [vmem:[#allocation5 + $0x4cc] sm:$0xf0]  ;;  %v7199_v0 = vor.u32 %v9346_v56, %v7198_v55  ;;  %3723 = vmatpush.bf16.msrb.mxu3 %v7471_v59  ;;  %11215 = vst [vmem:[#allocation25_spill] sm:$0xff] %v10516_v50  ;;  %v10520_v56 = vpack.c.bf16 %v463_v38, %v447_v37 }
  0x91   : > { %v7454_v63 = vld [vmem:[#allocation5 + $0x7c0] sm:$0xf]  ;;  %v9410_v1 = vld [vmem:[#allocation5 + $0x7cc] sm:$0xf0]  ;;  %v7071_v6 = vor.u32 %v9314_v62, %v7070_v61  ;;  %3705 = vmatpush.bf16.msrb.mxu2 %v7327_v60 }
  0x92   : > { %v7310_v2 = vld [vmem:[#allocation5 + $0x6a0] sm:$0xf]  ;;  %v9374_v3 = vld [vmem:[#allocation5 + $0x6ac] sm:$0xf0]  ;;  %v7455_v7 = vor.u32 %v9410_v1, %v7454_v63  ;;  %3686 = vmatpush.bf16.msrb.mxu1 %v7199_v0  ;;  %11217 = vst [vmem:[#allocation27_spill] sm:$0xff] %v10520_v56 }
  0x93   : > { %v7182_v4 = vld [vmem:[#allocation5 + $0x5a0] sm:$0xf]  ;;  %v9342_v5 = vld [vmem:[#allocation5 + $0x5ac] sm:$0xf0]  ;;  %v7311_v8 = vor.u32 %v9374_v3, %v7310_v2  ;;  %3667 = vmatpush.bf16.msrb.mxu0 %v7071_v6 }
  0x94   : > { %v7054_v9 = vld [vmem:[#allocation5 + $0x4a0] sm:$0xf]  ;;  %v9310_v10 = vld [vmem:[#allocation5 + $0x4ac] sm:$0xf0]  ;;  %v7183_v12 = vor.u32 %v9342_v5, %v7182_v4  ;;  %3724 = vmatpush.bf16.msrb.mxu3 %v7455_v7 }
  0x95   : > { %v7438_v11 = vld [vmem:[#allocation5 + $0x7a0] sm:$0xf]  ;;  %v9406_v13 = vld [vmem:[#allocation5 + $0x7ac] sm:$0xf0]  ;;  %v7055_v18 = vor.u32 %v9310_v10, %v7054_v9  ;;  %3706 = vmatpush.bf16.msrb.mxu2 %v7311_v8 }
  0x96   : > { %v7294_v14 = vld [vmem:[#allocation5 + $0x680] sm:$0xf]  ;;  %v9370_v15 = vld [vmem:[#allocation5 + $0x68c] sm:$0xf0]  ;;  %v7439_v22 = vor.u32 %v9406_v13, %v7438_v11  ;;  %3687 = vmatpush.bf16.msrb.mxu1 %v7183_v12 }
  0x97   : > { %v7166_v16 = vld [vmem:[#allocation5 + $0x580] sm:$0xf]  ;;  %v9338_v17 = vld [vmem:[#allocation5 + $0x58c] sm:$0xf0]  ;;  %v7295_v23 = vor.u32 %v9370_v15, %v7294_v14  ;;  %3668 = vmatpush.bf16.msrb.mxu0 %v7055_v18 }
  0x98   : > { %v7038_v19 = vld [vmem:[#allocation5 + $0x480] sm:$0xf]  ;;  %v9306_v20 = vld [vmem:[#allocation5 + $0x48c] sm:$0xf0]  ;;  %v7167_v27 = vor.u32 %v9338_v17, %v7166_v16  ;;  %3725 = vmatpush.bf16.msrb.mxu3 %v7439_v22 }
  0x99   : > { %v7422_v21 = vld [vmem:[#allocation5 + $0x780] sm:$0xf]  ;;  %v9402_v24 = vld [vmem:[#allocation5 + $0x78c] sm:$0xf0]  ;;  %v7039_v35 = vor.u32 %v9306_v20, %v7038_v19  ;;  %3707 = vmatpush.bf16.msrb.mxu2 %v7295_v23 }
  0x9a   : > { %v444_v25 = vld [vmem:[%s10468_s16 + $0x100] sm:$0xff]  ;;  %v9366_v31 = vld [vmem:[#allocation5 + $0x66c] sm:$0xf0]  ;;  %v7423_v39 = vor.u32 %v9402_v24, %v7422_v21  ;;  %3688 = vmatpush.bf16.msrb.mxu1 %v7167_v27 }
  0x9b   : > { %v460_v26 = vld [vmem:[%s10468_s16 + $0x180] sm:$0xff]  ;;  %v446_v32 = vld [vmem:[%s10468_s16 + $0x110] sm:$0xff]  ;;  %3669 = vmatpush.bf16.msrb.mxu0 %v7039_v35  ;;  %3622 = vmatmul.bf16.gmra.mxu1 %v10516_v50 }
  0x9c   : > { %v7278_v30 = vld [vmem:[#allocation5 + $0x660] sm:$0xf]  ;;  %v9334_v34 = vld [vmem:[#allocation5 + $0x56c] sm:$0xf0]  ;;  %v10514_v44 = vpack.c.bf16 %v460_v26, %v444_v25  ;;  %3726 = vmatpush.bf16.msrb.mxu3 %v7423_v39 }
  0x9d   : > { %v7150_v33 = vld [vmem:[#allocation5 + $0x560] sm:$0xf]  ;;  %v462_v36 = vld [vmem:[%s10468_s16 + $0x190] sm:$0xff]  ;;  %v7279_v40 = vor.u32 %v9366_v31, %v7278_v30  ;;  %3660 = vmatmul.bf16.gmra.mxu3 %v10520_v56 }
  0x9e   : > { %v7022_v41 = vld [vmem:[#allocation5 + $0x460] sm:$0xf]  ;;  %v9302_v42 = vld [vmem:[#allocation5 + $0x46c] sm:$0xf0]  ;;  %11214 = vst [vmem:[#allocation24_spill] sm:$0xff] %v10514_v44  ;;  %v7151_v45 = vor.u32 %v9334_v34, %v7150_v33  ;;  %v10518_v51 = vpack.c.bf16 %v462_v36, %v446_v32  ;;  %3603 = vmatmul.bf16.gmra.mxu0 %v10514_v44  ;;  %v417_v32 = vld [vmem:[%s10468_s16 + $0x28] sm:$0xff] }
  0x9f   : > { %v7406_v43 = vld [vmem:[#allocation5 + $0x760] sm:$0xf]  ;;  %v9398_v46 = vld [vmem:[#allocation5 + $0x76c] sm:$0xf0]  ;;  %v7023_v58 = vor.u32 %v9302_v42, %v7022_v41  ;;  %3708 = vmatpush.bf16.msrb.mxu2 %v7279_v40  ;;  %v433_v33 = vld [vmem:[%s10468_s16 + $0xa8] sm:$0xff] }
  0xa0   : > { %v7262_v47 = vld [vmem:[#allocation5 + $0x640] sm:$0xf]  ;;  %v9362_v49 = vld [vmem:[#allocation5 + $0x64c] sm:$0xf0]  ;;  %11216 = vst [vmem:[#allocation26_spill] sm:$0xff] %v10518_v51  ;;  %v7407_v59 = vor.u32 %v9398_v46, %v7406_v43  ;;  %3689 = vmatpush.bf16.msrb.mxu1 %v7151_v45  ;;  %3641 = vmatmul.bf16.gmra.mxu2 %v10518_v51  ;;  %v419_v46 = vld [vmem:[%s10468_s16 + $0x38] sm:$0xff] }
  0xa1   : > { %v7134_v52 = vld [vmem:[#allocation5 + $0x540] sm:$0xf]  ;;  %v9330_v55 = vld [vmem:[#allocation5 + $0x54c] sm:$0xf0]  ;;  %v7263_v60 = vor.u32 %v9362_v49, %v7262_v47  ;;  %3670 = vmatpush.bf16.msrb.mxu0 %v7023_v58  ;;  %v435_v49 = vld [vmem:[%s10468_s16 + $0xb8] sm:$0xff] }
  0xa2   : > { %v7006_v61 = vld [vmem:[#allocation5 + $0x440] sm:$0xf]  ;;  %v9298_v62 = vld [vmem:[#allocation5 + $0x44c] sm:$0xf0]  ;;  %v7135_v0 = vor.u32 %v9330_v55, %v7134_v52  ;;  %3727 = vmatpush.bf16.msrb.mxu3 %v7407_v59 }
  0xa3   : > { %v7390_v63 = vld [vmem:[#allocation5 + $0x740] sm:$0xf]  ;;  %v9394_v1 = vld [vmem:[#allocation5 + $0x74c] sm:$0xf0]  ;;  %v7007_v6 = vor.u32 %v9298_v62, %v7006_v61  ;;  %3709 = vmatpush.bf16.msrb.mxu2 %v7263_v60 }
  0xa4   : > { %v7246_v2 = vld [vmem:[#allocation5 + $0x620] sm:$0xf]  ;;  %v9358_v3 = vld [vmem:[#allocation5 + $0x62c] sm:$0xf0]  ;;  %v7391_v8 = vor.u32 %v9394_v1, %v7390_v63  ;;  %3690 = vmatpush.bf16.msrb.mxu1 %v7135_v0  ;;  %v10536_v1 = vpack.c.bf16 %v433_v33, %v417_v32 }
  0xa5   : > { %v7118_v4 = vld [vmem:[#allocation5 + $0x520] sm:$0xf]  ;;  %v9326_v5 = vld [vmem:[#allocation5 + $0x52c] sm:$0xf0]  ;;  %v7247_v9 = vor.u32 %v9358_v3, %v7246_v2  ;;  %3671 = vmatpush.bf16.msrb.mxu0 %v7007_v6  ;;  %v10540_v6 = vpack.c.bf16 %v435_v49, %v419_v46 }
  0xa6   : > { %v6990_v7 = vld [vmem:[#allocation5 + $0x420] sm:$0xf]  ;;  %v9294_v10 = vld [vmem:[#allocation5 + $0x42c] sm:$0xf0]  ;;  %v7119_v13 = vor.u32 %v9326_v5, %v7118_v4  ;;  %3728 = vmatpush.bf16.msrb.mxu3 %v7391_v8 }
  0xa7   : > { %v7374_v11 = vld [vmem:[#allocation5 + $0x720] sm:$0xf]  ;;  %v9390_v12 = vld [vmem:[#allocation5 + $0x72c] sm:$0xf0]  ;;  %v6991_v20 = vor.u32 %v9294_v10, %v6990_v7  ;;  %3710 = vmatpush.bf16.msrb.mxu2 %v7247_v9 }
  0xa8   : > { %v7230_v14 = vld [vmem:[#allocation5 + $0x600] sm:$0xf]  ;;  %v9354_v15 = vld [vmem:[#allocation5 + $0x60c] sm:$0xf0]  ;;  %v7375_v24 = vor.u32 %v9390_v12, %v7374_v11  ;;  %3691 = vmatpush.bf16.msrb.mxu1 %v7119_v13 }
  0xa9   : > { %v7102_v16 = vld [vmem:[#allocation5 + $0x500] sm:$0xf]  ;;  %v9322_v17 = vld [vmem:[#allocation5 + $0x50c] sm:$0xf0]  ;;  %v7231_v25 = vor.u32 %v9354_v15, %v7230_v14  ;;  %3672 = vmatpush.bf16.msrb.mxu0 %v6991_v20 }
  0xaa   : > { %v7854_v18 = vld [vmem:[#allocation5 + $0xae0] sm:$0xf]  ;;  %v9510_v19 = vld [vmem:[#allocation5 + $0xaec] sm:$0xf0]  ;;  %v7103_v29 = vor.u32 %v9322_v17, %v7102_v16  ;;  %3729 = vmatpush.bf16.msrb.mxu3 %v7375_v24 }
  0xab   : > { %v6974_v21 = vld [vmem:[#allocation5 + $0x400] sm:$0xf]  ;;  %v9478_v23 = vld [vmem:[#allocation5 + $0x9ec] sm:$0xf0]  ;;  %v7855_v34 = vor.u32 %v9510_v19, %v7854_v18  ;;  %3711 = vmatpush.bf16.msrb.mxu2 %v7231_v25 }
  0xac   : > { %v7726_v22 = vld [vmem:[#allocation5 + $0x9e0] sm:$0xf]  ;;  %v9290_v26 = vld [vmem:[#allocation5 + $0x40c] sm:$0xf0]  ;;  %3692 = vmatpush.bf16.msrb.mxu1 %v7103_v29 }
  0xad   : > { %v7358_v27 = vld [vmem:[#allocation5 + $0x700] sm:$0xf]  ;;  %v9386_v28 = vld [vmem:[#allocation5 + $0x70c] sm:$0xf0]  ;;  %v7727_v38 = vor.u32 %v9478_v23, %v7726_v22  ;;  %v6975_v42 = vor.u32 %v9290_v26, %v6974_v21 }
  0xae   : > { %v416_v30 = vld [vmem:[%s10468_s16 + $0x20] sm:$0xff]  ;;  %v9446_v36 = vld [vmem:[#allocation5 + $0x8ec] sm:$0xf0]  ;;  %v7359_v47 = vor.u32 %v9386_v28, %v7358_v27 }
  0xaf   : > { %v432_v31 = vld [vmem:[%s10468_s16 + $0xa0] sm:$0xff]  ;;  %v9542_v39 = vld [vmem:[#allocation5 + $0xbec] sm:$0xf0]  ;;  %3780 = vmatpush.bf16.msra.mxu2 %v7855_v34  ;;  %3673 = vmatpush.bf16.msrb.mxu0 %v6975_v42 }
  0xb0   : > { %v7598_v35 = vld [vmem:[#allocation5 + $0x8e0] sm:$0xf]  ;;  %v9506_v41 = vld [vmem:[#allocation5 + $0xacc] sm:$0xf0]  ;;  %v10534_v0 = vpack.c.bf16 %v432_v31, %v416_v30  ;;  %3761 = vmatpush.bf16.msra.mxu1 %v7727_v38  ;;  %3730 = vmatpush.bf16.msrb.mxu3 %v7359_v47  ;;  %v449_v38 = vld [vmem:[%s10468_s16 + $0x128] sm:$0xff] }
  0xb1   : > { %v7982_v37 = vld [vmem:[#allocation5 + $0xbe0] sm:$0xf]  ;;  %v418_v43 = vld [vmem:[%s10468_s16 + $0x30] sm:$0xff]  ;;  %v7599_v52 = vor.u32 %v9446_v36, %v7598_v35  ;;  %3693 = vmatmul.bf16.vlgmr.msrb.gmra.mxu1 %v10536_v1 }
  0xb2   : > { %v7838_v40 = vld [vmem:[#allocation5 + $0xac0] sm:$0xf]  ;;  %v434_v45 = vld [vmem:[%s10468_s16 + $0xb0] sm:$0xff]  ;;  %v7983_v59 = vor.u32 %v9542_v39, %v7982_v37  ;;  %3674 = vmatmul.bf16.vlgmr.msrb.gmra.mxu0 %v10534_v0  ;;  %v465_v39 = vld [vmem:[%s10468_s16 + $0x1a8] sm:$0xff] }
  0xb3   : > { %v7582_v55 = vld [vmem:[#allocation5 + $0x8c0] sm:$0xf]  ;;  %v9442_v58 = vld [vmem:[#allocation5 + $0x8cc] sm:$0xf0]  ;;  %v7839_v60 = vor.u32 %v9506_v41, %v7838_v40  ;;  %v10538_v5 = vpack.c.bf16 %v434_v45, %v418_v43  ;;  %3742 = vmatpush.bf16.msra.mxu0 %v7599_v52  ;;  %3731 = vmatmul.bf16.vlgmr.msrb.gmra.mxu3 %v10540_v6 }
  0xb4   : > { %v7710_v61 = vld [vmem:[#allocation5 + $0x9c0] sm:$0xf]  ;;  %v9474_v62 = vld [vmem:[#allocation5 + $0x9cc] sm:$0xf0]  ;;  %v7583_v7 = vor.u32 %v9442_v58, %v7582_v55  ;;  %3799 = vmatpush.bf16.msra.mxu3 %v7983_v59  ;;  %v451_v55 = vld [vmem:[%s10468_s16 + $0x138] sm:$0xff] }
  0xb5   : > { %v7966_v63 = vld [vmem:[#allocation5 + $0xbc0] sm:$0xf]  ;;  %v9538_v2 = vld [vmem:[#allocation5 + $0xbcc] sm:$0xf0]  ;;  %v7711_v8 = vor.u32 %v9474_v62, %v7710_v61  ;;  %3781 = vmatpush.bf16.msra.mxu2 %v7839_v60  ;;  %v467_v58 = vld [vmem:[%s10468_s16 + $0x1b8] sm:$0xff] }
  0xb6   : > { %v7822_v3 = vld [vmem:[#allocation5 + $0xaa0] sm:$0xf]  ;;  %v9502_v4 = vld [vmem:[#allocation5 + $0xaac] sm:$0xf0]  ;;  %v7967_v11 = vor.u32 %v9538_v2, %v7966_v63  ;;  %3712 = vmatmul.bf16.vlgmr.msrb.gmra.mxu2 %v10538_v5 }
  0xb7   : > { %v7566_v9 = vld [vmem:[#allocation5 + $0x8a0] sm:$0xf]  ;;  %v9438_v10 = vld [vmem:[#allocation5 + $0x8ac] sm:$0xf0]  ;;  %v7823_v12 = vor.u32 %v9502_v4, %v7822_v3  ;;  %3743 = vmatpush.bf16.msra.mxu0 %v7583_v7  ;;  %3762 = vmatpush.bf16.msra.mxu1 %v7711_v8 }
  0xb8   : > { %v7694_v13 = vld [vmem:[#allocation5 + $0x9a0] sm:$0xf]  ;;  %v9470_v14 = vld [vmem:[#allocation5 + $0x9ac] sm:$0xf0]  ;;  %v7567_v19 = vor.u32 %v9438_v10, %v7566_v9  ;;  %3800 = vmatpush.bf16.msra.mxu3 %v7967_v11  ;;  %v10556_v9 = vpack.c.bf16 %v465_v39, %v449_v38 }
  0xb9   : > { %v7950_v15 = vld [vmem:[#allocation5 + $0xba0] sm:$0xf]  ;;  %v9534_v16 = vld [vmem:[#allocation5 + $0xbac] sm:$0xf0]  ;;  %v7695_v20 = vor.u32 %v9470_v14, %v7694_v13  ;;  %3782 = vmatpush.bf16.msra.mxu2 %v7823_v12  ;;  %v10560_v14 = vpack.c.bf16 %v467_v58, %v451_v55 }
  0xba   : > { %v7806_v17 = vld [vmem:[#allocation5 + $0xa80] sm:$0xf]  ;;  %v9498_v18 = vld [vmem:[#allocation5 + $0xa8c] sm:$0xf0]  ;;  %v7951_v23 = vor.u32 %v9534_v16, %v7950_v15 }
  0xbb   : > { %v7550_v21 = vld [vmem:[#allocation5 + $0x880] sm:$0xf]  ;;  %v9434_v22 = vld [vmem:[#allocation5 + $0x88c] sm:$0xf0]  ;;  %v7807_v24 = vor.u32 %v9498_v18, %v7806_v17  ;;  %3744 = vmatpush.bf16.msra.mxu0 %v7567_v19  ;;  %3763 = vmatpush.bf16.msra.mxu1 %v7695_v20 }
  0xbc   : > { %v7678_v25 = vld [vmem:[#allocation5 + $0x980] sm:$0xf]  ;;  %v9466_v26 = vld [vmem:[#allocation5 + $0x98c] sm:$0xf0]  ;;  %v7551_v31 = vor.u32 %v9434_v22, %v7550_v21  ;;  %3801 = vmatpush.bf16.msra.mxu3 %v7951_v23 }
  0xbd   : > { %v7934_v27 = vld [vmem:[#allocation5 + $0xb80] sm:$0xf]  ;;  %v9530_v28 = vld [vmem:[#allocation5 + $0xb8c] sm:$0xf0]  ;;  %v7679_v32 = vor.u32 %v9466_v26, %v7678_v25  ;;  %3783 = vmatpush.bf16.msra.mxu2 %v7807_v24 }
  0xbe   : > { %v7790_v29 = vld [vmem:[#allocation5 + $0xa60] sm:$0xf]  ;;  %v9494_v30 = vld [vmem:[#allocation5 + $0xa6c] sm:$0xf0]  ;;  %v7935_v35 = vor.u32 %v9530_v28, %v7934_v27 }
  0xbf   : > { %v7534_v33 = vld [vmem:[#allocation5 + $0x860] sm:$0xf]  ;;  %v9430_v34 = vld [vmem:[#allocation5 + $0x86c] sm:$0xf0]  ;;  %v7791_v40 = vor.u32 %v9494_v30, %v7790_v29  ;;  %3745 = vmatpush.bf16.msra.mxu0 %v7551_v31  ;;  %3764 = vmatpush.bf16.msra.mxu1 %v7679_v32 }
  0xc0   : > { %v448_v36 = vld [vmem:[%s10468_s16 + $0x120] sm:$0xff]  ;;  %v9462_v42 = vld [vmem:[#allocation5 + $0x96c] sm:$0xf0]  ;;  %v7535_v59 = vor.u32 %v9430_v34, %v7534_v33  ;;  %3802 = vmatpush.bf16.msra.mxu3 %v7935_v35 }
  0xc1   : > { %v464_v37 = vld [vmem:[%s10468_s16 + $0x1a0] sm:$0xff]  ;;  %v9526_v45 = vld [vmem:[#allocation5 + $0xb6c] sm:$0xf0]  ;;  %3784 = vmatpush.bf16.msra.mxu2 %v7791_v40  ;;  %3698 = vmatmul.bf16.gmra.mxu1 %v10556_v9 }
  0xc2   : > { %v7662_v41 = vld [vmem:[#allocation5 + $0x960] sm:$0xf]  ;;  %v9490_v47 = vld [vmem:[#allocation5 + $0xa4c] sm:$0xf0]  ;;  %v10554_v8 = vpack.c.bf16 %v464_v37, %v448_v36 }
  0xc3   : > { %v7918_v43 = vld [vmem:[#allocation5 + $0xb60] sm:$0xf]  ;;  %v450_v49 = vld [vmem:[%s10468_s16 + $0x130] sm:$0xff]  ;;  %v7663_v60 = vor.u32 %v9462_v42, %v7662_v41  ;;  %3746 = vmatpush.bf16.msra.mxu0 %v7535_v59  ;;  %3736 = vmatmul.bf16.gmra.mxu3 %v10560_v14 }
  0xc4   : > { %v7774_v46 = vld [vmem:[#allocation5 + $0xa40] sm:$0xf]  ;;  %v466_v52 = vld [vmem:[%s10468_s16 + $0x1b0] sm:$0xff]  ;;  %v7919_v63 = vor.u32 %v9526_v45, %v7918_v43  ;;  %3679 = vmatmul.bf16.gmra.mxu0 %v10554_v8 }
  0xc5   : > { %v7518_v61 = vld [vmem:[#allocation5 + $0x840] sm:$0xf]  ;;  %v9426_v62 = vld [vmem:[#allocation5 + $0x84c] sm:$0xf0]  ;;  %v7775_v2 = vor.u32 %v9490_v47, %v7774_v46  ;;  %v10558_v13 = vpack.c.bf16 %v466_v52, %v450_v49  ;;  %3765 = vmatpush.bf16.msra.mxu1 %v7663_v60 }
  0xc6   : > { %v7646_v3 = vld [vmem:[#allocation5 + $0x940] sm:$0xf]  ;;  %v9458_v4 = vld [vmem:[#allocation5 + $0x94c] sm:$0xf0]  ;;  %v7519_v15 = vor.u32 %v9426_v62, %v7518_v61  ;;  %3803 = vmatpush.bf16.msra.mxu3 %v7919_v63  ;;  %v421_v61 = vld [vmem:[%s10468_s16 + $0x48] sm:$0xff] }
  0xc7   : > { %v7902_v7 = vld [vmem:[#allocation5 + $0xb40] sm:$0xf]  ;;  %v9522_v10 = vld [vmem:[#allocation5 + $0xb4c] sm:$0xf0]  ;;  %v7647_v16 = vor.u32 %v9458_v4, %v7646_v3  ;;  %3785 = vmatpush.bf16.msra.mxu2 %v7775_v2  ;;  %v437_v63 = vld [vmem:[%s10468_s16 + $0xc8] sm:$0xff] }
  0xc8   : > { %v7758_v11 = vld [vmem:[#allocation5 + $0xa20] sm:$0xf]  ;;  %v9486_v12 = vld [vmem:[#allocation5 + $0xa2c] sm:$0xf0]  ;;  %v7903_v19 = vor.u32 %v9522_v10, %v7902_v7  ;;  %3717 = vmatmul.bf16.gmra.mxu2 %v10558_v13  ;;  %3747 = vmatpush.bf16.msra.mxu0 %v7519_v15 }
  0xc9   : > { %v7502_v17 = vld [vmem:[#allocation5 + $0x820] sm:$0xf]  ;;  %v9422_v18 = vld [vmem:[#allocation5 + $0x82c] sm:$0xf0]  ;;  %v7759_v20 = vor.u32 %v9486_v12, %v7758_v11  ;;  %3766 = vmatpush.bf16.msra.mxu1 %v7647_v16  ;;  %v423_v12 = vld [vmem:[%s10468_s16 + $0x58] sm:$0xff] }
  0xca   : > { %v7630_v21 = vld [vmem:[#allocation5 + $0x920] sm:$0xf]  ;;  %v9454_v22 = vld [vmem:[#allocation5 + $0x92c] sm:$0xf0]  ;;  %v7503_v29 = vor.u32 %v9422_v18, %v7502_v17  ;;  %3804 = vmatpush.bf16.msra.mxu3 %v7903_v19  ;;  %v439_v16 = vld [vmem:[%s10468_s16 + $0xd8] sm:$0xff] }
  0xcb   : > { %v7886_v23 = vld [vmem:[#allocation5 + $0xb20] sm:$0xf]  ;;  %v9518_v24 = vld [vmem:[#allocation5 + $0xb2c] sm:$0xf0]  ;;  %v7631_v30 = vor.u32 %v9454_v22, %v7630_v21  ;;  %3786 = vmatpush.bf16.msra.mxu2 %v7759_v20 }
  0xcc   : > { %v7742_v25 = vld [vmem:[#allocation5 + $0xa00] sm:$0xf]  ;;  %v9482_v26 = vld [vmem:[#allocation5 + $0xa0c] sm:$0xf0]  ;;  %v7887_v34 = vor.u32 %v9518_v24, %v7886_v23  ;;  %3748 = vmatpush.bf16.msra.mxu0 %v7503_v29  ;;  %v10576_v24 = vpack.c.bf16 %v437_v63, %v421_v61  ;;  %v10580_v29 = vpack.c.bf16 %v439_v16, %v423_v12 }
  0xcd   : > { %v8366_v27 = vld [vmem:[#allocation5 + $0xee0] sm:$0xf]  ;;  %v9638_v28 = vld [vmem:[#allocation5 + $0xeec] sm:$0xf0]  ;;  %v7743_v35 = vor.u32 %v9482_v26, %v7742_v25  ;;  %3767 = vmatpush.bf16.msra.mxu1 %v7631_v30 }
  0xce   : > { %v7486_v31 = vld [vmem:[#allocation5 + $0x800] sm:$0xf]  ;;  %v9418_v32 = vld [vmem:[#allocation5 + $0x80c] sm:$0xf0]  ;;  %v8367_v39 = vor.u32 %v9638_v28, %v8366_v27  ;;  %3805 = vmatpush.bf16.msra.mxu3 %v7887_v34 }
  0xcf   : > { %v7614_v33 = vld [vmem:[#allocation5 + $0x900] sm:$0xf]  ;;  %v9450_v36 = vld [vmem:[#allocation5 + $0x90c] sm:$0xf0]  ;;  %v7487_v47 = vor.u32 %v9418_v32, %v7486_v31  ;;  %3787 = vmatpush.bf16.msra.mxu2 %v7743_v35 }
  0xd0   : > { %v7870_v37 = vld [vmem:[#allocation5 + $0xb00] sm:$0xf]  ;;  %v9514_v38 = vld [vmem:[#allocation5 + $0xb0c] sm:$0xf0]  ;;  %v7615_v49 = vor.u32 %v9450_v36, %v7614_v33 }
  0xd1   : > { %v8110_v40 = vld [vmem:[#allocation5 + $0xce0] sm:$0xf]  ;;  %v9574_v41 = vld [vmem:[#allocation5 + $0xcec] sm:$0xf0]  ;;  %v7871_v58 = vor.u32 %v9514_v38, %v7870_v37  ;;  %3749 = vmatpush.bf16.msra.mxu0 %v7487_v47 }
  0xd2   : > { %v8238_v42 = vld [vmem:[#allocation5 + $0xde0] sm:$0xf]  ;;  %v9606_v43 = vld [vmem:[#allocation5 + $0xdec] sm:$0xf0]  ;;  %v8111_v62 = vor.u32 %v9574_v41, %v8110_v40  ;;  %3768 = vmatpush.bf16.msra.mxu1 %v7615_v49 }
  0xd3   : > { %v8494_v45 = vld [vmem:[#allocation5 + $0xfe0] sm:$0xf]  ;;  %v9670_v46 = vld [vmem:[#allocation5 + $0xfec] sm:$0xf0]  ;;  %3856 = vmatpush.bf16.msrb.mxu2 %v8367_v39  ;;  %v8239_v2 = vor.u32 %v9606_v43, %v8238_v42  ;;  %3806 = vmatpush.bf16.msra.mxu3 %v7871_v58 }
  0xd4   : > { %v8350_v52 = vld [vmem:[#allocation5 + $0xec0] sm:$0xf]  ;;  %v9634_v55 = vld [vmem:[#allocation5 + $0xecc] sm:$0xf0]  ;;  %v8495_v3 = vor.u32 %v9670_v46, %v8494_v45 }
  0xd5   : > { %v420_v59 = vld [vmem:[%s10468_s16 + $0x40] sm:$0xff]  ;;  %v9570_v7 = vld [vmem:[#allocation5 + $0xccc] sm:$0xf0]  ;;  %v8351_v15 = vor.u32 %v9634_v55, %v8350_v52  ;;  %3818 = vmatpush.bf16.msrb.mxu0 %v8111_v62  ;;  %3769 = vmatmul.bf16.vlgmr.msra.gmra.mxu1 %v10576_v24 }
  0xd6   : > { %v436_v60 = vld [vmem:[%s10468_s16 + $0xc0] sm:$0xff]  ;;  %v422_v10 = vld [vmem:[%s10468_s16 + $0x50] sm:$0xff]  ;;  %3837 = vmatpush.bf16.msrb.mxu1 %v8239_v2  ;;  %3807 = vmatmul.bf16.vlgmr.msra.gmra.mxu3 %v10580_v29 }
  0xd7   : > { %v8094_v4 = vld [vmem:[#allocation5 + $0xcc0] sm:$0xf]  ;;  %v438_v11 = vld [vmem:[%s10468_s16 + $0xd0] sm:$0xff]  ;;  %v10574_v23 = vpack.c.bf16 %v436_v60, %v420_v59  ;;  %3875 = vmatpush.bf16.msrb.mxu3 %v8495_v3  ;;  %3857 = vmatpush.bf16.msrb.mxu2 %v8351_v15 }
  0xd8   : > { %v8222_v17 = vld [vmem:[#allocation5 + $0xdc0] sm:$0xf]  ;;  %v9602_v18 = vld [vmem:[#allocation5 + $0xdcc] sm:$0xf0]  ;;  %v8095_v19 = vor.u32 %v9570_v7, %v8094_v4  ;;  %v10578_v28 = vpack.c.bf16 %v438_v11, %v422_v10  ;;  %v453_v10 = vld [vmem:[%s10468_s16 + $0x148] sm:$0xff] }
  0xd9   : > { %v8478_v20 = vld [vmem:[#allocation5 + $0xfc0] sm:$0xf]  ;;  %v9666_v21 = vld [vmem:[#allocation5 + $0xfcc] sm:$0xf0]  ;;  %v8223_v30 = vor.u32 %v9602_v18, %v8222_v17  ;;  %3750 = vmatmul.bf16.vlgmr.msra.gmra.mxu0 %v10574_v23  ;;  %v469_v11 = vld [vmem:[%s10468_s16 + $0x1c8] sm:$0xff] }
  0xda   : > { %v8334_v22 = vld [vmem:[#allocation5 + $0xea0] sm:$0xf]  ;;  %v9630_v25 = vld [vmem:[#allocation5 + $0xeac] sm:$0xf0]  ;;  %v8479_v31 = vor.u32 %v9666_v21, %v8478_v20  ;;  %3819 = vmatpush.bf16.msrb.mxu0 %v8095_v19  ;;  %3788 = vmatmul.bf16.vlgmr.msra.gmra.mxu2 %v10578_v28 }
  0xdb   : > { %v8078_v26 = vld [vmem:[#allocation5 + $0xca0] sm:$0xf]  ;;  %v9566_v27 = vld [vmem:[#allocation5 + $0xcac] sm:$0xf0]  ;;  %v8335_v34 = vor.u32 %v9630_v25, %v8334_v22  ;;  %3838 = vmatpush.bf16.msrb.mxu1 %v8223_v30 }
  0xdc   : > { %v8206_v32 = vld [vmem:[#allocation5 + $0xda0] sm:$0xf]  ;;  %v9598_v33 = vld [vmem:[#allocation5 + $0xdac] sm:$0xf0]  ;;  %v8079_v35 = vor.u32 %v9566_v27, %v8078_v26  ;;  %3876 = vmatpush.bf16.msrb.mxu3 %v8479_v31  ;;  %v455_v26 = vld [vmem:[%s10468_s16 + $0x158] sm:$0xff] }
  0xdd   : > { %v8462_v36 = vld [vmem:[#allocation5 + $0xfa0] sm:$0xf]  ;;  %v9662_v37 = vld [vmem:[#allocation5 + $0xfac] sm:$0xf0]  ;;  %v8207_v42 = vor.u32 %v9598_v33, %v8206_v32  ;;  %3858 = vmatpush.bf16.msrb.mxu2 %v8335_v34  ;;  %v471_v27 = vld [vmem:[%s10468_s16 + $0x1d8] sm:$0xff] }
  0xde   : > { %v8318_v38 = vld [vmem:[#allocation5 + $0xe80] sm:$0xf]  ;;  %v9626_v39 = vld [vmem:[#allocation5 + $0xe8c] sm:$0xf0]  ;;  %v8463_v43 = vor.u32 %v9662_v37, %v8462_v36  ;;  %3820 = vmatpush.bf16.msrb.mxu0 %v8079_v35 }
  0xdf   : > { %v8062_v40 = vld [vmem:[#allocation5 + $0xc80] sm:$0xf]  ;;  %v9562_v41 = vld [vmem:[#allocation5 + $0xc8c] sm:$0xf0]  ;;  %v8319_v47 = vor.u32 %v9626_v39, %v8318_v38  ;;  %3839 = vmatpush.bf16.msrb.mxu1 %v8207_v42 }
  0xe0   : > { %v8190_v45 = vld [vmem:[#allocation5 + $0xd80] sm:$0xf]  ;;  %v9594_v46 = vld [vmem:[#allocation5 + $0xd8c] sm:$0xf0]  ;;  %v8063_v49 = vor.u32 %v9562_v41, %v8062_v40  ;;  %3877 = vmatpush.bf16.msrb.mxu3 %v8463_v43  ;;  %v10596_v40 = vpack.c.bf16 %v469_v11, %v453_v10  ;;  %v9188_v10 = vld [vmem:[#allocation5 + $0xe4] sm:$0xf] }
  0xe1   : > { %v8446_v52 = vld [vmem:[#allocation5 + $0xf80] sm:$0xf]  ;;  %v9658_v55 = vld [vmem:[#allocation5 + $0xf8c] sm:$0xf0]  ;;  %v8191_v62 = vor.u32 %v9594_v46, %v8190_v45  ;;  %3859 = vmatpush.bf16.msrb.mxu2 %v8319_v47  ;;  %v10600_v46 = vpack.c.bf16 %v471_v27, %v455_v26  ;;  %v6576_v11 = vld [vmem:[#allocation5 + $0xf0] sm:$0xf0] }
  0xe2   : > { %v8302_v58 = vld [vmem:[#allocation5 + $0xe60] sm:$0xf]  ;;  %v9622_v59 = vld [vmem:[#allocation5 + $0xe6c] sm:$0xf0]  ;;  %v8447_v63 = vor.u32 %v9658_v55, %v8446_v52  ;;  %3821 = vmatpush.bf16.msrb.mxu0 %v8063_v49  ;;  %v6579_v27 = vor.u32 %v9188_v10, %v6576_v11 }
  0xe3   : > { %v8046_v60 = vld [vmem:[#allocation5 + $0xc60] sm:$0xf]  ;;  %v9558_v61 = vld [vmem:[#allocation5 + $0xc6c] sm:$0xf0]  ;;  %v8303_v12 = vor.u32 %v9622_v59, %v8302_v58  ;;  %3840 = vmatpush.bf16.msrb.mxu1 %v8191_v62 }
  0xe4   : > { %v8174_v2 = vld [vmem:[#allocation5 + $0xd60] sm:$0xf]  ;;  %v9590_v3 = vld [vmem:[#allocation5 + $0xd6c] sm:$0xf0]  ;;  %v8047_v15 = vor.u32 %v9558_v61, %v8046_v60  ;;  %3878 = vmatpush.bf16.msrb.mxu3 %v8447_v63 }
  0xe5   : > { %v452_v4 = vld [vmem:[%s10468_s16 + $0x140] sm:$0xff]  ;;  %v9654_v17 = vld [vmem:[#allocation5 + $0xf6c] sm:$0xf0]  ;;  %v8175_v30 = vor.u32 %v9590_v3, %v8174_v2  ;;  %3860 = vmatpush.bf16.msrb.mxu2 %v8303_v12  ;;  %3774 = vmatmul.bf16.gmra.mxu1 %v10596_v40 }
  0xe6   : > { %v468_v7 = vld [vmem:[%s10468_s16 + $0x1c0] sm:$0xff]  ;;  %v9618_v19 = vld [vmem:[#allocation5 + $0xe4c] sm:$0xf0]  ;;  %3822 = vmatpush.bf16.msrb.mxu0 %v8047_v15  ;;  %3812 = vmatmul.bf16.gmra.mxu3 %v10600_v46 }
  0xe7   : > { %v8430_v16 = vld [vmem:[#allocation5 + $0xf60] sm:$0xf]  ;;  %v9554_v21 = vld [vmem:[#allocation5 + $0xc4c] sm:$0xf0]  ;;  %v10594_v39 = vpack.c.bf16 %v468_v7, %v452_v4  ;;  %3841 = vmatpush.bf16.msrb.mxu1 %v8175_v30  ;;  %v9252_v4 = vld [vmem:[#allocation5 + $0x2e4] sm:$0xf] }
  0xe8   : > { %v8286_v18 = vld [vmem:[#allocation5 + $0xe40] sm:$0xf]  ;;  %v454_v22 = vld [vmem:[%s10468_s16 + $0x150] sm:$0xff]  ;;  %v8431_v31 = vor.u32 %v9654_v17, %v8430_v16  ;;  %v9284_v30 = vld [vmem:[#allocation5 + $0x3e4] sm:$0xf] }
  0xe9   : > { %v8030_v20 = vld [vmem:[#allocation5 + $0xc40] sm:$0xf]  ;;  %v470_v25 = vld [vmem:[%s10468_s16 + $0x1d0] sm:$0xff]  ;;  %v8287_v34 = vor.u32 %v9618_v19, %v8286_v18  ;;  %3755 = vmatmul.bf16.gmra.mxu0 %v10594_v39 }
  0xea   : > { %v8158_v32 = vld [vmem:[#allocation5 + $0xd40] sm:$0xf]  ;;  %v9586_v33 = vld [vmem:[#allocation5 + $0xd4c] sm:$0xf0]  ;;  %v8031_v35 = vor.u32 %v9554_v21, %v8030_v20  ;;  %v10598_v45 = vpack.c.bf16 %v470_v25, %v454_v22  ;;  %3879 = vmatpush.bf16.msrb.mxu3 %v8431_v31  ;;  %v6832_v7 = vld [vmem:[#allocation5 + $0x2f0] sm:$0xf0] }
  0xeb   : > { %v8414_v36 = vld [vmem:[#allocation5 + $0xf40] sm:$0xf]  ;;  %v9650_v37 = vld [vmem:[#allocation5 + $0xf4c] sm:$0xf0]  ;;  %v8159_v47 = vor.u32 %v9586_v33, %v8158_v32  ;;  %3861 = vmatpush.bf16.msrb.mxu2 %v8287_v34  ;;  %v9220_v22 = vld [vmem:[#allocation5 + $0x1e4] sm:$0xf]  ;;  %v6835_v26 = vor.u32 %v9252_v4, %v6832_v7 }
  0xec   : > { %v8270_v38 = vld [vmem:[#allocation5 + $0xe20] sm:$0xf]  ;;  %v9614_v41 = vld [vmem:[#allocation5 + $0xe2c] sm:$0xf0]  ;;  %v8415_v49 = vor.u32 %v9650_v37, %v8414_v36  ;;  %3823 = vmatpush.bf16.msrb.mxu0 %v8031_v35  ;;  %3793 = vmatmul.bf16.gmra.mxu2 %v10598_v45  ;;  %v6704_v25 = vld [vmem:[#allocation5 + $0x1f0] sm:$0xf0] }
  0xed   : > { %v8014_v42 = vld [vmem:[#allocation5 + $0xc20] sm:$0xf]  ;;  %v9550_v43 = vld [vmem:[#allocation5 + $0xc2c] sm:$0xf0]  ;;  %v8271_v59 = vor.u32 %v9614_v41, %v8270_v38  ;;  %3842 = vmatpush.bf16.msrb.mxu1 %v8159_v47  ;;  %v6960_v31 = vld [vmem:[#allocation5 + $0x3f0] sm:$0xf0]  ;;  %v6707_v47 = vor.u32 %v9220_v22, %v6704_v25 }
  0xee   : > { %v8142_v52 = vld [vmem:[#allocation5 + $0xd20] sm:$0xf]  ;;  %v9582_v55 = vld [vmem:[#allocation5 + $0xd2c] sm:$0xf0]  ;;  %v8015_v60 = vor.u32 %v9550_v43, %v8014_v42  ;;  %3880 = vmatpush.bf16.msrb.mxu3 %v8415_v49  ;;  %v9248_v32 = vld [vmem:[#allocation5 + $0x2c4] sm:$0xf]  ;;  %v6963_v49 = vor.u32 %v9284_v30, %v6960_v31 }
  0xef   : > { %v8398_v58 = vld [vmem:[#allocation5 + $0xf20] sm:$0xf]  ;;  %v9646_v61 = vld [vmem:[#allocation5 + $0xf2c] sm:$0xf0]  ;;  %v8143_v12 = vor.u32 %v9582_v55, %v8142_v52  ;;  %3862 = vmatpush.bf16.msrb.mxu2 %v8271_v59  ;;  %v6816_v33 = vld [vmem:[#allocation5 + $0x2d0] sm:$0xf0] }
  0xf0   : > { %v8254_v62 = vld [vmem:[#allocation5 + $0xe00] sm:$0xf]  ;;  %v9610_v63 = vld [vmem:[#allocation5 + $0xe0c] sm:$0xf0]  ;;  %v8399_v15 = vor.u32 %v9646_v61, %v8398_v58  ;;  %3824 = vmatpush.bf16.msrb.mxu0 %v8015_v60  ;;  %v9184_v34 = vld [vmem:[#allocation5 + $0xc4] sm:$0xf]  ;;  %v6819_v55 = vor.u32 %v9248_v32, %v6816_v33 }
  0xf1   : > { %v7998_v2 = vld [vmem:[#allocation5 + $0xc00] sm:$0xf]  ;;  %v9546_v3 = vld [vmem:[#allocation5 + $0xc0c] sm:$0xf0]  ;;  %v8255_v19 = vor.u32 %v9610_v63, %v8254_v62  ;;  %v6560_v35 = vld [vmem:[#allocation5 + $0xd0] sm:$0xf0]  ;;  %3843 = vmatpush.bf16.msrb.mxu1 %v8143_v12 }
  0xf2   : > { %v8126_v16 = vld [vmem:[#allocation5 + $0xd00] sm:$0xf]  ;;  %v9578_v17 = vld [vmem:[#allocation5 + $0xd0c] sm:$0xf0]  ;;  %v7999_v20 = vor.u32 %v9546_v3, %v7998_v2  ;;  %3881 = vmatpush.bf16.msrb.mxu3 %v8399_v15  ;;  %v425_v42 = vld [vmem:[%s10468_s16 + $0x68] sm:$0xff]  ;;  %v6563_v58 = vor.u32 %v9184_v34, %v6560_v35 }
  0xf3   : > { %v8382_v18 = vld [vmem:[#allocation5 + $0xf00] sm:$0xf]  ;;  %v9642_v21 = vld [vmem:[#allocation5 + $0xf0c] sm:$0xf0]  ;;  %v8127_v36 = vor.u32 %v9578_v17, %v8126_v16  ;;  %3863 = vmatpush.bf16.msrb.mxu2 %v8255_v19  ;;  %v441_v43 = vld [vmem:[%s10468_s16 + $0xe8] sm:$0xff] }
  0xf4   : > { %v8383_v37 = vor.u32 %v9642_v21, %v8382_v18  ;;  %3825 = vmatpush.bf16.msrb.mxu0 %v7999_v20  ;;  %v424_v38 = vld [vmem:[%s10468_s16 + $0x60] sm:$0xff]  ;;  %v6688_v59 = vld [vmem:[#allocation5 + $0x1d0] sm:$0xf0]  ;;  %v427_v2 = vld [vmem:[%s10468_s16 + $0x78] sm:$0xff]  ;;  %v10616_v18 = vpack.c.bf16 %v441_v43, %v425_v42 }
  0xf5   : > { %v440_v41 = vld [vmem:[%s10468_s16 + $0xe0] sm:$0xff]  ;;  %v6944_v61 = vld [vmem:[#allocation5 + $0x3d0] sm:$0xf0]  ;;  %3844 = vmatpush.bf16.msrb.mxu1 %v8127_v36  ;;  %v443_v3 = vld [vmem:[%s10468_s16 + $0xf8] sm:$0xff] }
  0xf6   : > { %v9216_v52 = vld [vmem:[#allocation5 + $0x1c4] sm:$0xf]  ;;  %v426_v62 = vld [vmem:[%s10468_s16 + $0x70] sm:$0xff]  ;;  %3882 = vmatpush.bf16.msrb.mxu3 %v8383_v37  ;;  %v10614_v17 = vpack.c.bf16 %v440_v41, %v424_v38  ;;  %v10620_v25 = vpack.c.bf16 %v443_v3, %v427_v2 }
  0xf7   : > { %3932 = vmatpush.bf16.msra.mxu2 %v6835_v26  ;;  %v9280_v60 = vld [vmem:[#allocation5 + $0x3c4] sm:$0xf]  ;;  %v442_v63 = vld [vmem:[%s10468_s16 + $0xf0] sm:$0xff]  ;;  %v6691_v10 = vor.u32 %v9216_v52, %v6688_v59 }
  0xf8   : > { %3894 = vmatpush.bf16.msra.mxu0 %v6579_v27  ;;  %v9244_v4 = vld [vmem:[#allocation5 + $0x2a4] sm:$0xf]  ;;  %v6800_v7 = vld [vmem:[#allocation5 + $0x2b0] sm:$0xf0]  ;;  %v6947_v11 = vor.u32 %v9280_v60, %v6944_v61  ;;  %v10618_v22 = vpack.c.bf16 %v442_v63, %v426_v62  ;;  %3845 = vmatmul.bf16.vlgmr.msrb.gmra.mxu1 %v10616_v18 }
  0xf9   : > { %3913 = vmatpush.bf16.msra.mxu1 %v6707_v47  ;;  %v9180_v12 = vld [vmem:[#allocation5 + $0xa4] sm:$0xf]  ;;  %v6544_v15 = vld [vmem:[#allocation5 + $0xb0] sm:$0xf0]  ;;  %v6803_v26 = vor.u32 %v9244_v4, %v6800_v7  ;;  %3826 = vmatmul.bf16.vlgmr.msrb.gmra.mxu0 %v10614_v17 }
  0xfa   : > { %3951 = vmatpush.bf16.msra.mxu3 %v6963_v49  ;;  %v9212_v16 = vld [vmem:[#allocation5 + $0x1a4] sm:$0xf]  ;;  %v6672_v19 = vld [vmem:[#allocation5 + $0x1b0] sm:$0xf0]  ;;  %v6547_v27 = vor.u32 %v9180_v12, %v6544_v15  ;;  %v457_v12 = vld [vmem:[%s10468_s16 + $0x168] sm:$0xff] }
  0xfb   : > { %3933 = vmatpush.bf16.msra.mxu2 %v6819_v55  ;;  %v9276_v20 = vld [vmem:[#allocation5 + $0x3a4] sm:$0xf]  ;;  %v6928_v21 = vld [vmem:[#allocation5 + $0x3b0] sm:$0xf0]  ;;  %v6675_v32 = vor.u32 %v9212_v16, %v6672_v19  ;;  %3883 = vmatmul.bf16.vlgmr.msrb.gmra.mxu3 %v10620_v25  ;;  %v473_v15 = vld [vmem:[%s10468_s16 + $0x1e8] sm:$0xff] }
  0xfc   : > { %3895 = vmatpush.bf16.msra.mxu0 %v6563_v58  ;;  %v9240_v30 = vld [vmem:[#allocation5 + $0x284] sm:$0xf]  ;;  %v6784_v31 = vld [vmem:[#allocation5 + $0x290] sm:$0xf0]  ;;  %v6931_v33 = vor.u32 %v9276_v20, %v6928_v21  ;;  %3864 = vmatmul.bf16.vlgmr.msrb.gmra.mxu2 %v10618_v22 }
  0xfd   : > { %3914 = vmatpush.bf16.msra.mxu1 %v6691_v10  ;;  %v9176_v34 = vld [vmem:[#allocation5 + $0x84] sm:$0xf]  ;;  %v6528_v35 = vld [vmem:[#allocation5 + $0x90] sm:$0xf0]  ;;  %v6787_v42 = vor.u32 %v9240_v30, %v6784_v31 }
  0xfe   : > { %3952 = vmatpush.bf16.msra.mxu3 %v6947_v11  ;;  %v9208_v36 = vld [vmem:[#allocation5 + $0x184] sm:$0xf]  ;;  %v6656_v37 = vld [vmem:[#allocation5 + $0x190] sm:$0xf0]  ;;  %v6531_v43 = vor.u32 %v9176_v34, %v6528_v35  ;;  %v459_v34 = vld [vmem:[%s10468_s16 + $0x178] sm:$0xff] }
  0xff   : > { %v9272_v38 = vld [vmem:[#allocation5 + $0x384] sm:$0xf]  ;;  %v6912_v41 = vld [vmem:[#allocation5 + $0x390] sm:$0xf0]  ;;  %3934 = vmatpush.bf16.msra.mxu2 %v6803_v26  ;;  %v6659_v52 = vor.u32 %v9208_v36, %v6656_v37  ;;  %v475_v35 = vld [vmem:[%s10468_s16 + $0x1f8] sm:$0xff] }
 0x100   : > { %3896 = vmatpush.bf16.msra.mxu0 %v6547_v27  ;;  %v9236_v47 = vld [vmem:[#allocation5 + $0x264] sm:$0xf]  ;;  %v6768_v49 = vld [vmem:[#allocation5 + $0x270] sm:$0xf0]  ;;  %v6915_v55 = vor.u32 %v9272_v38, %v6912_v41 }
 0x101   : > { %3915 = vmatpush.bf16.msra.mxu1 %v6675_v32  ;;  %v9172_v58 = vld [vmem:[#allocation5 + $0x64] sm:$0xf]  ;;  %v6512_v59 = vld [vmem:[#allocation5 + $0x70] sm:$0xf0]  ;;  %v6771_v2 = vor.u32 %v9236_v47, %v6768_v49 }
 0x102   : > { %3953 = vmatpush.bf16.msra.mxu3 %v6931_v33  ;;  %v9204_v60 = vld [vmem:[#allocation5 + $0x164] sm:$0xf]  ;;  %v6640_v61 = vld [vmem:[#allocation5 + $0x170] sm:$0xf0]  ;;  %v6515_v3 = vor.u32 %v9172_v58, %v6512_v59  ;;  %v10636_v58 = vpack.c.bf16 %v473_v15, %v457_v12 }
 0x103   : > { %v9268_v62 = vld [vmem:[#allocation5 + $0x364] sm:$0xf]  ;;  %v6896_v63 = vld [vmem:[#allocation5 + $0x370] sm:$0xf0]  ;;  %3935 = vmatpush.bf16.msra.mxu2 %v6787_v42  ;;  %v6643_v16 = vor.u32 %v9204_v60, %v6640_v61 }
 0x104   : > { %3897 = vmatpush.bf16.msra.mxu0 %v6531_v43  ;;  %v9232_v4 = vld [vmem:[#allocation5 + $0x244] sm:$0xf]  ;;  %v6752_v7 = vld [vmem:[#allocation5 + $0x250] sm:$0xf0]  ;;  %v6899_v19 = vor.u32 %v9268_v62, %v6896_v63  ;;  %v10640_v63 = vpack.c.bf16 %v475_v35, %v459_v34 }
 0x105   : > { %3916 = vmatpush.bf16.msra.mxu1 %v6659_v52  ;;  %v456_v10 = vld [vmem:[%s10468_s16 + $0x160] sm:$0xff]  ;;  %v6496_v21 = vld [vmem:[#allocation5 + $0x50] sm:$0xf0]  ;;  %v6755_v36 = vor.u32 %v9232_v4, %v6752_v7 }
 0x106   : > { %3954 = vmatpush.bf16.msra.mxu3 %v6915_v55  ;;  %v472_v11 = vld [vmem:[%s10468_s16 + $0x1e0] sm:$0xff]  ;;  %v6624_v27 = vld [vmem:[#allocation5 + $0x150] sm:$0xf0]  ;;  %11218 = vst [vmem:[#allocation28_spill] sm:$0xff] %v10640_v63 }
 0x107   : > { %v9168_v20 = vld [vmem:[#allocation5 + $0x44] sm:$0xf]  ;;  %v6880_v31 = vld [vmem:[#allocation5 + $0x350] sm:$0xf0]  ;;  %3936 = vmatpush.bf16.msra.mxu2 %v6771_v2  ;;  %v10634_v55 = vpack.c.bf16 %v472_v11, %v456_v10 }
 0x108   : > { %v9200_v26 = vld [vmem:[#allocation5 + $0x144] sm:$0xf]  ;;  %v458_v32 = vld [vmem:[%s10468_s16 + $0x170] sm:$0xff]  ;;  %3898 = vmatpush.bf16.msra.mxu0 %v6515_v3  ;;  %v6499_v37 = vor.u32 %v9168_v20, %v6496_v21  ;;  %3850 = vmatmul.bf16.gmra.mxu1 %v10636_v58 }
 0x109   : > { %v9264_v30 = vld [vmem:[#allocation5 + $0x344] sm:$0xf]  ;;  %v474_v33 = vld [vmem:[%s10468_s16 + $0x1f0] sm:$0xff]  ;;  %3917 = vmatpush.bf16.msra.mxu1 %v6643_v16  ;;  %v6627_v42 = vor.u32 %v9200_v26, %v6624_v27  ;;  %3831 = vmatmul.bf16.gmra.mxu0 %v10634_v55 }
 0x10a   : > { %v9228_v38 = vld [vmem:[#allocation5 + $0x224] sm:$0xf]  ;;  %v6736_v41 = vld [vmem:[#allocation5 + $0x230] sm:$0xf0]  ;;  %3955 = vmatpush.bf16.msra.mxu3 %v6899_v19  ;;  %v6883_v43 = vor.u32 %v9264_v30, %v6880_v31  ;;  %v10638_v62 = vpack.c.bf16 %v474_v33, %v458_v32 }
 0x10b   : > { %v9164_v47 = vld [vmem:[#allocation5 + $0x24] sm:$0xf]  ;;  %v6480_v49 = vld [vmem:[#allocation5 + $0x30] sm:$0xf0]  ;;  %3937 = vmatpush.bf16.msra.mxu2 %v6755_v36  ;;  %v6739_v3 = vor.u32 %v9228_v38, %v6736_v41  ;;  %3888 = vmatmul.bf16.gmra.mxu3 %v10640_v63 }
 0x10c   : > { %v9196_v52 = vld [vmem:[#allocation5 + $0x124] sm:$0xf]  ;;  %v6608_v59 = vld [vmem:[#allocation5 + $0x130] sm:$0xf0]  ;;  %3899 = vmatpush.bf16.msra.mxu0 %v6499_v37  ;;  %v6483_v4 = vor.u32 %v9164_v47, %v6480_v49  ;;  %3869 = vmatmul.bf16.gmra.mxu2 %v10638_v62 }
 0x10d   : > { %v9260_v60 = vld [vmem:[#allocation5 + $0x324] sm:$0xf]  ;;  %v6864_v61 = vld [vmem:[#allocation5 + $0x330] sm:$0xf0]  ;;  %3918 = vmatpush.bf16.msra.mxu1 %v6627_v42  ;;  %v6611_v10 = vor.u32 %v9196_v52, %v6608_v59  ;;  %v1020_v42 = vld [vmem:[#allocation7] sm:$0xf] }
 0x10e   : > { %v9224_v2 = vld [vmem:[#allocation5 + $0x204] sm:$0xf]  ;;  %v6720_v7 = vld [vmem:[#allocation5 + $0x210] sm:$0xf0]  ;;  %3956 = vmatpush.bf16.msra.mxu3 %v6883_v43  ;;  %v6867_v11 = vor.u32 %v9260_v60, %v6864_v61 }
 0x10f   : > { %v9160_v16 = vld [vmem:[#allocation5 + $0x4] sm:$0xf]  ;;  %v6464_v19 = vld [vmem:[#allocation5 + $0x10] sm:$0xf0]  ;;  %3938 = vmatpush.bf16.msra.mxu2 %v6739_v3  ;;  %v6723_v33 = vor.u32 %v9224_v2, %v6720_v7 }
 0x110   : > { %v9192_v12 = vld [vmem:[#allocation5 + $0x104] sm:$0xf]  ;;  %v6592_v15 = vld [vmem:[#allocation5 + $0x110] sm:$0xf0]  ;;  %3900 = vmatpush.bf16.msra.mxu0 %v6483_v4  ;;  %v6467_v34 = vor.u32 %v9160_v16, %v6464_v19 }
 0x111   : > { %v9256_v20 = vld [vmem:[#allocation5 + $0x304] sm:$0xf]  ;;  %v6848_v21 = vld [vmem:[#allocation5 + $0x310] sm:$0xf0]  ;;  %3919 = vmatpush.bf16.msra.mxu1 %v6611_v10  ;;  %v6595_v38 = vor.u32 %v9192_v12, %v6592_v15  ;;  %v10646_v10 = vperm.slane %v1020_v42, 0 }
 0x112   : > { %v9380_v26 = vld [vmem:[#allocation5 + $0x6e4] sm:$0xf]  ;;  %v7344_v27 = vld [vmem:[#allocation5 + $0x6f0] sm:$0xf0]  ;;  %3957 = vmatpush.bf16.msra.mxu3 %v6867_v11  ;;  %v6851_v41 = vor.u32 %v9256_v20, %v6848_v21 }
 0x113   : > { %v9316_v30 = vld [vmem:[#allocation5 + $0x4e4] sm:$0xf]  ;;  %v7088_v31 = vld [vmem:[#allocation5 + $0x4f0] sm:$0xf0]  ;;  %v7347_v43 = vor.u32 %v9380_v26, %v7344_v27  ;;  %3939 = vmatpush.bf16.msra.mxu2 %v6723_v33 }
 0x114   : > { %v9348_v32 = vld [vmem:[#allocation5 + $0x5e4] sm:$0xf]  ;;  %v7216_v35 = vld [vmem:[#allocation5 + $0x5f0] sm:$0xf0]  ;;  %v7091_v47 = vor.u32 %v9316_v30, %v7088_v31  ;;  %3901 = vmatpush.bf16.msra.mxu0 %v6467_v34  ;;  %v3599_v30 = vpop.f32.mrf.mxu0 }
 0x115   : > { %v9412_v36 = vld [vmem:[#allocation5 + $0x7e4] sm:$0xf]  ;;  %v7472_v37 = vld [vmem:[#allocation5 + $0x7f0] sm:$0xf0]  ;;  %v7219_v59 = vor.u32 %v9348_v32, %v7216_v35  ;;  %3920 = vmatpush.bf16.msra.mxu1 %v6595_v38  ;;  %v3600_v34 = vadd.f32 %v3599_v30, %v10646_v10 }
 0x116   : > { %v9376_v49 = vld [vmem:[#allocation5 + $0x6c4] sm:$0xf]  ;;  %v7328_v52 = vld [vmem:[#allocation5 + $0x6d0] sm:$0xf0]  ;;  %v7475_v60 = vor.u32 %v9412_v36, %v7472_v37  ;;  %3958 = vmatpush.bf16.msra.mxu3 %v6851_v41 }
 0x117   : > { %v9312_v61 = vld [vmem:[#allocation5 + $0x4c4] sm:$0xf]  ;;  %v7072_v63 = vld [vmem:[#allocation5 + $0x4d0] sm:$0xf0]  ;;  %4008 = vmatpush.bf16.msrb.mxu2 %v7347_v43  ;;  %v7331_v16 = vor.u32 %v9376_v49, %v7328_v52 }
 0x118   : > { %v9344_v3 = vld [vmem:[#allocation5 + $0x5c4] sm:$0xf]  ;;  %v7200_v2 = vld [vmem:[#allocation5 + $0x5d0] sm:$0xf0]  ;;  %3970 = vmatpush.bf16.msrb.mxu0 %v7091_v47  ;;  %v7075_v19 = vor.u32 %v9312_v61, %v7072_v63  ;;  %v3618_v63 = vpop.f32.mrf.mxu1  ;;  %3921 = vmatmul.bf16.vlgmr.msra.gmra.mxu1 %v10496_v53 }
 0x119   : > { %v9408_v4 = vld [vmem:[#allocation5 + $0x7c4] sm:$0xf]  ;;  %v7456_v7 = vld [vmem:[#allocation5 + $0x7d0] sm:$0xf0]  ;;  %3989 = vmatpush.bf16.msrb.mxu1 %v7219_v59  ;;  %v7203_v11 = vor.u32 %v9344_v3, %v7200_v2  ;;  %v3619_v41 = vadd.f32 %v3618_v63, %v3600_v34  ;;  %3902 = vmatmul.bf16.vlgmr.msra.gmra.mxu0 %v10494_v48 }
 0x11a   : > { %4027 = vmatpush.bf16.msrb.mxu3 %v7475_v60  ;;  %v7459_v12 = vor.u32 %v9408_v4, %v7456_v7  ;;  %v9372_v15 = vld [vmem:[#allocation5 + $0x6a4] sm:$0xf]  ;;  %v7312_v20 = vld [vmem:[#allocation5 + $0x6b0] sm:$0xf0] }
 0x11b   : > { %v9308_v21 = vld [vmem:[#allocation5 + $0x4a4] sm:$0xf]  ;;  %v7056_v26 = vld [vmem:[#allocation5 + $0x4b0] sm:$0xf0]  ;;  %4009 = vmatpush.bf16.msrb.mxu2 %v7331_v16  ;;  %v7315_v35 = vor.u32 %v9372_v15, %v7312_v20  ;;  %3959 = vmatmul.bf16.vlgmr.msra.gmra.mxu3 %v10500_v57  ;;  %v3637_v16 = vpop.f32.mrf.mxu2 }
 0x11c   : > { %v9340_v27 = vld [vmem:[#allocation5 + $0x5a4] sm:$0xf]  ;;  %3971 = vmatpush.bf16.msrb.mxu0 %v7075_v19  ;;  %v7184_v31 = vld [vmem:[#allocation5 + $0x5b0] sm:$0xf0]  ;;  %v7059_v36 = vor.u32 %v9308_v21, %v7056_v26  ;;  %3940 = vmatmul.bf16.vlgmr.msra.gmra.mxu2 %v10498_v54  ;;  %v3638_v21 = vadd.f32 %v3637_v16, %v3619_v41  ;;  %v3656_v26 = vpop.f32.mrf.mxu3 }
 0x11d   : > { %v9404_v32 = vld [vmem:[#allocation5 + $0x7a4] sm:$0xf]  ;;  %v7440_v33 = vld [vmem:[#allocation5 + $0x7b0] sm:$0xf0]  ;;  %3990 = vmatpush.bf16.msrb.mxu1 %v7203_v11  ;;  %v7187_v42 = vor.u32 %v9340_v27, %v7184_v31  ;;  %v3601_v27 = vpop.f32.mrf.mxu0 }
 0x11e   : > { %4028 = vmatpush.bf16.msrb.mxu3 %v7459_v12  ;;  %v9368_v37 = vld [vmem:[#allocation5 + $0x684] sm:$0xf]  ;;  %v7296_v38 = vld [vmem:[#allocation5 + $0x690] sm:$0xf0]  ;;  %v7443_v43 = vor.u32 %v9404_v32, %v7440_v33  ;;  %v3602_v33 = vadd.f32 %v3601_v27, %v10646_v10  ;;  %v10654_v63 = vadd.f32 %v3656_v26, %v3638_v21 }
 0x11f   : > { %v9304_v47 = vld [vmem:[#allocation5 + $0x484] sm:$0xf]  ;;  %v7040_v49 = vld [vmem:[#allocation5 + $0x490] sm:$0xf0]  ;;  %4010 = vmatpush.bf16.msrb.mxu2 %v7315_v35  ;;  %v7299_v3 = vor.u32 %v9368_v37, %v7296_v38 }
 0x120   : > { %v9336_v52 = vld [vmem:[#allocation5 + $0x584] sm:$0xf]  ;;  %v7168_v59 = vld [vmem:[#allocation5 + $0x590] sm:$0xf0]  ;;  %3972 = vmatpush.bf16.msrb.mxu0 %v7059_v36  ;;  %v7043_v2 = vor.u32 %v9304_v47, %v7040_v49  ;;  %v3620_v34 = vpop.f32.mrf.mxu1 }
 0x121   : > { %v9400_v60 = vld [vmem:[#allocation5 + $0x784] sm:$0xf]  ;;  %v7424_v61 = vld [vmem:[#allocation5 + $0x790] sm:$0xf0]  ;;  %3991 = vmatpush.bf16.msrb.mxu1 %v7187_v42  ;;  %v7171_v19 = vor.u32 %v9336_v52, %v7168_v59  ;;  %v3621_v42 = vadd.f32 %v3620_v34, %v3602_v33 }
 0x122   : > { %v9364_v4 = vld [vmem:[#allocation5 + $0x664] sm:$0xf]  ;;  %v7280_v7 = vld [vmem:[#allocation5 + $0x670] sm:$0xf0]  ;;  %4029 = vmatpush.bf16.msrb.mxu3 %v7443_v43  ;;  %v7427_v11 = vor.u32 %v9400_v60, %v7424_v61 }
 0x123   : > { %v9300_v12 = vld [vmem:[#allocation5 + $0x464] sm:$0xf]  ;;  %v7024_v15 = vld [vmem:[#allocation5 + $0x470] sm:$0xf0]  ;;  %4011 = vmatpush.bf16.msrb.mxu2 %v7299_v3  ;;  %v7283_v35 = vor.u32 %v9364_v4, %v7280_v7  ;;  %v3639_v7 = vpop.f32.mrf.mxu2 }
 0x124   : > { %v9332_v20 = vld [vmem:[#allocation5 + $0x564] sm:$0xf]  ;;  %v7152_v30 = vld [vmem:[#allocation5 + $0x570] sm:$0xf0]  ;;  %3973 = vmatpush.bf16.msrb.mxu0 %v7043_v2  ;;  %v7027_v36 = vor.u32 %v9300_v12, %v7024_v15  ;;  %v3640_v21 = vadd.f32 %v3639_v7, %v3621_v42  ;;  %v3658_v26 = vpop.f32.mrf.mxu3 }
 0x125   : > { %v9396_v31 = vld [vmem:[#allocation5 + $0x764] sm:$0xf]  ;;  %v7408_v32 = vld [vmem:[#allocation5 + $0x770] sm:$0xf0]  ;;  %3992 = vmatpush.bf16.msrb.mxu1 %v7171_v19  ;;  %v7155_v41 = vor.u32 %v9332_v20, %v7152_v30  ;;  %v3604_v27 = vpop.f32.mrf.mxu0 }
 0x126   : > { %v9360_v37 = vld [vmem:[#allocation5 + $0x644] sm:$0xf]  ;;  %v7264_v38 = vld [vmem:[#allocation5 + $0x650] sm:$0xf0]  ;;  %4030 = vmatpush.bf16.msrb.mxu3 %v7427_v11  ;;  %v7411_v43 = vor.u32 %v9396_v31, %v7408_v32  ;;  %v3605_v33 = vadd.f32 %v3604_v27, %v10646_v10 }
 0x127   : > { %v9296_v47 = vld [vmem:[#allocation5 + $0x444] sm:$0xf]  ;;  %v7008_v49 = vld [vmem:[#allocation5 + $0x450] sm:$0xf0]  ;;  %4012 = vmatpush.bf16.msrb.mxu2 %v7283_v35  ;;  %v7267_v16 = vor.u32 %v9360_v37, %v7264_v38 }
 0x128   : > { %v9328_v52 = vld [vmem:[#allocation5 + $0x544] sm:$0xf]  ;;  %v7136_v59 = vld [vmem:[#allocation5 + $0x550] sm:$0xf0]  ;;  %3974 = vmatpush.bf16.msrb.mxu0 %v7027_v36  ;;  %v7011_v3 = vor.u32 %v9296_v47, %v7008_v49  ;;  %v3623_v34 = vpop.f32.mrf.mxu1  ;;  %v10657_v36 = vadd.f32 %v3658_v26, %v3640_v21  ;;  %3926 = vmatmul.bf16.gmra.mxu1 %v10516_v50 }
 0x129   : > { %v9392_v60 = vld [vmem:[#allocation5 + $0x744] sm:$0xf]  ;;  %v7392_v61 = vld [vmem:[#allocation5 + $0x750] sm:$0xf0]  ;;  %3993 = vmatpush.bf16.msrb.mxu1 %v7155_v41  ;;  %v7139_v12 = vor.u32 %v9328_v52, %v7136_v59  ;;  %v3624_v49 = vadd.f32 %v3623_v34, %v3605_v33  ;;  %3907 = vmatmul.bf16.gmra.mxu0 %v10514_v44 }
 0x12a   : > { %v9356_v2 = vld [vmem:[#allocation5 + $0x624] sm:$0xf]  ;;  %v7248_v4 = vld [vmem:[#allocation5 + $0x630] sm:$0xf0]  ;;  %4031 = vmatpush.bf16.msrb.mxu3 %v7411_v43  ;;  %v7395_v19 = vor.u32 %v9392_v60, %v7392_v61 }
 0x12b   : > { %v9292_v11 = vld [vmem:[#allocation5 + $0x424] sm:$0xf]  ;;  %v6992_v15 = vld [vmem:[#allocation5 + $0x430] sm:$0xf0]  ;;  %4013 = vmatpush.bf16.msrb.mxu2 %v7267_v16  ;;  %v7251_v37 = vor.u32 %v9356_v2, %v7248_v4  ;;  %3964 = vmatmul.bf16.gmra.mxu3 %v10520_v56  ;;  %v3642_v26 = vpop.f32.mrf.mxu2 }
 0x12c   : > { %v9324_v20 = vld [vmem:[#allocation5 + $0x524] sm:$0xf]  ;;  %v7120_v30 = vld [vmem:[#allocation5 + $0x530] sm:$0xf0]  ;;  %3975 = vmatpush.bf16.msrb.mxu0 %v7011_v3  ;;  %v6995_v38 = vor.u32 %v9292_v11, %v6992_v15  ;;  %3945 = vmatmul.bf16.gmra.mxu2 %v10518_v51 }
 0x12d   : > { %v9388_v31 = vld [vmem:[#allocation5 + $0x724] sm:$0xf]  ;;  %v7376_v32 = vld [vmem:[#allocation5 + $0x730] sm:$0xf0]  ;;  %3994 = vmatpush.bf16.msrb.mxu1 %v7139_v12  ;;  %v7123_v42 = vor.u32 %v9324_v20, %v7120_v30  ;;  %v3606_v33 = vpop.f32.mrf.mxu0 }
 0x12e   : > { %v9352_v35 = vld [vmem:[#allocation5 + $0x604] sm:$0xf]  ;;  %v7232_v41 = vld [vmem:[#allocation5 + $0x610] sm:$0xf0]  ;;  %4032 = vmatpush.bf16.msrb.mxu3 %v7395_v19  ;;  %v7379_v52 = vor.u32 %v9388_v31, %v7376_v32  ;;  %v3643_v31 = vadd.f32 %v3642_v26, %v3624_v49  ;;  %v3661_v32 = vpop.f32.mrf.mxu3 }
 0x12f   : > { %v9288_v43 = vld [vmem:[#allocation5 + $0x404] sm:$0xf]  ;;  %v6976_v47 = vld [vmem:[#allocation5 + $0x410] sm:$0xf0]  ;;  %4014 = vmatpush.bf16.msrb.mxu2 %v7251_v37  ;;  %v7235_v19 = vor.u32 %v9352_v35, %v7232_v41  ;;  %v3607_v37 = vadd.f32 %v3606_v33, %v10646_v10 }
 0x130   : > { %v9320_v59 = vld [vmem:[#allocation5 + $0x504] sm:$0xf]  ;;  %v7104_v60 = vld [vmem:[#allocation5 + $0x510] sm:$0xf0]  ;;  %3976 = vmatpush.bf16.msrb.mxu0 %v6995_v38  ;;  %v6979_v11 = vor.u32 %v9288_v43, %v6976_v47  ;;  %v3625_v38 = vpop.f32.mrf.mxu1  ;;  %v10664_v57 = vadd.f32 %v3661_v32, %v3643_v31 }
 0x131   : > { %v9384_v61 = vld [vmem:[#allocation5 + $0x704] sm:$0xf]  ;;  %v7360_v7 = vld [vmem:[#allocation5 + $0x710] sm:$0xf0]  ;;  %3995 = vmatpush.bf16.msrb.mxu1 %v7123_v42  ;;  %v7107_v27 = vor.u32 %v9320_v59, %v7104_v60  ;;  %v3626_v59 = vadd.f32 %v3625_v38, %v3607_v37 }
 0x132   : > { %v9508_v16 = vld [vmem:[#allocation5 + $0xae4] sm:$0xf]  ;;  %v7856_v3 = vld [vmem:[#allocation5 + $0xaf0] sm:$0xf0]  ;;  %4033 = vmatpush.bf16.msrb.mxu3 %v7379_v52  ;;  %v7363_v30 = vor.u32 %v9384_v61, %v7360_v7 }
 0x133   : > { %v9444_v2 = vld [vmem:[#allocation5 + $0x8e4] sm:$0xf]  ;;  %v7600_v4 = vld [vmem:[#allocation5 + $0x8f0] sm:$0xf0]  ;;  %v7859_v34 = vor.u32 %v9508_v16, %v7856_v3  ;;  %4015 = vmatpush.bf16.msrb.mxu2 %v7235_v19 }
 0x134   : > { %v9476_v12 = vld [vmem:[#allocation5 + $0x9e4] sm:$0xf]  ;;  %v7728_v15 = vld [vmem:[#allocation5 + $0x9f0] sm:$0xf0]  ;;  %v7603_v56 = vor.u32 %v9444_v2, %v7600_v4  ;;  %3977 = vmatpush.bf16.msrb.mxu0 %v6979_v11  ;;  %v3644_v2 = vpop.f32.mrf.mxu2 }
 0x135   : > { %v9540_v20 = vld [vmem:[#allocation5 + $0xbe4] sm:$0xf]  ;;  %v7984_v21 = vld [vmem:[#allocation5 + $0xbf0] sm:$0xf0]  ;;  %v7731_v35 = vor.u32 %v9476_v12, %v7728_v15  ;;  %3996 = vmatpush.bf16.msrb.mxu1 %v7107_v27  ;;  %v3645_v11 = vadd.f32 %v3644_v2, %v3626_v59 }
 0x136   : > { %v9504_v51 = vld [vmem:[#allocation5 + $0xac4] sm:$0xf]  ;;  %v7840_v50 = vld [vmem:[#allocation5 + $0xad0] sm:$0xf0]  ;;  %v7987_v41 = vor.u32 %v9540_v20, %v7984_v21  ;;  %4034 = vmatpush.bf16.msrb.mxu3 %v7363_v30  ;;  %v3663_v15 = vpop.f32.mrf.mxu3 }
 0x137   : > { %v9440_v43 = vld [vmem:[#allocation5 + $0x8c4] sm:$0xf]  ;;  %v7584_v47 = vld [vmem:[#allocation5 + $0x8d0] sm:$0xf0]  ;;  %4084 = vmatpush.bf16.msra.mxu2 %v7859_v34  ;;  %v7843_v60 = vor.u32 %v9504_v51, %v7840_v50  ;;  %v10666_v51 = vadd.f32 %v3663_v15, %v3645_v11 }
 0x138   : > { %v9472_v44 = vld [vmem:[#allocation5 + $0x9c4] sm:$0xf]  ;;  %v7712_v42 = vld [vmem:[#allocation5 + $0x9d0] sm:$0xf0]  ;;  %4046 = vmatpush.bf16.msra.mxu0 %v7603_v56  ;;  %v7587_v10 = vor.u32 %v9440_v43, %v7584_v47  ;;  %v3675_v56 = vpop.f32.mrf.mxu0  ;;  %v3694_v50 = vpop.f32.mrf.mxu1  ;;  %3997 = vmatmul.bf16.vlgmr.msrb.gmra.mxu1 %v10536_v1 }
 0x139   : > { %v9536_v49 = vld [vmem:[#allocation5 + $0xbc4] sm:$0xf]  ;;  %v7968_v52 = vld [vmem:[#allocation5 + $0xbd0] sm:$0xf0]  ;;  %4065 = vmatpush.bf16.msra.mxu1 %v7731_v35  ;;  %v7715_v61 = vor.u32 %v9472_v44, %v7712_v42  ;;  %v3676_v44 = vadd.f32 %v3675_v56, %v10654_v63  ;;  %3978 = vmatmul.bf16.vlgmr.msrb.gmra.mxu0 %v10534_v0 }
 0x13a   : > { %4103 = vmatpush.bf16.msra.mxu3 %v7987_v41  ;;  %v7971_v7 = vor.u32 %v9536_v49, %v7968_v52  ;;  %v9500_v16 = vld [vmem:[#allocation5 + $0xaa4] sm:$0xf]  ;;  %v7824_v3 = vld [vmem:[#allocation5 + $0xab0] sm:$0xf0] }
 0x13b   : > { %v9436_v4 = vld [vmem:[#allocation5 + $0x8a4] sm:$0xf]  ;;  %v7568_v12 = vld [vmem:[#allocation5 + $0x8b0] sm:$0xf0]  ;;  %4085 = vmatpush.bf16.msra.mxu2 %v7843_v60  ;;  %v7827_v27 = vor.u32 %v9500_v16, %v7824_v3  ;;  %v3695_v41 = vadd.f32 %v3694_v50, %v3676_v44  ;;  %4035 = vmatmul.bf16.vlgmr.msrb.gmra.mxu3 %v10540_v6 }
 0x13c   : > { %v9468_v19 = vld [vmem:[#allocation5 + $0x9a4] sm:$0xf]  ;;  %4047 = vmatpush.bf16.msra.mxu0 %v7587_v10  ;;  %v7696_v20 = vld [vmem:[#allocation5 + $0x9b0] sm:$0xf0]  ;;  %v7571_v30 = vor.u32 %v9436_v4, %v7568_v12  ;;  %4016 = vmatmul.bf16.vlgmr.msrb.gmra.mxu2 %v10538_v5  ;;  %v3713_v3 = vpop.f32.mrf.mxu2 }
 0x13d   : > { %v9532_v21 = vld [vmem:[#allocation5 + $0xba4] sm:$0xf]  ;;  %v7952_v26 = vld [vmem:[#allocation5 + $0xbb0] sm:$0xf0]  ;;  %4066 = vmatpush.bf16.msra.mxu1 %v7715_v61  ;;  %v7699_v33 = vor.u32 %v9468_v19, %v7696_v20  ;;  %v3714_v11 = vadd.f32 %v3713_v3, %v3695_v41 }
 0x13e   : > { %4104 = vmatpush.bf16.msra.mxu3 %v7971_v7  ;;  %v9496_v31 = vld [vmem:[#allocation5 + $0xa84] sm:$0xf]  ;;  %v7808_v32 = vld [vmem:[#allocation5 + $0xa90] sm:$0xf0]  ;;  %v7955_v34 = vor.u32 %v9532_v21, %v7952_v26  ;;  %v3732_v2 = vpop.f32.mrf.mxu3 }
 0x13f   : > { %v9432_v37 = vld [vmem:[#allocation5 + $0x884] sm:$0xf]  ;;  %v7552_v38 = vld [vmem:[#allocation5 + $0x890] sm:$0xf0]  ;;  %4086 = vmatpush.bf16.msra.mxu2 %v7827_v27  ;;  %v7811_v63 = vor.u32 %v9496_v31, %v7808_v32  ;;  %v10674_v27 = vadd.f32 %v3732_v2, %v3714_v11 }
 0x140   : > { %v9464_v35 = vld [vmem:[#allocation5 + $0x984] sm:$0xf]  ;;  %v7680_v43 = vld [vmem:[#allocation5 + $0x990] sm:$0xf0]  ;;  %4048 = vmatpush.bf16.msra.mxu0 %v7571_v30  ;;  %v7555_v49 = vor.u32 %v9432_v37, %v7552_v38  ;;  %v3677_v15 = vpop.f32.mrf.mxu0  ;;  %v3696_v20 = vpop.f32.mrf.mxu1 }
 0x141   : > { %v9528_v47 = vld [vmem:[#allocation5 + $0xb84] sm:$0xf]  ;;  %v7936_v42 = vld [vmem:[#allocation5 + $0xb90] sm:$0xf0]  ;;  %4067 = vmatpush.bf16.msra.mxu1 %v7699_v33  ;;  %v7683_v60 = vor.u32 %v9464_v35, %v7680_v43  ;;  %v3678_v21 = vadd.f32 %v3677_v15, %v10657_v36 }
 0x142   : > { %v9492_v52 = vld [vmem:[#allocation5 + $0xa64] sm:$0xf]  ;;  %v7792_v59 = vld [vmem:[#allocation5 + $0xa70] sm:$0xf0]  ;;  %4105 = vmatpush.bf16.msra.mxu3 %v7955_v34  ;;  %v7939_v10 = vor.u32 %v9528_v47, %v7936_v42 }
 0x143   : > { %v9428_v61 = vld [vmem:[#allocation5 + $0x864] sm:$0xf]  ;;  %v7536_v7 = vld [vmem:[#allocation5 + $0x870] sm:$0xf0]  ;;  %4087 = vmatpush.bf16.msra.mxu2 %v7811_v63  ;;  %v7795_v26 = vor.u32 %v9492_v52, %v7792_v59  ;;  %v3697_v37 = vadd.f32 %v3696_v20, %v3678_v21 }
 0x144   : > { %v9460_v16 = vld [vmem:[#allocation5 + $0x964] sm:$0xf]  ;;  %v7664_v4 = vld [vmem:[#allocation5 + $0x970] sm:$0xf0]  ;;  %4049 = vmatpush.bf16.msra.mxu0 %v7555_v49  ;;  %v7539_v56 = vor.u32 %v9428_v61, %v7536_v7 }
 0x145   : > { %v9524_v12 = vld [vmem:[#allocation5 + $0xb64] sm:$0xf]  ;;  %v7920_v19 = vld [vmem:[#allocation5 + $0xb70] sm:$0xf0]  ;;  %4068 = vmatpush.bf16.msra.mxu1 %v7683_v60  ;;  %v7667_v30 = vor.u32 %v9460_v16, %v7664_v4 }
 0x146   : > { %v9488_v50 = vld [vmem:[#allocation5 + $0xa44] sm:$0xf]  ;;  %v7776_v44 = vld [vmem:[#allocation5 + $0xa50] sm:$0xf0]  ;;  %4106 = vmatpush.bf16.msra.mxu3 %v7939_v10  ;;  %v7923_v31 = vor.u32 %v9524_v12, %v7920_v19  ;;  %v3715_v10 = vpop.f32.mrf.mxu2  ;;  %v3734_v61 = vpop.f32.mrf.mxu3 }
 0x147   : > { %v9424_v32 = vld [vmem:[#allocation5 + $0x844] sm:$0xf]  ;;  %v7520_v33 = vld [vmem:[#allocation5 + $0x850] sm:$0xf0]  ;;  %4088 = vmatpush.bf16.msra.mxu2 %v7795_v26  ;;  %v7779_v36 = vor.u32 %v9488_v50, %v7776_v44  ;;  %v3716_v2 = vadd.f32 %v3715_v10, %v3697_v37 }
 0x148   : > { %v9456_v34 = vld [vmem:[#allocation5 + $0x944] sm:$0xf]  ;;  %v7648_v38 = vld [vmem:[#allocation5 + $0x950] sm:$0xf0]  ;;  %4050 = vmatpush.bf16.msra.mxu0 %v7539_v56  ;;  %v7523_v43 = vor.u32 %v9424_v32, %v7520_v33  ;;  %v3680_v4 = vpop.f32.mrf.mxu0  ;;  %v3699_v12 = vpop.f32.mrf.mxu1  ;;  %4002 = vmatmul.bf16.gmra.mxu1 %v10556_v9 }
 0x149   : > { %v9520_v35 = vld [vmem:[#allocation5 + $0xb44] sm:$0xf]  ;;  %v7904_v41 = vld [vmem:[#allocation5 + $0xb50] sm:$0xf0]  ;;  %4069 = vmatpush.bf16.msra.mxu1 %v7667_v30  ;;  %v7651_v63 = vor.u32 %v9456_v34, %v7648_v38  ;;  %v3681_v11 = vadd.f32 %v3680_v4, %v10664_v57  ;;  %v10677_v50 = vadd.f32 %v3734_v61, %v3716_v2  ;;  %3983 = vmatmul.bf16.gmra.mxu0 %v10554_v8 }
 0x14a   : > { %v9484_v47 = vld [vmem:[#allocation5 + $0xa24] sm:$0xf]  ;;  %v7760_v42 = vld [vmem:[#allocation5 + $0xa30] sm:$0xf0]  ;;  %4107 = vmatpush.bf16.msra.mxu3 %v7923_v31  ;;  %v7907_v49 = vor.u32 %v9520_v35, %v7904_v41 }
 0x14b   : > { %v9420_v52 = vld [vmem:[#allocation5 + $0x824] sm:$0xf]  ;;  %v7504_v59 = vld [vmem:[#allocation5 + $0x830] sm:$0xf0]  ;;  %4089 = vmatpush.bf16.msra.mxu2 %v7779_v36  ;;  %v7763_v15 = vor.u32 %v9484_v47, %v7760_v42  ;;  %v3700_v34 = vadd.f32 %v3699_v12, %v3681_v11  ;;  %4040 = vmatmul.bf16.gmra.mxu3 %v10560_v14 }
 0x14c   : > { %v9452_v60 = vld [vmem:[#allocation5 + $0x924] sm:$0xf]  ;;  %v7632_v7 = vld [vmem:[#allocation5 + $0x930] sm:$0xf0]  ;;  %4051 = vmatpush.bf16.msra.mxu0 %v7523_v43  ;;  %v7507_v20 = vor.u32 %v9420_v52, %v7504_v59  ;;  %4021 = vmatmul.bf16.gmra.mxu2 %v10558_v13 }
 0x14d   : > { %v9516_v16 = vld [vmem:[#allocation5 + $0xb24] sm:$0xf]  ;;  %v7888_v3 = vld [vmem:[#allocation5 + $0xb30] sm:$0xf0]  ;;  %4070 = vmatpush.bf16.msra.mxu1 %v7651_v63  ;;  %v7635_v44 = vor.u32 %v9452_v60, %v7632_v7 }
 0x14e   : > { %v9480_v19 = vld [vmem:[#allocation5 + $0xa04] sm:$0xf]  ;;  %v7744_v21 = vld [vmem:[#allocation5 + $0xa10] sm:$0xf0]  ;;  %4108 = vmatpush.bf16.msra.mxu3 %v7907_v49  ;;  %v7891_v30 = vor.u32 %v9516_v16, %v7888_v3  ;;  %v3718_v60 = vpop.f32.mrf.mxu2  ;;  %v3737_v10 = vpop.f32.mrf.mxu3 }
 0x14f   : > { %v9416_v26 = vld [vmem:[#allocation5 + $0x804] sm:$0xf]  ;;  %v7488_v56 = vld [vmem:[#allocation5 + $0x810] sm:$0xf0]  ;;  %4090 = vmatpush.bf16.msra.mxu2 %v7763_v15  ;;  %v7747_v43 = vor.u32 %v9480_v19, %v7744_v21  ;;  %v3719_v2 = vadd.f32 %v3718_v60, %v3700_v34 }
 0x150   : > { %v9448_v31 = vld [vmem:[#allocation5 + $0x904] sm:$0xf]  ;;  %v7616_v32 = vld [vmem:[#allocation5 + $0x910] sm:$0xf0]  ;;  %4052 = vmatpush.bf16.msra.mxu0 %v7507_v20  ;;  %v7491_v47 = vor.u32 %v9416_v26, %v7488_v56  ;;  %v3682_v4 = vpop.f32.mrf.mxu0  ;;  %v3701_v12 = vpop.f32.mrf.mxu1 }
 0x151   : > { %v9512_v33 = vld [vmem:[#allocation5 + $0xb04] sm:$0xf]  ;;  %v7872_v57 = vld [vmem:[#allocation5 + $0xb10] sm:$0xf0]  ;;  %4071 = vmatpush.bf16.msra.mxu1 %v7635_v44  ;;  %v7619_v52 = vor.u32 %v9448_v31, %v7616_v32  ;;  %v3683_v26 = vadd.f32 %v3682_v4, %v10666_v51  ;;  %v10684_v31 = vadd.f32 %v3737_v10, %v3719_v2 }
 0x152   : > { %v9636_v37 = vld [vmem:[#allocation5 + $0xee4] sm:$0xf]  ;;  %v8368_v38 = vld [vmem:[#allocation5 + $0xef0] sm:$0xf0]  ;;  %4109 = vmatpush.bf16.msra.mxu3 %v7891_v30  ;;  %v7875_v59 = vor.u32 %v9512_v33, %v7872_v57 }
 0x153   : > { %v9572_v35 = vld [vmem:[#allocation5 + $0xce4] sm:$0xf]  ;;  %v8112_v41 = vld [vmem:[#allocation5 + $0xcf0] sm:$0xf0]  ;;  %v8371_v61 = vor.u32 %v9636_v37, %v8368_v38  ;;  %4091 = vmatpush.bf16.msra.mxu2 %v7747_v43  ;;  %v3702_v32 = vadd.f32 %v3701_v12, %v3683_v26 }
 0x154   : > { %v9604_v36 = vld [vmem:[#allocation5 + $0xde4] sm:$0xf]  ;;  %v8240_v42 = vld [vmem:[#allocation5 + $0xdf0] sm:$0xf0]  ;;  %v8115_v7 = vor.u32 %v9572_v35, %v8112_v41  ;;  %4053 = vmatpush.bf16.msra.mxu0 %v7491_v47 }
 0x155   : > { %v9668_v63 = vld [vmem:[#allocation5 + $0xfe4] sm:$0xf]  ;;  %v8496_v49 = vld [vmem:[#allocation5 + $0xff0] sm:$0xf0]  ;;  %v8243_v11 = vor.u32 %v9604_v36, %v8240_v42  ;;  %4072 = vmatpush.bf16.msra.mxu1 %v7619_v52 }
 0x156   : > { %v9632_v16 = vld [vmem:[#allocation5 + $0xec4] sm:$0xf]  ;;  %v8352_v3 = vld [vmem:[#allocation5 + $0xed0] sm:$0xf0]  ;;  %v8499_v15 = vor.u32 %v9668_v63, %v8496_v49  ;;  %4110 = vmatpush.bf16.msra.mxu3 %v7875_v59  ;;  %v3720_v43 = vpop.f32.mrf.mxu2  ;;  %v3739_v47 = vpop.f32.mrf.mxu3 }
 0x157   : > { %v9568_v19 = vld [vmem:[#allocation5 + $0xcc4] sm:$0xf]  ;;  %v8096_v20 = vld [vmem:[#allocation5 + $0xcd0] sm:$0xf0]  ;;  %4160 = vmatpush.bf16.msrb.mxu2 %v8371_v61  ;;  %v8355_v33 = vor.u32 %v9632_v16, %v8352_v3  ;;  %v3721_v52 = vadd.f32 %v3720_v43, %v3702_v32 }
 0x158   : > { %v9600_v21 = vld [vmem:[#allocation5 + $0xdc4] sm:$0xf]  ;;  %v8224_v56 = vld [vmem:[#allocation5 + $0xdd0] sm:$0xf0]  ;;  %4122 = vmatpush.bf16.msrb.mxu0 %v8115_v7  ;;  %v8099_v34 = vor.u32 %v9568_v19, %v8096_v20  ;;  %v3751_v59 = vpop.f32.mrf.mxu0  ;;  %v3770_v60 = vpop.f32.mrf.mxu1  ;;  %4073 = vmatmul.bf16.vlgmr.msra.gmra.mxu1 %v10576_v24 }
 0x159   : > { %v9664_v44 = vld [vmem:[#allocation5 + $0xfc4] sm:$0xf]  ;;  %v8480_v30 = vld [vmem:[#allocation5 + $0xfd0] sm:$0xf0]  ;;  %4141 = vmatpush.bf16.msrb.mxu1 %v8243_v11  ;;  %v8227_v57 = vor.u32 %v9600_v21, %v8224_v56  ;;  %v3752_v10 = vadd.f32 %v3751_v59, %v10674_v27  ;;  %v10687_v2 = vadd.f32 %v3739_v47, %v3721_v52  ;;  %4054 = vmatmul.bf16.vlgmr.msra.gmra.mxu0 %v10574_v23 }
 0x15a   : > { %4179 = vmatpush.bf16.msrb.mxu3 %v8499_v15  ;;  %v8483_v37 = vor.u32 %v9664_v44, %v8480_v30  ;;  %v9628_v38 = vld [vmem:[#allocation5 + $0xea4] sm:$0xf]  ;;  %v8336_v51 = vld [vmem:[#allocation5 + $0xeb0] sm:$0xf0] }
 0x15b   : > { %v9564_v35 = vld [vmem:[#allocation5 + $0xca4] sm:$0xf]  ;;  %v8080_v41 = vld [vmem:[#allocation5 + $0xcb0] sm:$0xf0]  ;;  %4161 = vmatpush.bf16.msrb.mxu2 %v8355_v33  ;;  %v8339_v61 = vor.u32 %v9628_v38, %v8336_v51  ;;  %v3771_v20 = vadd.f32 %v3770_v60, %v3752_v10  ;;  %4111 = vmatmul.bf16.vlgmr.msra.gmra.mxu3 %v10580_v29 }
 0x15c   : > { %v9596_v36 = vld [vmem:[#allocation5 + $0xda4] sm:$0xf]  ;;  %4123 = vmatpush.bf16.msrb.mxu0 %v8099_v34  ;;  %v8208_v42 = vld [vmem:[#allocation5 + $0xdb0] sm:$0xf0]  ;;  %v8083_v7 = vor.u32 %v9564_v35, %v8080_v41  ;;  %4092 = vmatmul.bf16.vlgmr.msra.gmra.mxu2 %v10578_v28 }
 0x15d   : > { %v9660_v63 = vld [vmem:[#allocation5 + $0xfa4] sm:$0xf]  ;;  %v8464_v49 = vld [vmem:[#allocation5 + $0xfb0] sm:$0xf0]  ;;  %4142 = vmatpush.bf16.msrb.mxu1 %v8227_v57  ;;  %v8211_v4 = vor.u32 %v9596_v36, %v8208_v42 }
 0x15e   : > { %4180 = vmatpush.bf16.msrb.mxu3 %v8483_v37  ;;  %v9624_v16 = vld [vmem:[#allocation5 + $0xe84] sm:$0xf]  ;;  %v8320_v3 = vld [vmem:[#allocation5 + $0xe90] sm:$0xf0]  ;;  %v8467_v12 = vor.u32 %v9660_v63, %v8464_v49  ;;  %v3789_v51 = vpop.f32.mrf.mxu2  ;;  %v3808_v35 = vpop.f32.mrf.mxu3 }
 0x15f   : > { %v9560_v11 = vld [vmem:[#allocation5 + $0xc84] sm:$0xf]  ;;  %v8064_v15 = vld [vmem:[#allocation5 + $0xc90] sm:$0xf0]  ;;  %4162 = vmatpush.bf16.msrb.mxu2 %v8339_v61  ;;  %v8323_v27 = vor.u32 %v9624_v16, %v8320_v3  ;;  %v3790_v47 = vadd.f32 %v3789_v51, %v3771_v20 }
 0x160   : > { %v9592_v19 = vld [vmem:[#allocation5 + $0xd84] sm:$0xf]  ;;  %v8192_v21 = vld [vmem:[#allocation5 + $0xd90] sm:$0xf0]  ;;  %4124 = vmatpush.bf16.msrb.mxu0 %v8083_v7  ;;  %v8067_v44 = vor.u32 %v9560_v11, %v8064_v15  ;;  %v3753_v42 = vpop.f32.mrf.mxu0  ;;  %v3772_v63 = vpop.f32.mrf.mxu1 }
 0x161   : > { %v9656_v26 = vld [vmem:[#allocation5 + $0xf84] sm:$0xf]  ;;  %v8448_v56 = vld [vmem:[#allocation5 + $0xf90] sm:$0xf0]  ;;  %4143 = vmatpush.bf16.msrb.mxu1 %v8211_v4  ;;  %v8195_v33 = vor.u32 %v9592_v19, %v8192_v21  ;;  %v3754_v49 = vadd.f32 %v3753_v42, %v10677_v50  ;;  %v10694_v61 = vadd.f32 %v3808_v35, %v3790_v47 }
 0x162   : > { %v9620_v30 = vld [vmem:[#allocation5 + $0xe64] sm:$0xf]  ;;  %v8304_v32 = vld [vmem:[#allocation5 + $0xe70] sm:$0xf0]  ;;  %4181 = vmatpush.bf16.msrb.mxu3 %v8467_v12  ;;  %v8451_v34 = vor.u32 %v9656_v26, %v8448_v56 }
 0x163   : > { %v9556_v57 = vld [vmem:[#allocation5 + $0xc64] sm:$0xf]  ;;  %v8048_v37 = vld [vmem:[#allocation5 + $0xc70] sm:$0xf0]  ;;  %4163 = vmatpush.bf16.msrb.mxu2 %v8323_v27  ;;  %v8307_v52 = vor.u32 %v9620_v30, %v8304_v32  ;;  %v3773_v11 = vadd.f32 %v3772_v63, %v3754_v49 }
 0x164   : > { %v9588_v38 = vld [vmem:[#allocation5 + $0xd64] sm:$0xf]  ;;  %v8176_v41 = vld [vmem:[#allocation5 + $0xd70] sm:$0xf0]  ;;  %4125 = vmatpush.bf16.msrb.mxu0 %v8067_v44  ;;  %v8051_v59 = vor.u32 %v9556_v57, %v8048_v37 }
 0x165   : > { %v9652_v36 = vld [vmem:[#allocation5 + $0xf64] sm:$0xf]  ;;  %v8432_v43 = vld [vmem:[#allocation5 + $0xf70] sm:$0xf0]  ;;  %4144 = vmatpush.bf16.msrb.mxu1 %v8195_v33  ;;  %v8179_v7 = vor.u32 %v9588_v38, %v8176_v41 }
 0x166   : > { %v9616_v60 = vld [vmem:[#allocation5 + $0xe44] sm:$0xf]  ;;  %v8288_v10 = vld [vmem:[#allocation5 + $0xe50] sm:$0xf0]  ;;  %4182 = vmatpush.bf16.msrb.mxu3 %v8451_v34  ;;  %v8435_v16 = vor.u32 %v9652_v36, %v8432_v43  ;;  %v3791_v34 = vpop.f32.mrf.mxu2  ;;  %v3810_v57 = vpop.f32.mrf.mxu3 }
 0x167   : > { %v9552_v3 = vld [vmem:[#allocation5 + $0xc44] sm:$0xf]  ;;  %v8032_v4 = vld [vmem:[#allocation5 + $0xc50] sm:$0xf0]  ;;  %4164 = vmatpush.bf16.msrb.mxu2 %v8307_v52  ;;  %v8291_v50 = vor.u32 %v9616_v60, %v8288_v10  ;;  %v3792_v35 = vadd.f32 %v3791_v34, %v3773_v11  ;;  %v6838_v11 = vld [vmem:[#allocation5 + $0x2e8] sm:$0xf] }
 0x168   : > { %v9584_v12 = vld [vmem:[#allocation5 + $0xd44] sm:$0xf]  ;;  %v8160_v15 = vld [vmem:[#allocation5 + $0xd50] sm:$0xf0]  ;;  %4126 = vmatpush.bf16.msrb.mxu0 %v8051_v59  ;;  %v8035_v21 = vor.u32 %v9552_v3, %v8032_v4  ;;  %v3756_v41 = vpop.f32.mrf.mxu0  ;;  %v3775_v36 = vpop.f32.mrf.mxu1  ;;  %4078 = vmatmul.bf16.gmra.mxu1 %v10596_v40 }
 0x169   : > { %v9648_v19 = vld [vmem:[#allocation5 + $0xf44] sm:$0xf]  ;;  %v8416_v20 = vld [vmem:[#allocation5 + $0xf50] sm:$0xf0]  ;;  %4145 = vmatpush.bf16.msrb.mxu1 %v8179_v7  ;;  %v8163_v27 = vor.u32 %v9584_v12, %v8160_v15  ;;  %v3757_v47 = vadd.f32 %v3756_v41, %v10684_v31  ;;  %v10697_v60 = vadd.f32 %v3810_v57, %v3792_v35  ;;  %4059 = vmatmul.bf16.gmra.mxu0 %v10594_v39  ;;  %v9255_v15 = vld [vmem:[#allocation5 + $0x2f4] sm:$0xf0] }
 0x16a   : > { %v9612_v26 = vld [vmem:[#allocation5 + $0xe24] sm:$0xf]  ;;  %v8272_v56 = vld [vmem:[#allocation5 + $0xe30] sm:$0xf0]  ;;  %4183 = vmatpush.bf16.msrb.mxu3 %v8435_v16  ;;  %v8419_v44 = vor.u32 %v9648_v19, %v8416_v20  ;;  %v6582_v19 = vld [vmem:[#allocation5 + $0xe8] sm:$0xf]  ;;  %v6839_v57 = vor.u32 %v9255_v15, %v6838_v11 }
 0x16b   : > { %v9548_v30 = vld [vmem:[#allocation5 + $0xc24] sm:$0xf]  ;;  %v8016_v32 = vld [vmem:[#allocation5 + $0xc30] sm:$0xf0]  ;;  %4165 = vmatpush.bf16.msrb.mxu2 %v8291_v50  ;;  %v8275_v42 = vor.u32 %v9612_v26, %v8272_v56  ;;  %v3776_v12 = vadd.f32 %v3775_v36, %v3757_v47  ;;  %4116 = vmatmul.bf16.gmra.mxu3 %v10600_v46  ;;  %v9191_v20 = vld [vmem:[#allocation5 + $0xf4] sm:$0xf0] }
 0x16c   : > { %v9580_v33 = vld [vmem:[#allocation5 + $0xd24] sm:$0xf]  ;;  %v8144_v37 = vld [vmem:[#allocation5 + $0xd30] sm:$0xf0]  ;;  %4127 = vmatpush.bf16.msrb.mxu0 %v8035_v21  ;;  %v8019_v63 = vor.u32 %v9548_v30, %v8016_v32  ;;  %4097 = vmatmul.bf16.gmra.mxu2 %v10598_v45  ;;  %v6710_v50 = vld [vmem:[#allocation5 + $0x1e8] sm:$0xf] }
 0x16d   : > { %v9644_v38 = vld [vmem:[#allocation5 + $0xf24] sm:$0xf]  ;;  %v8400_v51 = vld [vmem:[#allocation5 + $0xf30] sm:$0xf0]  ;;  %4146 = vmatpush.bf16.msrb.mxu1 %v8163_v27  ;;  %v8147_v10 = vor.u32 %v9580_v33, %v8144_v37  ;;  %v9223_v56 = vld [vmem:[#allocation5 + $0x1f4] sm:$0xf0]  ;;  %v6583_v37 = vor.u32 %v9191_v20, %v6582_v19 }
 0x16e   : > { %v9608_v43 = vld [vmem:[#allocation5 + $0xe04] sm:$0xf]  ;;  %v8256_v49 = vld [vmem:[#allocation5 + $0xe10] sm:$0xf0]  ;;  %4184 = vmatpush.bf16.msrb.mxu3 %v8419_v44  ;;  %v8403_v7 = vor.u32 %v9644_v38, %v8400_v51  ;;  %v6966_v27 = vld [vmem:[#allocation5 + $0x3e8] sm:$0xf]  ;;  %v3813_v34 = vpop.f32.mrf.mxu3  ;;  %v6711_v47 = vor.u32 %v9223_v56, %v6710_v50 }
 0x16f   : > { %v9544_v52 = vld [vmem:[#allocation5 + $0xc04] sm:$0xf]  ;;  %v8000_v59 = vld [vmem:[#allocation5 + $0xc10] sm:$0xf0]  ;;  %4166 = vmatpush.bf16.msrb.mxu2 %v8275_v42  ;;  %v8259_v21 = vor.u32 %v9608_v43, %v8256_v49  ;;  %v9287_v44 = vld [vmem:[#allocation5 + $0x3f4] sm:$0xf0]  ;;  %v3794_v33 = vpop.f32.mrf.mxu2 }
 0x170   : > { %v9576_v16 = vld [vmem:[#allocation5 + $0xd04] sm:$0xf]  ;;  %v8128_v3 = vld [vmem:[#allocation5 + $0xd10] sm:$0xf0]  ;;  %4128 = vmatpush.bf16.msrb.mxu0 %v8019_v63  ;;  %v8003_v26 = vor.u32 %v9544_v52, %v8000_v59  ;;  %v6822_v38 = vld [vmem:[#allocation5 + $0x2c8] sm:$0xf]  ;;  %v3795_v35 = vadd.f32 %v3794_v33, %v3776_v12  ;;  %v3758_v41 = vpop.f32.mrf.mxu0  ;;  %v3777_v36 = vpop.f32.mrf.mxu1  ;;  %v6967_v42 = vor.u32 %v9287_v44, %v6966_v27 }
 0x171   : > { %v9640_v4 = vld [vmem:[#allocation5 + $0xf04] sm:$0xf]  ;;  %v8384_v31 = vld [vmem:[#allocation5 + $0xf10] sm:$0xf0]  ;;  %4147 = vmatpush.bf16.msrb.mxu1 %v8147_v10  ;;  %v8131_v30 = vor.u32 %v9576_v16, %v8128_v3  ;;  %v9251_v51 = vld [vmem:[#allocation5 + $0x2d4] sm:$0xf0]  ;;  %v3759_v52 = vadd.f32 %v3758_v41, %v10687_v2 }
 0x172   : > { %4185 = vmatpush.bf16.msrb.mxu3 %v8403_v7  ;;  %v8387_v32 = vor.u32 %v9640_v4, %v8384_v31  ;;  %v6566_v43 = vld [vmem:[#allocation5 + $0xc8] sm:$0xf]  ;;  %v9187_v63 = vld [vmem:[#allocation5 + $0xd4] sm:$0xf0]  ;;  %v10704_v16 = vadd.f32 %v3813_v34, %v3795_v35  ;;  %v6823_v4 = vor.u32 %v9251_v51, %v6822_v38 }
 0x173   : > { %v6694_v49 = vld [vmem:[#allocation5 + $0x1c8] sm:$0xf]  ;;  %4167 = vmatpush.bf16.msrb.mxu2 %v8259_v21  ;;  %v9219_v59 = vld [vmem:[#allocation5 + $0x1d4] sm:$0xf0]  ;;  %v3778_v3 = vadd.f32 %v3777_v36, %v3759_v52  ;;  %v6567_v12 = vor.u32 %v9187_v63, %v6566_v43 }
 0x174   : > { %4129 = vmatpush.bf16.msrb.mxu0 %v8003_v26  ;;  %v6950_v10 = vld [vmem:[#allocation5 + $0x3c8] sm:$0xf]  ;;  %v9283_v7 = vld [vmem:[#allocation5 + $0x3d4] sm:$0xf0]  ;;  %v6695_v31 = vor.u32 %v9219_v59, %v6694_v49 }
 0x175   : > { %4148 = vmatpush.bf16.msrb.mxu1 %v8131_v30  ;;  %v6951_v11 = vor.u32 %v9283_v7, %v6950_v10  ;;  %v6806_v15 = vld [vmem:[#allocation5 + $0x2a8] sm:$0xf]  ;;  %v9247_v2 = vld [vmem:[#allocation5 + $0x2b4] sm:$0xf0] }
 0x176   : > { %4186 = vmatpush.bf16.msrb.mxu3 %v8387_v32  ;;  %v6550_v19 = vld [vmem:[#allocation5 + $0xa8] sm:$0xf]  ;;  %v9183_v20 = vld [vmem:[#allocation5 + $0xb4] sm:$0xf0]  ;;  %v3815_v26 = vpop.f32.mrf.mxu3 }
 0x177   : > { %4236 = vmatpush.bf16.msra.mxu2 %v6839_v57  ;;  %v6678_v50 = vld [vmem:[#allocation5 + $0x1a8] sm:$0xf]  ;;  %v3796_v21 = vpop.f32.mrf.mxu2  ;;  %v9215_v56 = vld [vmem:[#allocation5 + $0x1b4] sm:$0xf0]  ;;  %v6807_v57 = vor.u32 %v9247_v2, %v6806_v15 }
 0x178   : > { %4198 = vmatpush.bf16.msra.mxu0 %v6583_v37  ;;  %v6934_v27 = vld [vmem:[#allocation5 + $0x3a8] sm:$0xf]  ;;  %v9279_v44 = vld [vmem:[#allocation5 + $0x3b4] sm:$0xf0]  ;;  %v3797_v30 = vadd.f32 %v3796_v21, %v3778_v3  ;;  %v3827_v32 = vpop.f32.mrf.mxu0  ;;  %v3846_v33 = vpop.f32.mrf.mxu1  ;;  %v6551_v37 = vor.u32 %v9183_v20, %v6550_v19  ;;  %v6679_v41 = vor.u32 %v9215_v56, %v6678_v50  ;;  %4149 = vmatmul.bf16.vlgmr.msrb.gmra.mxu1 %v10616_v18 }
 0x179   : > { %4217 = vmatpush.bf16.msra.mxu1 %v6711_v47  ;;  %v3828_v34 = vadd.f32 %v3827_v32, %v10694_v61  ;;  %v6790_v38 = vld [vmem:[#allocation5 + $0x288] sm:$0xf]  ;;  %v9243_v51 = vld [vmem:[#allocation5 + $0x294] sm:$0xf0]  ;;  %v6935_v36 = vor.u32 %v9279_v44, %v6934_v27  ;;  %4130 = vmatmul.bf16.vlgmr.msrb.gmra.mxu0 %v10614_v17 }
 0x17a   : > { %4255 = vmatpush.bf16.msra.mxu3 %v6967_v42  ;;  %v10707_v35 = vadd.f32 %v3815_v26, %v3797_v30  ;;  %v6534_v47 = vld [vmem:[#allocation5 + $0x88] sm:$0xf]  ;;  %v9179_v42 = vld [vmem:[#allocation5 + $0x94] sm:$0xf0]  ;;  %v6791_v61 = vor.u32 %v9243_v51, %v6790_v38 }
 0x17b   : > { %4237 = vmatpush.bf16.msra.mxu2 %v6823_v4  ;;  %v6662_v43 = vld [vmem:[#allocation5 + $0x188] sm:$0xf]  ;;  %v3847_v63 = vadd.f32 %v3846_v33, %v3828_v34  ;;  %v9211_v49 = vld [vmem:[#allocation5 + $0x194] sm:$0xf0]  ;;  %4187 = vmatmul.bf16.vlgmr.msrb.gmra.mxu3 %v10620_v25  ;;  %v6535_v10 = vor.u32 %v9179_v42, %v6534_v47 }
 0x17c   : > { %4199 = vmatpush.bf16.msra.mxu0 %v6567_v12  ;;  %v6918_v52 = vld [vmem:[#allocation5 + $0x388] sm:$0xf]  ;;  %v9275_v59 = vld [vmem:[#allocation5 + $0x394] sm:$0xf0]  ;;  %4168 = vmatmul.bf16.vlgmr.msrb.gmra.mxu2 %v10618_v22  ;;  %v6663_v4 = vor.u32 %v9211_v49, %v6662_v43 }
 0x17d   : > { %4218 = vmatpush.bf16.msra.mxu1 %v6695_v31  ;;  %v6774_v7 = vld [vmem:[#allocation5 + $0x268] sm:$0xf]  ;;  %v9239_v3 = vld [vmem:[#allocation5 + $0x274] sm:$0xf0]  ;;  %v6919_v12 = vor.u32 %v9275_v59, %v6918_v52 }
 0x17e   : > { %4256 = vmatpush.bf16.msra.mxu3 %v6951_v11  ;;  %v6518_v31 = vld [vmem:[#allocation5 + $0x68] sm:$0xf]  ;;  %v9175_v11 = vld [vmem:[#allocation5 + $0x74] sm:$0xf0]  ;;  %v3884_v19 = vpop.f32.mrf.mxu3  ;;  %v6775_v30 = vor.u32 %v9239_v3, %v6774_v7 }
 0x17f   : > { %4238 = vmatpush.bf16.msra.mxu2 %v6807_v57  ;;  %v6646_v15 = vld [vmem:[#allocation5 + $0x168] sm:$0xf]  ;;  %v3865_v2 = vpop.f32.mrf.mxu2  ;;  %v9207_v20 = vld [vmem:[#allocation5 + $0x174] sm:$0xf0]  ;;  %v6519_v32 = vor.u32 %v9175_v11, %v6518_v31 }
 0x180   : > { %4200 = vmatpush.bf16.msra.mxu0 %v6551_v37  ;;  %v6902_v50 = vld [vmem:[#allocation5 + $0x368] sm:$0xf]  ;;  %v9271_v21 = vld [vmem:[#allocation5 + $0x374] sm:$0xf0]  ;;  %v3866_v26 = vadd.f32 %v3865_v2, %v3847_v63  ;;  %v3829_v56 = vpop.f32.mrf.mxu0  ;;  %v3848_v27 = vpop.f32.mrf.mxu1  ;;  %v6647_v37 = vor.u32 %v9207_v20, %v6646_v15 }
 0x181   : > { %4219 = vmatpush.bf16.msra.mxu1 %v6679_v41  ;;  %v3830_v44 = vadd.f32 %v3829_v56, %v10697_v60  ;;  %v6758_v33 = vld [vmem:[#allocation5 + $0x248] sm:$0xf]  ;;  %v9235_v34 = vld [vmem:[#allocation5 + $0x254] sm:$0xf0]  ;;  %v6903_v38 = vor.u32 %v9271_v21, %v6902_v50 }
 0x182   : > { %4257 = vmatpush.bf16.msra.mxu3 %v6935_v36  ;;  %v10714_v57 = vadd.f32 %v3884_v19, %v3866_v26  ;;  %v6502_v51 = vld [vmem:[#allocation5 + $0x48] sm:$0xf]  ;;  %v9171_v41 = vld [vmem:[#allocation5 + $0x54] sm:$0xf0]  ;;  %v6759_v60 = vor.u32 %v9235_v34, %v6758_v33 }
 0x183   : > { %4239 = vmatpush.bf16.msra.mxu2 %v6791_v61  ;;  %v6630_v36 = vld [vmem:[#allocation5 + $0x148] sm:$0xf]  ;;  %v3849_v47 = vadd.f32 %v3848_v27, %v3830_v44  ;;  %v9203_v42 = vld [vmem:[#allocation5 + $0x154] sm:$0xf0]  ;;  %v6503_v49 = vor.u32 %v9171_v41, %v6502_v51 }
 0x184   : > { %4201 = vmatpush.bf16.msra.mxu0 %v6535_v10  ;;  %v6886_v43 = vld [vmem:[#allocation5 + $0x348] sm:$0xf]  ;;  %v9267_v63 = vld [vmem:[#allocation5 + $0x354] sm:$0xf0]  ;;  %v6631_v61 = vor.u32 %v9203_v42, %v6630_v36 }
 0x185   : > { %4220 = vmatpush.bf16.msra.mxu1 %v6663_v4  ;;  %v6742_v52 = vld [vmem:[#allocation5 + $0x228] sm:$0xf]  ;;  %v9231_v59 = vld [vmem:[#allocation5 + $0x234] sm:$0xf0]  ;;  %v6887_v10 = vor.u32 %v9267_v63, %v6886_v43  ;;  %v4806_v63 = vmax.f32 %v10714_v57, 0.0 }
 0x186   : > { %4258 = vmatpush.bf16.msra.mxu3 %v6919_v12  ;;  %v6486_v7 = vld [vmem:[#allocation5 + $0x28] sm:$0xf]  ;;  %v9167_v3 = vld [vmem:[#allocation5 + $0x34] sm:$0xf0]  ;;  %v3886_v31 = vpop.f32.mrf.mxu3  ;;  %v6743_v27 = vor.u32 %v9231_v59, %v6742_v52 }
 0x187   : > { %4240 = vmatpush.bf16.msra.mxu2 %v6775_v30  ;;  %v6614_v4 = vld [vmem:[#allocation5 + $0x128] sm:$0xf]  ;;  %v3867_v12 = vpop.f32.mrf.mxu2  ;;  %v9199_v11 = vld [vmem:[#allocation5 + $0x134] sm:$0xf0]  ;;  %v6487_v44 = vor.u32 %v9167_v3, %v6486_v7 }
 0x188   : > { %4202 = vmatpush.bf16.msra.mxu0 %v6519_v32  ;;  %v6870_v15 = vld [vmem:[#allocation5 + $0x328] sm:$0xf]  ;;  %v9263_v2 = vld [vmem:[#allocation5 + $0x334] sm:$0xf0]  ;;  %v3868_v19 = vadd.f32 %v3867_v12, %v3849_v47  ;;  %v3832_v20 = vpop.f32.mrf.mxu0  ;;  %v3851_v50 = vpop.f32.mrf.mxu1  ;;  %4154 = vmatmul.bf16.gmra.mxu1 %v10636_v58 }
 0x189   : > { %4221 = vmatpush.bf16.msra.mxu1 %v6647_v37  ;;  %v6726_v21 = vld [vmem:[#allocation5 + $0x208] sm:$0xf]  ;;  %v9227_v26 = vld [vmem:[#allocation5 + $0x214] sm:$0xf0]  ;;  %v3833_v56 = vadd.f32 %v3832_v20, %v10704_v16  ;;  %v6615_v37 = vor.u32 %v9199_v11, %v6614_v4  ;;  %4135 = vmatmul.bf16.gmra.mxu0 %v10634_v55 }
 0x18a   : > { %4259 = vmatpush.bf16.msra.mxu3 %v6903_v38  ;;  %v6470_v30 = vld [vmem:[#allocation5 + $0x8] sm:$0xf]  ;;  %v9163_v32 = vld [vmem:[#allocation5 + $0x14] sm:$0xf0]  ;;  %v3887_v34 = vadd.f32 %v3886_v31, %v3868_v19  ;;  %v6871_v38 = vor.u32 %v9263_v2, %v6870_v15 }
 0x18b   : > { %4241 = vmatpush.bf16.msra.mxu2 %v6759_v60  ;;  %v6598_v33 = vld [vmem:[#allocation5 + $0x108] sm:$0xf]  ;;  %v9195_v51 = vld [vmem:[#allocation5 + $0x114] sm:$0xf0]  ;;  %v3852_v47 = vadd.f32 %v3851_v50, %v3833_v56 }
 0x18c   : > { %4203 = vmatpush.bf16.msra.mxu0 %v6503_v49  ;;  %v6854_v41 = vld [vmem:[#allocation5 + $0x308] sm:$0xf]  ;;  %v9259_v36 = vld [vmem:[#allocation5 + $0x314] sm:$0xf0]  ;;  %v4810_v60 = vmax.f32 %v3887_v34, 0.0  ;;  %4173 = vmatmul.bf16.gmra.mxu2 %v10638_v62  ;;  %v6599_v31 = vor.u32 %v9195_v51, %v6598_v33 }
 0x18d   : > { %4222 = vmatpush.bf16.msra.mxu1 %v6631_v61  ;;  %v7350_v16 = vld [vmem:[#allocation5 + $0x6e8] sm:$0xf]  ;;  %v9383_v42 = vld [vmem:[#allocation5 + $0x6f4] sm:$0xf0]  ;;  %v6727_v61 = vor.u32 %v9227_v26, %v6726_v21  ;;  %v6855_v57 = vor.u32 %v9259_v36, %v6854_v41 }
 0x18e   : > { %4260 = vmatpush.bf16.msra.mxu3 %v6887_v10  ;;  %v7094_v43 = vld [vmem:[#allocation5 + $0x4e8] sm:$0xf]  ;;  %v11219_v49 = vld [vmem:[#allocation28_spill] sm:$0xff]  ;;  %v6471_v10 = vor.u32 %v9163_v32, %v6470_v30  ;;  %v10722_v12 = vpack.c.bf16 %v4810_v60, %v4806_v63  ;;  %v3889_v15 = vpop.f32.mrf.mxu3  ;;  %v7351_v2 = vor.u32 %v9383_v42, %v7350_v16 }
 0x18f   : > { %4192 = vmatmul.bf16.gmra.mxu3 %v11219_v49  ;;  %v9319_v52 = vld [vmem:[#allocation5 + $0x4f4] sm:$0xf0]  ;;  %v7222_v59 = vld [vmem:[#allocation5 + $0x5e8] sm:$0xf]  ;;  %4242 = vmatpush.bf16.msra.mxu2 %v6743_v27  ;;  %v3870_v11 = vpop.f32.mrf.mxu2 }
 0x190   : > { %4204 = vmatpush.bf16.msra.mxu0 %v6487_v44  ;;  %v9351_v7 = vld [vmem:[#allocation5 + $0x5f4] sm:$0xf0]  ;;  %v7478_v3 = vld [vmem:[#allocation5 + $0x7e8] sm:$0xf]  ;;  %11220 = vst [vmem:[#allocation28_spill] sm:$0xff] %v10722_v12  ;;  %v7095_v19 = vor.u32 %v9319_v52, %v7094_v43  ;;  %v3871_v56 = vadd.f32 %v3870_v11, %v3852_v47  ;;  %v3834_v27 = vpop.f32.mrf.mxu0  ;;  %v3853_v44 = vpop.f32.mrf.mxu1 }
 0x191   : > { %v9415_v4 = vld [vmem:[#allocation5 + $0x7f4] sm:$0xf0]  ;;  %4223 = vmatpush.bf16.msra.mxu1 %v6615_v37  ;;  %v7334_v20 = vld [vmem:[#allocation5 + $0x6c8] sm:$0xf]  ;;  %v7223_v21 = vor.u32 %v9351_v7, %v7222_v59  ;;  %v3835_v63 = vadd.f32 %v3834_v27, %v10707_v35  ;;  %v9942_v43 = vld [vmem:[#allocation7] sm:$0xf] }
 0x192   : > { %4261 = vmatpush.bf16.msra.mxu3 %v6871_v38  ;;  %v9379_v50 = vld [vmem:[#allocation5 + $0x6d4] sm:$0xf0]  ;;  %v7479_v26 = vor.u32 %v9415_v4, %v7478_v3  ;;  %v7078_v30 = vld [vmem:[#allocation5 + $0x4c8] sm:$0xf]  ;;  %v3890_v51 = vadd.f32 %v3889_v15, %v3871_v56  ;;  %v10725_v60 = vperm.slane %v9942_v43, 1 }
 0x193   : > { %v9315_v32 = vld [vmem:[#allocation5 + $0x4d4] sm:$0xf0]  ;;  %v7206_v34 = vld [vmem:[#allocation5 + $0x5c8] sm:$0xf]  ;;  %4243 = vmatpush.bf16.msra.mxu2 %v6727_v61  ;;  %v3854_v41 = vadd.f32 %v3853_v44, %v3835_v63  ;;  %v7335_v36 = vor.u32 %v9379_v50, %v7334_v20 }
 0x194   : > { %4205 = vmatpush.bf16.msra.mxu0 %v6471_v10  ;;  %v9347_v33 = vld [vmem:[#allocation5 + $0x5d4] sm:$0xf0]  ;;  %v7462_v37 = vld [vmem:[#allocation5 + $0x7c8] sm:$0xf]  ;;  %v7079_v47 = vor.u32 %v9315_v32, %v7078_v30 }
 0x195   : > { %v9411_v38 = vld [vmem:[#allocation5 + $0x7d4] sm:$0xf0]  ;;  %4224 = vmatpush.bf16.msra.mxu1 %v6599_v31  ;;  %v7207_v16 = vor.u32 %v9347_v33, %v7206_v34  ;;  %v7318_v35 = vld [vmem:[#allocation5 + $0x6a8] sm:$0xf] }
 0x196   : > { %4262 = vmatpush.bf16.msra.mxu3 %v6855_v57  ;;  %v7463_v42 = vor.u32 %v9411_v38, %v7462_v37  ;;  %v9375_v52 = vld [vmem:[#allocation5 + $0x6b4] sm:$0xf0]  ;;  %v7062_v59 = vld [vmem:[#allocation5 + $0x4a8] sm:$0xf]  ;;  %v3891_v3 = vpop.f32.mrf.mxu3 }
 0x197   : > { %4312 = vmatpush.bf16.msrb.mxu2 %v7351_v2  ;;  %v9311_v61 = vld [vmem:[#allocation5 + $0x4b4] sm:$0xf0]  ;;  %v7190_v10 = vld [vmem:[#allocation5 + $0x5a8] sm:$0xf]  ;;  %v3872_v7 = vpop.f32.mrf.mxu2  ;;  %v7319_v20 = vor.u32 %v9375_v52, %v7318_v35 }
 0x198   : > { %4274 = vmatpush.bf16.msrb.mxu0 %v7095_v19  ;;  %v9343_v4 = vld [vmem:[#allocation5 + $0x5b4] sm:$0xf0]  ;;  %v7446_v31 = vld [vmem:[#allocation5 + $0x7a8] sm:$0xf]  ;;  %v3873_v11 = vadd.f32 %v3872_v7, %v3854_v41  ;;  %v3903_v15 = vpop.f32.mrf.mxu0  ;;  %v3922_v2 = vpop.f32.mrf.mxu1  ;;  %v7063_v50 = vor.u32 %v9311_v61, %v7062_v59  ;;  %4225 = vmatmul.bf16.vlgmr.msra.gmra.mxu1 %v10496_v53  ;;  %v4814_v41 = vmax.f32 %v3890_v51, 0.0 }
 0x199   : > { %4293 = vmatpush.bf16.msrb.mxu1 %v7223_v21  ;;  %v9407_v57 = vld [vmem:[#allocation5 + $0x7b4] sm:$0xf0]  ;;  %v3904_v19 = vadd.f32 %v3903_v15, %v10725_v60  ;;  %v7302_v56 = vld [vmem:[#allocation5 + $0x688] sm:$0xf]  ;;  %v7191_v21 = vor.u32 %v9343_v4, %v7190_v10  ;;  %4206 = vmatmul.bf16.vlgmr.msra.gmra.mxu0 %v10494_v48 }
 0x19a   : > { %4331 = vmatpush.bf16.msrb.mxu3 %v7479_v26  ;;  %v9371_v27 = vld [vmem:[#allocation5 + $0x694] sm:$0xf0]  ;;  %v3892_v44 = vadd.f32 %v3891_v3, %v3873_v11  ;;  %v7447_v26 = vor.u32 %v9407_v57, %v7446_v31  ;;  %v7046_v30 = vld [vmem:[#allocation5 + $0x488] sm:$0xf] }
 0x19b   : > { %4313 = vmatpush.bf16.msrb.mxu2 %v7335_v36  ;;  %v9307_v32 = vld [vmem:[#allocation5 + $0x494] sm:$0xf0]  ;;  %v7174_v34 = vld [vmem:[#allocation5 + $0x588] sm:$0xf]  ;;  %v3923_v63 = vadd.f32 %v3922_v2, %v3904_v19 }
 0x19c   : > { %4275 = vmatpush.bf16.msrb.mxu0 %v7079_v47  ;;  %v9339_v33 = vld [vmem:[#allocation5 + $0x594] sm:$0xf0]  ;;  %v7430_v37 = vld [vmem:[#allocation5 + $0x788] sm:$0xf]  ;;  %v4818_v36 = vmax.f32 %v3892_v44, 0.0  ;;  %4244 = vmatmul.bf16.vlgmr.msra.gmra.mxu2 %v10498_v54 }
 0x19d   : > { %4294 = vmatpush.bf16.msrb.mxu1 %v7207_v16  ;;  %v9403_v38 = vld [vmem:[#allocation5 + $0x794] sm:$0xf0]  ;;  %v11221_v47 = vld [vmem:[#allocation23_spill] sm:$0xff]  ;;  %v7303_v16 = vor.u32 %v9371_v27, %v7302_v56  ;;  %v7175_v59 = vor.u32 %v9339_v33, %v7174_v34 }
 0x19e   : > { %4332 = vmatpush.bf16.msrb.mxu3 %v7463_v42  ;;  %v7047_v42 = vor.u32 %v9307_v32, %v7046_v30  ;;  %v7286_v43 = vld [vmem:[#allocation5 + $0x668] sm:$0xf]  ;;  %v9367_v35 = vld [vmem:[#allocation5 + $0x674] sm:$0xf0]  ;;  %v10732_v52 = vpack.c.bf16 %v4818_v36, %v4814_v41  ;;  %v7431_v61 = vor.u32 %v9403_v38, %v7430_v37  ;;  %v3960_v4 = vpop.f32.mrf.mxu3 }
 0x19f   : > { %4263 = vmatmul.bf16.vlgmr.msra.gmra.mxu3 %v11221_v47  ;;  %4314 = vmatpush.bf16.msrb.mxu2 %v7319_v20  ;;  %v7030_v10 = vld [vmem:[#allocation5 + $0x468] sm:$0xf]  ;;  %v9303_v7 = vld [vmem:[#allocation5 + $0x474] sm:$0xf0]  ;;  %v3941_v3 = vpop.f32.mrf.mxu2 }
 0x1a0   : > { %4276 = vmatpush.bf16.msrb.mxu0 %v7063_v50  ;;  %11222 = vst [vmem:[#allocation29_spill] sm:$0xff] %v10732_v52  ;;  %v7158_v51 = vld [vmem:[#allocation5 + $0x568] sm:$0xf]  ;;  %v9335_v31 = vld [vmem:[#allocation5 + $0x574] sm:$0xf0]  ;;  %v3942_v15 = vadd.f32 %v3941_v3, %v3923_v63  ;;  %v3905_v2 = vpop.f32.mrf.mxu0  ;;  %v3924_v19 = vpop.f32.mrf.mxu1  ;;  %v7287_v50 = vor.u32 %v9367_v35, %v7286_v43  ;;  %v7031_v56 = vor.u32 %v9303_v7, %v7030_v10 }
 0x1a1   : > { %4295 = vmatpush.bf16.msrb.mxu1 %v7191_v21  ;;  %v7414_v57 = vld [vmem:[#allocation5 + $0x768] sm:$0xf]  ;;  %v9399_v11 = vld [vmem:[#allocation5 + $0x774] sm:$0xf0]  ;;  %v3906_v20 = vadd.f32 %v3905_v2, %v10725_v60 }
 0x1a2   : > { %4333 = vmatpush.bf16.msrb.mxu3 %v7447_v26  ;;  %v7270_v27 = vld [vmem:[#allocation5 + $0x648] sm:$0xf]  ;;  %v9363_v44 = vld [vmem:[#allocation5 + $0x654] sm:$0xf0]  ;;  %v10735_v21 = vadd.f32 %v3960_v4, %v3942_v15  ;;  %v7159_v26 = vor.u32 %v9335_v31, %v7158_v51  ;;  %v7415_v30 = vor.u32 %v9399_v11, %v7414_v57 }
 0x1a3   : > { %4315 = vmatpush.bf16.msrb.mxu2 %v7303_v16  ;;  %v7014_v32 = vld [vmem:[#allocation5 + $0x448] sm:$0xf]  ;;  %v9299_v34 = vld [vmem:[#allocation5 + $0x454] sm:$0xf0]  ;;  %v3925_v63 = vadd.f32 %v3924_v19, %v3906_v20  ;;  %v7271_v36 = vor.u32 %v9363_v44, %v7270_v27 }
 0x1a4   : > { %4277 = vmatpush.bf16.msrb.mxu0 %v7047_v42  ;;  %v7142_v33 = vld [vmem:[#allocation5 + $0x548] sm:$0xf]  ;;  %v9331_v37 = vld [vmem:[#allocation5 + $0x554] sm:$0xf0]  ;;  %v7015_v16 = vor.u32 %v9299_v34, %v7014_v32 }
 0x1a5   : > { %4296 = vmatpush.bf16.msrb.mxu1 %v7175_v59  ;;  %v7398_v38 = vld [vmem:[#allocation5 + $0x748] sm:$0xf]  ;;  %v9395_v41 = vld [vmem:[#allocation5 + $0x754] sm:$0xf0]  ;;  %v7143_v35 = vor.u32 %v9331_v37, %v7142_v33 }
 0x1a6   : > { %4334 = vmatpush.bf16.msrb.mxu3 %v7431_v61  ;;  %v7254_v42 = vld [vmem:[#allocation5 + $0x628] sm:$0xf]  ;;  %v9359_v43 = vld [vmem:[#allocation5 + $0x634] sm:$0xf0]  ;;  %v7399_v59 = vor.u32 %v9395_v41, %v7398_v38  ;;  %v3962_v3 = vpop.f32.mrf.mxu3 }
 0x1a7   : > { %4316 = vmatpush.bf16.msrb.mxu2 %v7287_v50  ;;  %v6998_v61 = vld [vmem:[#allocation5 + $0x428] sm:$0xf]  ;;  %v9295_v10 = vld [vmem:[#allocation5 + $0x434] sm:$0xf0]  ;;  %v3943_v51 = vpop.f32.mrf.mxu2  ;;  %v7255_v50 = vor.u32 %v9359_v43, %v7254_v42 }
 0x1a8   : > { %4278 = vmatpush.bf16.msrb.mxu0 %v7031_v56  ;;  %v7126_v7 = vld [vmem:[#allocation5 + $0x528] sm:$0xf]  ;;  %v9327_v4 = vld [vmem:[#allocation5 + $0x534] sm:$0xf0]  ;;  %v3944_v11 = vadd.f32 %v3943_v51, %v3925_v63  ;;  %v3908_v15 = vpop.f32.mrf.mxu0  ;;  %v3927_v2 = vpop.f32.mrf.mxu1  ;;  %v6999_v56 = vor.u32 %v9295_v10, %v6998_v61 }
 0x1a9   : > { %4297 = vmatpush.bf16.msrb.mxu1 %v7159_v26  ;;  %v7382_v31 = vld [vmem:[#allocation5 + $0x728] sm:$0xf]  ;;  %v9391_v57 = vld [vmem:[#allocation5 + $0x734] sm:$0xf0]  ;;  %v3909_v20 = vadd.f32 %v3908_v15, %v10725_v60  ;;  %v7127_v32 = vor.u32 %v9327_v4, %v7126_v7 }
 0x1aa   : > { %4335 = vmatpush.bf16.msrb.mxu3 %v7415_v30  ;;  %v7238_v19 = vld [vmem:[#allocation5 + $0x608] sm:$0xf]  ;;  %v9355_v27 = vld [vmem:[#allocation5 + $0x614] sm:$0xf0]  ;;  %v10738_v30 = vadd.f32 %v3962_v3, %v3944_v11  ;;  %v7383_v34 = vor.u32 %v9391_v57, %v7382_v31 }
 0x1ab   : > { %4317 = vmatpush.bf16.msrb.mxu2 %v7271_v36  ;;  %v6982_v44 = vld [vmem:[#allocation5 + $0x408] sm:$0xf]  ;;  %v9291_v26 = vld [vmem:[#allocation5 + $0x414] sm:$0xf0]  ;;  %v3928_v38 = vadd.f32 %v3927_v2, %v3909_v20  ;;  %v7239_v7 = vor.u32 %v9355_v27, %v7238_v19 }
 0x1ac   : > { %4279 = vmatpush.bf16.msrb.mxu0 %v7015_v16  ;;  %v7110_v33 = vld [vmem:[#allocation5 + $0x508] sm:$0xf]  ;;  %v9323_v63 = vld [vmem:[#allocation5 + $0x514] sm:$0xf0]  ;;  %v6983_v3 = vor.u32 %v9291_v26, %v6982_v44 }
 0x1ad   : > { %4298 = vmatpush.bf16.msrb.mxu1 %v7143_v35  ;;  %v7366_v37 = vld [vmem:[#allocation5 + $0x708] sm:$0xf]  ;;  %v11223_v41 = vld [vmem:[#allocation24_spill] sm:$0xff]  ;;  %v11224_v51 = vld [vmem:[#allocation25_spill] sm:$0xff]  ;;  %v7111_v11 = vor.u32 %v9323_v63, %v7110_v33 }
 0x1ae   : > { %4336 = vmatpush.bf16.msrb.mxu3 %v7399_v59  ;;  %4211 = vmatmul.bf16.gmra.mxu0 %v11223_v41  ;;  %v9387_v36 = vld [vmem:[#allocation5 + $0x714] sm:$0xf0]  ;;  %v7862_v16 = vld [vmem:[#allocation5 + $0xae8] sm:$0xf]  ;;  %v3965_v20 = vpop.f32.mrf.mxu3 }
 0x1af   : > { %4230 = vmatmul.bf16.gmra.mxu1 %v11224_v51  ;;  %v9511_v42 = vld [vmem:[#allocation5 + $0xaf4] sm:$0xf0]  ;;  %v11225_v43 = vld [vmem:[#allocation26_spill] sm:$0xff]  ;;  %v11226_v61 = vld [vmem:[#allocation27_spill] sm:$0xff]  ;;  %4318 = vmatpush.bf16.msrb.mxu2 %v7255_v50  ;;  %v7367_v15 = vor.u32 %v9387_v36, %v7366_v37  ;;  %v3946_v2 = vpop.f32.mrf.mxu2 }
 0x1b0   : > { %4249 = vmatmul.bf16.gmra.mxu2 %v11225_v43  ;;  %4268 = vmatmul.bf16.gmra.mxu3 %v11226_v61  ;;  %v7606_v10 = vld [vmem:[#allocation5 + $0x8e8] sm:$0xf]  ;;  %v9447_v35 = vld [vmem:[#allocation5 + $0x8f4] sm:$0xf0]  ;;  %v7863_v52 = vor.u32 %v9511_v42, %v7862_v16  ;;  %v3947_v51 = vadd.f32 %v3946_v2, %v3928_v38  ;;  %v3910_v41 = vpop.f32.mrf.mxu0  ;;  %v3929_v47 = vpop.f32.mrf.mxu1 }
 0x1b1   : > { %v7734_v59 = vld [vmem:[#allocation5 + $0x9e8] sm:$0xf]  ;;  %4280 = vmatpush.bf16.msrb.mxu0 %v6999_v56  ;;  %v9479_v4 = vld [vmem:[#allocation5 + $0x9f4] sm:$0xf0]  ;;  %4299 = vmatpush.bf16.msrb.mxu1 %v7127_v32  ;;  %v7607_v12 = vor.u32 %v9447_v35, %v7606_v10  ;;  %v3911_v26 = vadd.f32 %v3910_v41, %v10725_v60 }
 0x1b2   : > { %v7990_v31 = vld [vmem:[#allocation5 + $0xbe8] sm:$0xf]  ;;  %v9543_v57 = vld [vmem:[#allocation5 + $0xbf4] sm:$0xf0]  ;;  %4337 = vmatpush.bf16.msrb.mxu3 %v7383_v34  ;;  %v7735_v50 = vor.u32 %v9479_v4, %v7734_v59  ;;  %v10745_v63 = vadd.f32 %v3965_v20, %v3947_v51 }
 0x1b3   : > { %v7846_v43 = vld [vmem:[#allocation5 + $0xac8] sm:$0xf]  ;;  %v9507_v61 = vld [vmem:[#allocation5 + $0xad4] sm:$0xf0]  ;;  %v7991_v56 = vor.u32 %v9543_v57, %v7990_v31  ;;  %4319 = vmatpush.bf16.msrb.mxu2 %v7239_v7  ;;  %v3930_v37 = vadd.f32 %v3929_v47, %v3911_v26 }
 0x1b4   : > { %v7590_v19 = vld [vmem:[#allocation5 + $0x8c8] sm:$0xf]  ;;  %v9443_v27 = vld [vmem:[#allocation5 + $0x8d4] sm:$0xf0]  ;;  %v7847_v38 = vor.u32 %v9507_v61, %v7846_v43 }
 0x1b5   : > { %v7718_v44 = vld [vmem:[#allocation5 + $0x9c8] sm:$0xf]  ;;  %4281 = vmatpush.bf16.msrb.mxu0 %v6983_v3  ;;  %v9475_v32 = vld [vmem:[#allocation5 + $0x9d4] sm:$0xf0]  ;;  %4300 = vmatpush.bf16.msrb.mxu1 %v7111_v11  ;;  %v7591_v36 = vor.u32 %v9443_v27, %v7590_v19 }
 0x1b6   : > { %v7974_v34 = vld [vmem:[#allocation5 + $0xbc8] sm:$0xf]  ;;  %v9539_v33 = vld [vmem:[#allocation5 + $0xbd4] sm:$0xf0]  ;;  %4338 = vmatpush.bf16.msrb.mxu3 %v7367_v15  ;;  %v7719_v16 = vor.u32 %v9475_v32, %v7718_v44  ;;  %v3967_v3 = vpop.f32.mrf.mxu3 }
 0x1b7   : > { %4388 = vmatpush.bf16.msra.mxu2 %v7863_v52  ;;  %v7975_v42 = vor.u32 %v9539_v33, %v7974_v34  ;;  %v7830_v10 = vld [vmem:[#allocation5 + $0xaa8] sm:$0xf]  ;;  %v9503_v60 = vld [vmem:[#allocation5 + $0xab4] sm:$0xf0]  ;;  %v3948_v7 = vpop.f32.mrf.mxu2 }
 0x1b8   : > { %v7574_v41 = vld [vmem:[#allocation5 + $0x8a8] sm:$0xf]  ;;  %v9439_v35 = vld [vmem:[#allocation5 + $0x8b4] sm:$0xf0]  ;;  %v3949_v52 = vadd.f32 %v3948_v7, %v3930_v37  ;;  %v3998_v43 = vpop.f32.mrf.mxu1  ;;  %v7831_v31 = vor.u32 %v9503_v60, %v7830_v10 }
 0x1b9   : > { %4350 = vmatpush.bf16.msra.mxu0 %v7607_v12  ;;  %4369 = vmatpush.bf16.msra.mxu1 %v7735_v50  ;;  %v7702_v59 = vld [vmem:[#allocation5 + $0x9a8] sm:$0xf]  ;;  %v9471_v51 = vld [vmem:[#allocation5 + $0x9b4] sm:$0xf0]  ;;  %v3979_v12 = vpop.f32.mrf.mxu0  ;;  %v7575_v57 = vor.u32 %v9439_v35, %v7574_v41 }
 0x1ba   : > { %4407 = vmatpush.bf16.msra.mxu3 %v7991_v56  ;;  %v7958_v4 = vld [vmem:[#allocation5 + $0xba8] sm:$0xf]  ;;  %v9535_v47 = vld [vmem:[#allocation5 + $0xbb4] sm:$0xf0]  ;;  %v3980_v61 = vadd.f32 %v3979_v12, %v10735_v21  ;;  %v10748_v2 = vadd.f32 %v3967_v3, %v3949_v52  ;;  %v7703_v20 = vor.u32 %v9471_v51, %v7702_v59 }
 0x1bb   : > { %4389 = vmatpush.bf16.msra.mxu2 %v7847_v38  ;;  %v7814_v11 = vld [vmem:[#allocation5 + $0xa88] sm:$0xf]  ;;  %v9499_v15 = vld [vmem:[#allocation5 + $0xa94] sm:$0xf0]  ;;  %v7959_v50 = vor.u32 %v9535_v47, %v7958_v4 }
 0x1bc   : > { %v7558_v56 = vld [vmem:[#allocation5 + $0x888] sm:$0xf]  ;;  %v9435_v19 = vld [vmem:[#allocation5 + $0x894] sm:$0xf0]  ;;  %v3999_v44 = vadd.f32 %v3998_v43, %v3980_v61  ;;  %v7815_v21 = vor.u32 %v9499_v15, %v7814_v11 }
 0x1bd   : > { %4351 = vmatpush.bf16.msra.mxu0 %v7591_v36  ;;  %4370 = vmatpush.bf16.msra.mxu1 %v7719_v16  ;;  %v7686_v27 = vld [vmem:[#allocation5 + $0x988] sm:$0xf]  ;;  %v9467_v26 = vld [vmem:[#allocation5 + $0x994] sm:$0xf0]  ;;  %v7559_v33 = vor.u32 %v9435_v19, %v7558_v56 }
 0x1be   : > { %4408 = vmatpush.bf16.msra.mxu3 %v7975_v42  ;;  %4282 = vmatmul.bf16.vlgmr.msrb.gmra.mxu0 %v10534_v0  ;;  %v7942_v32 = vld [vmem:[#allocation5 + $0xb88] sm:$0xf]  ;;  %v9531_v34 = vld [vmem:[#allocation5 + $0xb94] sm:$0xf0]  ;;  %v7687_v36 = vor.u32 %v9467_v26, %v7686_v27  ;;  %v4036_v35 = vpop.f32.mrf.mxu3 }
 0x1bf   : > { %4301 = vmatmul.bf16.vlgmr.msrb.gmra.mxu1 %v10536_v1  ;;  %4390 = vmatpush.bf16.msra.mxu2 %v7831_v31  ;;  %v7798_v37 = vld [vmem:[#allocation5 + $0xa68] sm:$0xf]  ;;  %v9495_v38 = vld [vmem:[#allocation5 + $0xa74] sm:$0xf0]  ;;  %v7943_v16 = vor.u32 %v9531_v34, %v7942_v32  ;;  %v4017_v41 = vpop.f32.mrf.mxu2 }
 0x1c0   : > { %4320 = vmatmul.bf16.vlgmr.msrb.gmra.mxu2 %v10538_v5  ;;  %4339 = vmatmul.bf16.vlgmr.msrb.gmra.mxu3 %v10540_v6  ;;  %v7542_v42 = vld [vmem:[#allocation5 + $0x868] sm:$0xf]  ;;  %v9431_v10 = vld [vmem:[#allocation5 + $0x874] sm:$0xf0]  ;;  %v4018_v51 = vadd.f32 %v4017_v41, %v3999_v44  ;;  %v4000_v47 = vpop.f32.mrf.mxu1  ;;  %v7799_v12 = vor.u32 %v9495_v38, %v7798_v37 }
 0x1c1   : > { %4352 = vmatpush.bf16.msra.mxu0 %v7575_v57  ;;  %4371 = vmatpush.bf16.msra.mxu1 %v7703_v20  ;;  %v7670_v60 = vld [vmem:[#allocation5 + $0x968] sm:$0xf]  ;;  %v9463_v59 = vld [vmem:[#allocation5 + $0x974] sm:$0xf0]  ;;  %v3981_v4 = vpop.f32.mrf.mxu0  ;;  %v7543_v43 = vor.u32 %v9431_v10, %v7542_v42 }
 0x1c2   : > { %4409 = vmatpush.bf16.msra.mxu3 %v7959_v50  ;;  %v7926_v7 = vld [vmem:[#allocation5 + $0xb68] sm:$0xf]  ;;  %v9527_v3 = vld [vmem:[#allocation5 + $0xb74] sm:$0xf0]  ;;  %v3982_v52 = vadd.f32 %v3981_v4, %v10738_v30  ;;  %v10755_v57 = vadd.f32 %v4036_v35, %v4018_v51  ;;  %v7671_v11 = vor.u32 %v9463_v59, %v7670_v60 }
 0x1c3   : > { %4391 = vmatpush.bf16.msra.mxu2 %v7815_v21  ;;  %v7782_v61 = vld [vmem:[#allocation5 + $0xa48] sm:$0xf]  ;;  %v9491_v31 = vld [vmem:[#allocation5 + $0xa54] sm:$0xf0]  ;;  %v7927_v15 = vor.u32 %v9527_v3, %v7926_v7 }
 0x1c4   : > { %v7526_v20 = vld [vmem:[#allocation5 + $0x848] sm:$0xf]  ;;  %v9427_v50 = vld [vmem:[#allocation5 + $0x854] sm:$0xf0]  ;;  %v4001_v19 = vadd.f32 %v4000_v47, %v3982_v52  ;;  %v7783_v30 = vor.u32 %v9491_v31, %v7782_v61 }
 0x1c5   : > { %4353 = vmatpush.bf16.msra.mxu0 %v7559_v33  ;;  %4372 = vmatpush.bf16.msra.mxu1 %v7687_v36  ;;  %v7654_v56 = vld [vmem:[#allocation5 + $0x948] sm:$0xf]  ;;  %v9459_v27 = vld [vmem:[#allocation5 + $0x954] sm:$0xf0]  ;;  %v7527_v32 = vor.u32 %v9427_v50, %v7526_v20 }
 0x1c6   : > { %4410 = vmatpush.bf16.msra.mxu3 %v7943_v16  ;;  %v7910_v44 = vld [vmem:[#allocation5 + $0xb48] sm:$0xf]  ;;  %v9523_v26 = vld [vmem:[#allocation5 + $0xb54] sm:$0xf0]  ;;  %v7655_v33 = vor.u32 %v9459_v27, %v7654_v56  ;;  %v4038_v10 = vpop.f32.mrf.mxu3 }
 0x1c7   : > { %4392 = vmatpush.bf16.msra.mxu2 %v7799_v12  ;;  %v7766_v34 = vld [vmem:[#allocation5 + $0xa28] sm:$0xf]  ;;  %v9487_v21 = vld [vmem:[#allocation5 + $0xa34] sm:$0xf0]  ;;  %v7911_v37 = vor.u32 %v9523_v26, %v7910_v44  ;;  %v4019_v42 = vpop.f32.mrf.mxu2 }
 0x1c8   : > { %v7510_v38 = vld [vmem:[#allocation5 + $0x828] sm:$0xf]  ;;  %v9423_v36 = vld [vmem:[#allocation5 + $0x834] sm:$0xf0]  ;;  %v4020_v59 = vadd.f32 %v4019_v42, %v4001_v19  ;;  %v4003_v3 = vpop.f32.mrf.mxu1  ;;  %v7767_v47 = vor.u32 %v9487_v21, %v7766_v34 }
 0x1c9   : > { %4354 = vmatpush.bf16.msra.mxu0 %v7543_v43  ;;  %4373 = vmatpush.bf16.msra.mxu1 %v7671_v11  ;;  %v7638_v16 = vld [vmem:[#allocation5 + $0x928] sm:$0xf]  ;;  %v9455_v60 = vld [vmem:[#allocation5 + $0x934] sm:$0xf0]  ;;  %v3984_v7 = vpop.f32.mrf.mxu0  ;;  %v7511_v52 = vor.u32 %v9423_v36, %v7510_v38 }
 0x1ca   : > { %4411 = vmatpush.bf16.msra.mxu3 %v7927_v15  ;;  %v7894_v41 = vld [vmem:[#allocation5 + $0xb28] sm:$0xf]  ;;  %v9519_v35 = vld [vmem:[#allocation5 + $0xb34] sm:$0xf0]  ;;  %v3985_v4 = vadd.f32 %v3984_v7, %v10745_v63  ;;  %v10758_v31 = vadd.f32 %v4038_v10, %v4020_v59  ;;  %v7639_v11 = vor.u32 %v9455_v60, %v7638_v16 }
 0x1cb   : > { %v7750_v51 = vld [vmem:[#allocation5 + $0xa08] sm:$0xf]  ;;  %4393 = vmatpush.bf16.msra.mxu2 %v7783_v30  ;;  %v9483_v12 = vld [vmem:[#allocation5 + $0xa14] sm:$0xf0]  ;;  %v7895_v15 = vor.u32 %v9519_v35, %v7894_v41 }
 0x1cc   : > { %v7494_v43 = vld [vmem:[#allocation5 + $0x808] sm:$0xf]  ;;  %v9419_v61 = vld [vmem:[#allocation5 + $0x814] sm:$0xf0]  ;;  %v4004_v19 = vadd.f32 %v4003_v3, %v3985_v4  ;;  %v7751_v34 = vor.u32 %v9483_v12, %v7750_v51 }
 0x1cd   : > { %4355 = vmatpush.bf16.msra.mxu0 %v7527_v32  ;;  %4374 = vmatpush.bf16.msra.mxu1 %v7655_v33  ;;  %v7622_v20 = vld [vmem:[#allocation5 + $0x908] sm:$0xf]  ;;  %v9451_v50 = vld [vmem:[#allocation5 + $0x914] sm:$0xf0]  ;;  %v7495_v21 = vor.u32 %v9419_v61, %v7494_v43 }
 0x1ce   : > { %4412 = vmatpush.bf16.msra.mxu3 %v7911_v37  ;;  %v7878_v56 = vld [vmem:[#allocation5 + $0xb08] sm:$0xf]  ;;  %4287 = vmatmul.bf16.gmra.mxu0 %v10554_v8  ;;  %v9515_v63 = vld [vmem:[#allocation5 + $0xb14] sm:$0xf0]  ;;  %v7623_v36 = vor.u32 %v9451_v50, %v7622_v20  ;;  %v4041_v10 = vpop.f32.mrf.mxu3 }
 0x1cf   : > { %4306 = vmatmul.bf16.gmra.mxu1 %v10556_v9  ;;  %v8374_v27 = vld [vmem:[#allocation5 + $0xee8] sm:$0xf]  ;;  %v9639_v44 = vld [vmem:[#allocation5 + $0xef4] sm:$0xf0]  ;;  %4394 = vmatpush.bf16.msra.mxu2 %v7767_v47  ;;  %v7879_v16 = vor.u32 %v9515_v63, %v7878_v56  ;;  %v4022_v42 = vpop.f32.mrf.mxu2 }
 0x1d0   : > { %4325 = vmatmul.bf16.gmra.mxu2 %v10558_v13  ;;  %4344 = vmatmul.bf16.gmra.mxu3 %v10560_v14  ;;  %v8118_v26 = vld [vmem:[#allocation5 + $0xce8] sm:$0xf]  ;;  %v9575_v30 = vld [vmem:[#allocation5 + $0xcf4] sm:$0xf0]  ;;  %v8375_v60 = vor.u32 %v9639_v44, %v8374_v27  ;;  %v4023_v7 = vadd.f32 %v4022_v42, %v4004_v19  ;;  %v4005_v4 = vpop.f32.mrf.mxu1 }
 0x1d1   : > { %v8246_v32 = vld [vmem:[#allocation5 + $0xde8] sm:$0xf]  ;;  %4356 = vmatpush.bf16.msra.mxu0 %v7511_v52  ;;  %v9607_v33 = vld [vmem:[#allocation5 + $0xdf4] sm:$0xf0]  ;;  %4375 = vmatpush.bf16.msra.mxu1 %v7639_v11  ;;  %v8119_v41 = vor.u32 %v9575_v30, %v8118_v26  ;;  %v3986_v3 = vpop.f32.mrf.mxu0 }
 0x1d2   : > { %v8502_v37 = vld [vmem:[#allocation5 + $0xfe8] sm:$0xf]  ;;  %v9671_v38 = vld [vmem:[#allocation5 + $0xff4] sm:$0xf0]  ;;  %4413 = vmatpush.bf16.msra.mxu3 %v7895_v15  ;;  %v8247_v47 = vor.u32 %v9607_v33, %v8246_v32  ;;  %v3987_v61 = vadd.f32 %v3986_v3, %v10748_v2  ;;  %v10765_v50 = vadd.f32 %v4041_v10, %v4023_v7 }
 0x1d3   : > { %v8358_v35 = vld [vmem:[#allocation5 + $0xec8] sm:$0xf]  ;;  %v9635_v59 = vld [vmem:[#allocation5 + $0xed4] sm:$0xf0]  ;;  %v8503_v52 = vor.u32 %v9671_v38, %v8502_v37  ;;  %4395 = vmatpush.bf16.msra.mxu2 %v7751_v34 }
 0x1d4   : > { %v8102_v51 = vld [vmem:[#allocation5 + $0xcc8] sm:$0xf]  ;;  %v9571_v12 = vld [vmem:[#allocation5 + $0xcd4] sm:$0xf0]  ;;  %v4006_v56 = vadd.f32 %v4005_v4, %v3987_v61  ;;  %v8359_v19 = vor.u32 %v9635_v59, %v8358_v35 }
 0x1d5   : > { %v8230_v43 = vld [vmem:[#allocation5 + $0xdc8] sm:$0xf]  ;;  %4357 = vmatpush.bf16.msra.mxu0 %v7495_v21  ;;  %v9603_v11 = vld [vmem:[#allocation5 + $0xdd4] sm:$0xf0]  ;;  %4376 = vmatpush.bf16.msra.mxu1 %v7623_v36  ;;  %v8103_v63 = vor.u32 %v9571_v12, %v8102_v51 }
 0x1d6   : > { %v8486_v15 = vld [vmem:[#allocation5 + $0xfc8] sm:$0xf]  ;;  %v9667_v20 = vld [vmem:[#allocation5 + $0xfd4] sm:$0xf0]  ;;  %4414 = vmatpush.bf16.msra.mxu3 %v7879_v16  ;;  %v8231_v27 = vor.u32 %v9603_v11, %v8230_v43  ;;  %v4043_v33 = vpop.f32.mrf.mxu3 }
 0x1d7   : > { %4464 = vmatpush.bf16.msrb.mxu2 %v8375_v60  ;;  %v8487_v44 = vor.u32 %v9667_v20, %v8486_v15  ;;  %v8342_v26 = vld [vmem:[#allocation5 + $0xea8] sm:$0xf]  ;;  %v9631_v2 = vld [vmem:[#allocation5 + $0xeb4] sm:$0xf0]  ;;  %v4024_v21 = vpop.f32.mrf.mxu2 }
 0x1d8   : > { %v8086_v30 = vld [vmem:[#allocation5 + $0xca8] sm:$0xf]  ;;  %v9567_v32 = vld [vmem:[#allocation5 + $0xcb4] sm:$0xf0]  ;;  %v4025_v16 = vadd.f32 %v4024_v21, %v4006_v56  ;;  %v4074_v10 = vpop.f32.mrf.mxu1 }
 0x1d9   : > { %4426 = vmatpush.bf16.msrb.mxu0 %v8119_v41  ;;  %4445 = vmatpush.bf16.msrb.mxu1 %v8247_v47  ;;  %v8214_v34 = vld [vmem:[#allocation5 + $0xda8] sm:$0xf]  ;;  %v9599_v37 = vld [vmem:[#allocation5 + $0xdb4] sm:$0xf0]  ;;  %v4055_v42 = vpop.f32.mrf.mxu0  ;;  %v8343_v41 = vor.u32 %v9631_v2, %v8342_v26  ;;  %v8087_v35 = vor.u32 %v9567_v32, %v8086_v30 }
 0x1da   : > { %4483 = vmatpush.bf16.msrb.mxu3 %v8503_v52  ;;  %v8470_v38 = vld [vmem:[#allocation5 + $0xfa8] sm:$0xf]  ;;  %v9663_v36 = vld [vmem:[#allocation5 + $0xfb4] sm:$0xf0]  ;;  %v4056_v60 = vadd.f32 %v4055_v42, %v10755_v57  ;;  %v10768_v3 = vadd.f32 %v4043_v33, %v4025_v16  ;;  %v8215_v4 = vor.u32 %v9599_v37, %v8214_v34 }
 0x1db   : > { %4465 = vmatpush.bf16.msrb.mxu2 %v8359_v19  ;;  %v8326_v59 = vld [vmem:[#allocation5 + $0xe88] sm:$0xf]  ;;  %v9627_v7 = vld [vmem:[#allocation5 + $0xe94] sm:$0xf0]  ;;  %v8471_v47 = vor.u32 %v9663_v36, %v8470_v38 }
 0x1dc   : > { %v8070_v52 = vld [vmem:[#allocation5 + $0xc88] sm:$0xf]  ;;  %v9563_v51 = vld [vmem:[#allocation5 + $0xc94] sm:$0xf0]  ;;  %v4075_v43 = vadd.f32 %v4074_v10, %v4056_v60  ;;  %v8327_v57 = vor.u32 %v9627_v7, %v8326_v59 }
 0x1dd   : > { %4427 = vmatpush.bf16.msrb.mxu0 %v8103_v63  ;;  %4446 = vmatpush.bf16.msrb.mxu1 %v8231_v27  ;;  %v8198_v12 = vld [vmem:[#allocation5 + $0xd88] sm:$0xf]  ;;  %v9595_v61 = vld [vmem:[#allocation5 + $0xd94] sm:$0xf0]  ;;  %v8071_v20 = vor.u32 %v9563_v51, %v8070_v52 }
 0x1de   : > { %4484 = vmatpush.bf16.msrb.mxu3 %v8487_v44  ;;  %4358 = vmatmul.bf16.vlgmr.msra.gmra.mxu0 %v10574_v23  ;;  %v8454_v11 = vld [vmem:[#allocation5 + $0xf88] sm:$0xf]  ;;  %v9659_v15 = vld [vmem:[#allocation5 + $0xf94] sm:$0xf0]  ;;  %v8199_v63 = vor.u32 %v9595_v61, %v8198_v12  ;;  %v4112_v32 = vpop.f32.mrf.mxu3 }
 0x1df   : > { %4377 = vmatmul.bf16.vlgmr.msra.gmra.mxu1 %v10576_v24  ;;  %4466 = vmatpush.bf16.msrb.mxu2 %v8343_v41  ;;  %v8310_v56 = vld [vmem:[#allocation5 + $0xe68] sm:$0xf]  ;;  %v9623_v19 = vld [vmem:[#allocation5 + $0xe74] sm:$0xf0]  ;;  %v8455_v27 = vor.u32 %v9659_v15, %v8454_v11  ;;  %v4093_v30 = vpop.f32.mrf.mxu2 }
 0x1e0   : > { %4396 = vmatmul.bf16.vlgmr.msra.gmra.mxu2 %v10578_v28  ;;  %4415 = vmatmul.bf16.vlgmr.msra.gmra.mxu3 %v10580_v29  ;;  %v8054_v44 = vld [vmem:[#allocation5 + $0xc68] sm:$0xf]  ;;  %v9559_v26 = vld [vmem:[#allocation5 + $0xc74] sm:$0xf0]  ;;  %v4094_v37 = vadd.f32 %v4093_v30, %v4075_v43  ;;  %v4076_v36 = vpop.f32.mrf.mxu1  ;;  %v8311_v42 = vor.u32 %v9623_v19, %v8310_v56 }
 0x1e1   : > { %4428 = vmatpush.bf16.msrb.mxu0 %v8087_v35  ;;  %4447 = vmatpush.bf16.msrb.mxu1 %v8215_v4  ;;  %v8182_v2 = vld [vmem:[#allocation5 + $0xd68] sm:$0xf]  ;;  %v9591_v34 = vld [vmem:[#allocation5 + $0xd74] sm:$0xf0]  ;;  %v4057_v38 = vpop.f32.mrf.mxu0  ;;  %v8055_v10 = vor.u32 %v9559_v26, %v8054_v44 }
 0x1e2   : > { %4485 = vmatpush.bf16.msrb.mxu3 %v8471_v47  ;;  %v8438_v21 = vld [vmem:[#allocation5 + $0xf68] sm:$0xf]  ;;  %v9655_v33 = vld [vmem:[#allocation5 + $0xf74] sm:$0xf0]  ;;  %v4058_v16 = vadd.f32 %v4057_v38, %v10758_v31  ;;  %v10775_v35 = vadd.f32 %v4112_v32, %v4094_v37  ;;  %v8183_v59 = vor.u32 %v9591_v34, %v8182_v2 }
 0x1e3   : > { %4467 = vmatpush.bf16.msrb.mxu2 %v8327_v57  ;;  %v8294_v60 = vld [vmem:[#allocation5 + $0xe48] sm:$0xf]  ;;  %v9619_v41 = vld [vmem:[#allocation5 + $0xe54] sm:$0xf0]  ;;  %v8439_v7 = vor.u32 %v9655_v33, %v8438_v21 }
 0x1e4   : > { %v8038_v4 = vld [vmem:[#allocation5 + $0xc48] sm:$0xf]  ;;  %v9555_v47 = vld [vmem:[#allocation5 + $0xc54] sm:$0xf0]  ;;  %v4077_v51 = vadd.f32 %v4076_v36, %v4058_v16  ;;  %v8295_v31 = vor.u32 %v9619_v41, %v8294_v60 }
 0x1e5   : > { %4429 = vmatpush.bf16.msrb.mxu0 %v8071_v20  ;;  %4448 = vmatpush.bf16.msrb.mxu1 %v8199_v63  ;;  %v8166_v52 = vld [vmem:[#allocation5 + $0xd48] sm:$0xf]  ;;  %v9587_v12 = vld [vmem:[#allocation5 + $0xd54] sm:$0xf0]  ;;  %v8039_v11 = vor.u32 %v9555_v47, %v8038_v4 }
 0x1e6   : > { %4486 = vmatpush.bf16.msrb.mxu3 %v8455_v27  ;;  %v8422_v43 = vld [vmem:[#allocation5 + $0xf48] sm:$0xf]  ;;  %v9651_v61 = vld [vmem:[#allocation5 + $0xf54] sm:$0xf0]  ;;  %v8167_v20 = vor.u32 %v9587_v12, %v8166_v52  ;;  %v4114_v26 = vpop.f32.mrf.mxu3  ;;  %v9253_v12 = vld [vmem:[#allocation5 + $0x2ec] sm:$0xf] }
 0x1e7   : > { %4468 = vmatpush.bf16.msrb.mxu2 %v8311_v42  ;;  %v8278_v15 = vld [vmem:[#allocation5 + $0xe28] sm:$0xf]  ;;  %v9615_v57 = vld [vmem:[#allocation5 + $0xe34] sm:$0xf0]  ;;  %v8423_v56 = vor.u32 %v9651_v61, %v8422_v43  ;;  %v4095_v44 = vpop.f32.mrf.mxu2  ;;  %v6840_v43 = vld [vmem:[#allocation5 + $0x2f8] sm:$0xf0] }
 0x1e8   : > { %v8022_v19 = vld [vmem:[#allocation5 + $0xc28] sm:$0xf]  ;;  %v9551_v63 = vld [vmem:[#allocation5 + $0xc34] sm:$0xf0]  ;;  %v4096_v34 = vadd.f32 %v4095_v44, %v4077_v51  ;;  %v4079_v33 = vpop.f32.mrf.mxu1  ;;  %v8279_v36 = vor.u32 %v9615_v57, %v8278_v15  ;;  %v9189_v61 = vld [vmem:[#allocation5 + $0xec] sm:$0xf] }
 0x1e9   : > { %4430 = vmatpush.bf16.msrb.mxu0 %v8055_v10  ;;  %4449 = vmatpush.bf16.msrb.mxu1 %v8183_v59  ;;  %v8150_v27 = vld [vmem:[#allocation5 + $0xd28] sm:$0xf]  ;;  %v9583_v2 = vld [vmem:[#allocation5 + $0xd34] sm:$0xf0]  ;;  %v4060_v21 = vpop.f32.mrf.mxu0  ;;  %v8023_v16 = vor.u32 %v9551_v63, %v8022_v19  ;;  %v6968_v19 = vld [vmem:[#allocation5 + $0x3f8] sm:$0xf0] }
 0x1ea   : > { %4487 = vmatpush.bf16.msrb.mxu3 %v8439_v7  ;;  %v8406_v30 = vld [vmem:[#allocation5 + $0xf28] sm:$0xf]  ;;  %v9647_v32 = vld [vmem:[#allocation5 + $0xf34] sm:$0xf0]  ;;  %v4061_v38 = vadd.f32 %v4060_v21, %v10765_v50  ;;  %v10778_v41 = vadd.f32 %v4114_v26, %v4096_v34  ;;  %v8151_v59 = vor.u32 %v9583_v2, %v8150_v27  ;;  %v6843_v2 = vor.u32 %v9253_v12, %v6840_v43  ;;  %v6824_v34 = vld [vmem:[#allocation5 + $0x2d8] sm:$0xf0] }
 0x1eb   : > { %v8262_v37 = vld [vmem:[#allocation5 + $0xe08] sm:$0xf]  ;;  %4469 = vmatpush.bf16.msrb.mxu2 %v8295_v31  ;;  %v9611_v42 = vld [vmem:[#allocation5 + $0xe14] sm:$0xf0]  ;;  %v8407_v7 = vor.u32 %v9647_v32, %v8406_v30  ;;  %v6584_v31 = vld [vmem:[#allocation5 + $0xf8] sm:$0xf0] }
 0x1ec   : > { %v8006_v10 = vld [vmem:[#allocation5 + $0xc08] sm:$0xf]  ;;  %v9547_v60 = vld [vmem:[#allocation5 + $0xc14] sm:$0xf0]  ;;  %v4080_v51 = vadd.f32 %v4079_v33, %v4061_v38  ;;  %v8263_v15 = vor.u32 %v9611_v42, %v8262_v37  ;;  %v6587_v30 = vor.u32 %v9189_v61, %v6584_v31  ;;  %v9249_v32 = vld [vmem:[#allocation5 + $0x2cc] sm:$0xf] }
 0x1ed   : > { %4431 = vmatpush.bf16.msrb.mxu0 %v8039_v11  ;;  %4450 = vmatpush.bf16.msrb.mxu1 %v8167_v20  ;;  %v8134_v4 = vld [vmem:[#allocation5 + $0xd08] sm:$0xf]  ;;  %v9579_v47 = vld [vmem:[#allocation5 + $0xd14] sm:$0xf0]  ;;  %v9221_v11 = vld [vmem:[#allocation5 + $0x1ec] sm:$0xf]  ;;  %v8007_v57 = vor.u32 %v9547_v60, %v8006_v10 }
 0x1ee   : > { %4488 = vmatpush.bf16.msrb.mxu3 %v8423_v56  ;;  %v8390_v52 = vld [vmem:[#allocation5 + $0xf08] sm:$0xf]  ;;  %4363 = vmatmul.bf16.gmra.mxu0 %v10594_v39  ;;  %v9643_v50 = vld [vmem:[#allocation5 + $0xf14] sm:$0xf0]  ;;  %v6712_v20 = vld [vmem:[#allocation5 + $0x1f8] sm:$0xf0]  ;;  %v8135_v63 = vor.u32 %v9579_v47, %v8134_v4  ;;  %v4117_v26 = vpop.f32.mrf.mxu3 }
 0x1ef   : > { %4382 = vmatmul.bf16.gmra.mxu1 %v10596_v40  ;;  %4470 = vmatpush.bf16.msrb.mxu2 %v8279_v36  ;;  %v9285_v56 = vld [vmem:[#allocation5 + $0x3ec] sm:$0xf]  ;;  %v8391_v27 = vor.u32 %v9643_v50, %v8390_v52  ;;  %v4098_v44 = vpop.f32.mrf.mxu2  ;;  %v6715_v36 = vor.u32 %v9221_v11, %v6712_v20  ;;  %v6568_v42 = vld [vmem:[#allocation5 + $0xd8] sm:$0xf0] }
 0x1f0   : > { %4401 = vmatmul.bf16.gmra.mxu2 %v10598_v45  ;;  %4420 = vmatmul.bf16.gmra.mxu3 %v10600_v46  ;;  %v4099_v21 = vadd.f32 %v4098_v44, %v4080_v51  ;;  %v4081_v38 = vpop.f32.mrf.mxu1  ;;  %v9185_v37 = vld [vmem:[#allocation5 + $0xcc] sm:$0xf]  ;;  %v6952_v4 = vld [vmem:[#allocation5 + $0x3d8] sm:$0xf0]  ;;  %v6827_v51 = vor.u32 %v9249_v32, %v6824_v34 }
 0x1f1   : > { %4432 = vmatpush.bf16.msrb.mxu0 %v8023_v16  ;;  %4451 = vmatpush.bf16.msrb.mxu1 %v8151_v59  ;;  %v4062_v33 = vpop.f32.mrf.mxu0  ;;  %v6971_v16 = vor.u32 %v9285_v56, %v6968_v19  ;;  %v9217_v10 = vld [vmem:[#allocation5 + $0x1cc] sm:$0xf]  ;;  %v6696_v59 = vld [vmem:[#allocation5 + $0x1d8] sm:$0xf0]  ;;  %v6571_v50 = vor.u32 %v9185_v37, %v6568_v42 }
 0x1f2   : > { %4489 = vmatpush.bf16.msrb.mxu3 %v8407_v7  ;;  %v4063_v60 = vadd.f32 %v4062_v33, %v10768_v3  ;;  %v9281_v7 = vld [vmem:[#allocation5 + $0x3cc] sm:$0xf]  ;;  %v10785_v47 = vadd.f32 %v4117_v26, %v4099_v21  ;;  %v6699_v12 = vor.u32 %v9217_v10, %v6696_v59  ;;  %v6808_v3 = vld [vmem:[#allocation5 + $0x2b8] sm:$0xf0] }
 0x1f3   : > { %4471 = vmatpush.bf16.msrb.mxu2 %v8263_v15  ;;  %v6955_v43 = vor.u32 %v9281_v7, %v6952_v4  ;;  %v9245_v61 = vld [vmem:[#allocation5 + $0x2ac] sm:$0xf]  ;;  %v6552_v11 = vld [vmem:[#allocation5 + $0xb8] sm:$0xf0] }
 0x1f4   : > { %v4082_v52 = vadd.f32 %v4081_v38, %v4063_v60  ;;  %v9181_v31 = vld [vmem:[#allocation5 + $0xac] sm:$0xf]  ;;  %v6680_v56 = vld [vmem:[#allocation5 + $0x1b8] sm:$0xf0] }
 0x1f5   : > { %4433 = vmatpush.bf16.msrb.mxu0 %v8007_v57  ;;  %4452 = vmatpush.bf16.msrb.mxu1 %v8135_v63  ;;  %v9213_v15 = vld [vmem:[#allocation5 + $0x1ac] sm:$0xf]  ;;  %v6936_v63 = vld [vmem:[#allocation5 + $0x3b8] sm:$0xf0]  ;;  %v6555_v32 = vor.u32 %v9181_v31, %v6552_v11 }
 0x1f6   : > { %4490 = vmatpush.bf16.msrb.mxu3 %v8391_v27  ;;  %v4119_v20 = vpop.f32.mrf.mxu3  ;;  %v9277_v19 = vld [vmem:[#allocation5 + $0x3ac] sm:$0xf]  ;;  %v6792_v21 = vld [vmem:[#allocation5 + $0x298] sm:$0xf0]  ;;  %v6683_v38 = vor.u32 %v9213_v15, %v6680_v56 }
 0x1f7   : > { %4540 = vmatpush.bf16.msra.mxu2 %v6843_v2  ;;  %v4100_v57 = vpop.f32.mrf.mxu2  ;;  %v9241_v34 = vld [vmem:[#allocation5 + $0x28c] sm:$0xf]  ;;  %v6536_v37 = vld [vmem:[#allocation5 + $0x98] sm:$0xf0] }
 0x1f8   : > { %v4101_v27 = vadd.f32 %v4100_v57, %v4082_v52  ;;  %v4150_v26 = vpop.f32.mrf.mxu1  ;;  %v9209_v42 = vld [vmem:[#allocation5 + $0x18c] sm:$0xf]  ;;  %v6664_v60 = vld [vmem:[#allocation5 + $0x198] sm:$0xf0] }
 0x1f9   : > { %4502 = vmatpush.bf16.msra.mxu0 %v6587_v30  ;;  %4521 = vmatpush.bf16.msra.mxu1 %v6715_v36  ;;  %v4131_v44 = vpop.f32.mrf.mxu0  ;;  %v6811_v30 = vor.u32 %v9245_v61, %v6808_v3  ;;  %v6939_v36 = vor.u32 %v9277_v19, %v6936_v63  ;;  %v9273_v59 = vld [vmem:[#allocation5 + $0x38c] sm:$0xf]  ;;  %v6920_v7 = vld [vmem:[#allocation5 + $0x398] sm:$0xf0] }
 0x1fa   : > { %4559 = vmatpush.bf16.msra.mxu3 %v6971_v16  ;;  %v4132_v2 = vadd.f32 %v4131_v44, %v10775_v35  ;;  %v10788_v33 = vadd.f32 %v4119_v20, %v4101_v27  ;;  %v9177_v16 = vld [vmem:[#allocation5 + $0x8c] sm:$0xf]  ;;  %v6795_v35 = vor.u32 %v9241_v34, %v6792_v21  ;;  %v6520_v61 = vld [vmem:[#allocation5 + $0x78] sm:$0xf0] }
 0x1fb   : > { %4541 = vmatpush.bf16.msra.mxu2 %v6827_v51  ;;  %v6539_v4 = vor.u32 %v9177_v16, %v6536_v37  ;;  %v9237_v52 = vld [vmem:[#allocation5 + $0x26c] sm:$0xf]  ;;  %v6776_v51 = vld [vmem:[#allocation5 + $0x278] sm:$0xf0] }
 0x1fc   : > { %v4151_v10 = vadd.f32 %v4150_v26, %v4132_v2  ;;  %v9205_v3 = vld [vmem:[#allocation5 + $0x16c] sm:$0xf]  ;;  %v6648_v15 = vld [vmem:[#allocation5 + $0x178] sm:$0xf0]  ;;  %v6779_v44 = vor.u32 %v9237_v52, %v6776_v51 }
 0x1fd   : > { %4503 = vmatpush.bf16.msra.mxu0 %v6571_v50  ;;  %4522 = vmatpush.bf16.msra.mxu1 %v6699_v12  ;;  %v6667_v50 = vor.u32 %v9209_v42, %v6664_v60  ;;  %v6923_v12 = vor.u32 %v9273_v59, %v6920_v7  ;;  %v9269_v57 = vld [vmem:[#allocation5 + $0x36c] sm:$0xf]  ;;  %v6904_v20 = vld [vmem:[#allocation5 + $0x378] sm:$0xf0]  ;;  %v6651_v34 = vor.u32 %v9205_v3, %v6648_v15 }
 0x1fe   : > { %4560 = vmatpush.bf16.msra.mxu3 %v6955_v43  ;;  %4434 = vmatmul.bf16.vlgmr.msrb.gmra.mxu0 %v10614_v17  ;;  %v9173_v43 = vld [vmem:[#allocation5 + $0x6c] sm:$0xf]  ;;  %v4188_v11 = vpop.f32.mrf.mxu3  ;;  %v6907_v21 = vor.u32 %v9269_v57, %v6904_v20  ;;  %v6632_v42 = vld [vmem:[#allocation5 + $0x158] sm:$0xf0] }
 0x1ff   : > { %4453 = vmatmul.bf16.vlgmr.msrb.gmra.mxu1 %v10616_v18  ;;  %4542 = vmatpush.bf16.msra.mxu2 %v6811_v30  ;;  %v4169_v31 = vpop.f32.mrf.mxu2  ;;  %v6523_v26 = vor.u32 %v9173_v43, %v6520_v61  ;;  %v9233_v2 = vld [vmem:[#allocation5 + $0x24c] sm:$0xf]  ;;  %v6760_v30 = vld [vmem:[#allocation5 + $0x258] sm:$0xf0] }
 0x200   : > { %4472 = vmatmul.bf16.vlgmr.msrb.gmra.mxu2 %v10618_v22  ;;  %4491 = vmatmul.bf16.vlgmr.msrb.gmra.mxu3 %v10620_v25  ;;  %v4170_v56 = vadd.f32 %v4169_v31, %v4151_v10  ;;  %v4152_v63 = vpop.f32.mrf.mxu1  ;;  %v9201_v16 = vld [vmem:[#allocation5 + $0x14c] sm:$0xf]  ;;  %v6888_v60 = vld [vmem:[#allocation5 + $0x358] sm:$0xf0] }
 0x201   : > { %4504 = vmatpush.bf16.msra.mxu0 %v6555_v32  ;;  %4523 = vmatpush.bf16.msra.mxu1 %v6683_v38  ;;  %v4133_v19 = vpop.f32.mrf.mxu0  ;;  %v9169_v38 = vld [vmem:[#allocation5 + $0x4c] sm:$0xf]  ;;  %v6616_v3 = vld [vmem:[#allocation5 + $0x138] sm:$0xf0] }
 0x202   : > { %4561 = vmatpush.bf16.msra.mxu3 %v6939_v36  ;;  %v4134_v27 = vadd.f32 %v4133_v19, %v10778_v41  ;;  %v10795_v32 = vadd.f32 %v4188_v11, %v4170_v56  ;;  %v6504_v36 = vld [vmem:[#allocation5 + $0x58] sm:$0xf0]  ;;  %v9265_v10 = vld [vmem:[#allocation5 + $0x34c] sm:$0xf]  ;;  %v6763_v41 = vor.u32 %v9233_v2, %v6760_v30 }
 0x203   : > { %4543 = vmatpush.bf16.msra.mxu2 %v6795_v35  ;;  %v6507_v59 = vor.u32 %v9169_v38, %v6504_v36  ;;  %v9229_v7 = vld [vmem:[#allocation5 + $0x22c] sm:$0xf]  ;;  %v6744_v35 = vld [vmem:[#allocation5 + $0x238] sm:$0xf0]  ;;  %v6891_v52 = vor.u32 %v9265_v10, %v6888_v60 }
 0x204   : > { %v4153_v37 = vadd.f32 %v4152_v63, %v4134_v27  ;;  %v9165_v51 = vld [vmem:[#allocation5 + $0x2c] sm:$0xf]  ;;  %v6872_v11 = vld [vmem:[#allocation5 + $0x338] sm:$0xf0]  ;;  %v6747_v27 = vor.u32 %v9229_v7, %v6744_v35 }
 0x205   : > { %4505 = vmatpush.bf16.msra.mxu0 %v6539_v4  ;;  %4524 = vmatpush.bf16.msra.mxu1 %v6667_v50  ;;  %v6635_v4 = vor.u32 %v9201_v16, %v6632_v42  ;;  %v6488_v50 = vld [vmem:[#allocation5 + $0x38] sm:$0xf0]  ;;  %v9261_v31 = vld [vmem:[#allocation5 + $0x32c] sm:$0xf] }
 0x206   : > { %4562 = vmatpush.bf16.msra.mxu3 %v6923_v12  ;;  %v9197_v12 = vld [vmem:[#allocation5 + $0x12c] sm:$0xf]  ;;  %v4190_v61 = vpop.f32.mrf.mxu3  ;;  %v6728_v19 = vld [vmem:[#allocation5 + $0x218] sm:$0xf0]  ;;  %v6875_v38 = vor.u32 %v9261_v31, %v6872_v11 }
 0x207   : > { %4544 = vmatpush.bf16.msra.mxu2 %v6779_v44  ;;  %v4171_v43 = vpop.f32.mrf.mxu2  ;;  %v9225_v56 = vld [vmem:[#allocation5 + $0x20c] sm:$0xf]  ;;  %v6491_v44 = vor.u32 %v9165_v51, %v6488_v50  ;;  %v6472_v2 = vld [vmem:[#allocation5 + $0x18] sm:$0xf0] }
 0x208   : > { %v4172_v15 = vadd.f32 %v4171_v43, %v4153_v37  ;;  %v4155_v20 = vpop.f32.mrf.mxu1  ;;  %v9193_v30 = vld [vmem:[#allocation5 + $0x10c] sm:$0xf]  ;;  %v6600_v36 = vld [vmem:[#allocation5 + $0x118] sm:$0xf0] }
 0x209   : > { %4506 = vmatpush.bf16.msra.mxu0 %v6523_v26  ;;  %4525 = vmatpush.bf16.msra.mxu1 %v6651_v34  ;;  %v4136_v57 = vpop.f32.mrf.mxu0  ;;  %v9161_v26 = vld [vmem:[#allocation5 + $0xc] sm:$0xf]  ;;  %v6856_v37 = vld [vmem:[#allocation5 + $0x318] sm:$0xf0] }
 0x20a   : > { %4563 = vmatpush.bf16.msra.mxu3 %v6907_v21  ;;  %v4137_v63 = vadd.f32 %v4136_v57, %v10785_v47  ;;  %v4191_v34 = vadd.f32 %v4190_v61, %v4172_v15  ;;  %v6619_v21 = vor.u32 %v9197_v12, %v6616_v3  ;;  %v9257_v16 = vld [vmem:[#allocation5 + $0x30c] sm:$0xf]  ;;  %v7352_v10 = vld [vmem:[#allocation5 + $0x6f8] sm:$0xf0]  ;;  %v6603_v61 = vor.u32 %v9193_v30, %v6600_v36 }
 0x20b   : > { %4545 = vmatpush.bf16.msra.mxu2 %v6763_v41  ;;  %v9381_v47 = vld [vmem:[#allocation5 + $0x6ec] sm:$0xf]  ;;  %v4807_v41 = vmax.f32 %v10795_v32, 0.0  ;;  %v7096_v7 = vld [vmem:[#allocation5 + $0x4f8] sm:$0xf0]  ;;  %v6859_v32 = vor.u32 %v9257_v16, %v6856_v37 }
 0x20c   : > { %v4156_v42 = vadd.f32 %v4155_v20, %v4137_v63  ;;  %v9317_v60 = vld [vmem:[#allocation5 + $0x4ec] sm:$0xf]  ;;  %v7224_v51 = vld [vmem:[#allocation5 + $0x5f8] sm:$0xf0]  ;;  %v7355_v11 = vor.u32 %v9381_v47, %v7352_v10 }
 0x20d   : > { %4507 = vmatpush.bf16.msra.mxu0 %v6507_v59  ;;  %4526 = vmatpush.bf16.msra.mxu1 %v6635_v4  ;;  %v4811_v59 = vmax.f32 %v4191_v34, 0.0  ;;  %v9349_v35 = vld [vmem:[#allocation5 + $0x5ec] sm:$0xf]  ;;  %v6731_v4 = vor.u32 %v9225_v56, %v6728_v19  ;;  %v7480_v12 = vld [vmem:[#allocation5 + $0x7f8] sm:$0xf0]  ;;  %v7099_v15 = vor.u32 %v9317_v60, %v7096_v7 }
 0x20e   : > { %4564 = vmatpush.bf16.msra.mxu3 %v6891_v52  ;;  %4439 = vmatmul.bf16.gmra.mxu0 %v10634_v55  ;;  %v6475_v52 = vor.u32 %v9161_v26, %v6472_v2  ;;  %v9413_v50 = vld [vmem:[#allocation5 + $0x7ec] sm:$0xf]  ;;  %v7336_v20 = vld [vmem:[#allocation5 + $0x6d8] sm:$0xf0]  ;;  %v7227_v56 = vor.u32 %v9349_v35, %v7224_v51  ;;  %v9943_v60 = vld [vmem:[#allocation7] sm:$0xf] }
 0x20f   : > { %4458 = vmatmul.bf16.gmra.mxu1 %v10636_v58  ;;  %4546 = vmatpush.bf16.msra.mxu2 %v6747_v27  ;;  %v10803_v43 = vpack.c.bf16 %v4811_v59, %v4807_v41  ;;  %v4174_v3 = vpop.f32.mrf.mxu2  ;;  %v9377_v57 = vld [vmem:[#allocation5 + $0x6cc] sm:$0xf]  ;;  %v7483_v19 = vor.u32 %v9413_v50, %v7480_v12  ;;  %v7080_v2 = vld [vmem:[#allocation5 + $0x4d8] sm:$0xf0]  ;;  %v10806_v59 = vperm.slane %v9943_v60, 2 }
 0x210   : > { %4477 = vmatmul.bf16.gmra.mxu2 %v10638_v62  ;;  %4496 = vmatmul.bf16.gmra.mxu3 %v11219_v49  ;;  %v4175_v63 = vadd.f32 %v4174_v3, %v4156_v42  ;;  %v9313_v26 = vld [vmem:[#allocation5 + $0x4cc] sm:$0xf]  ;;  %v7208_v30 = vld [vmem:[#allocation5 + $0x5d8] sm:$0xf0]  ;;  %v7339_v37 = vor.u32 %v9377_v57, %v7336_v20 }
 0x211   : > { %4508 = vmatpush.bf16.msra.mxu0 %v6491_v44  ;;  %4527 = vmatpush.bf16.msra.mxu1 %v6619_v21  ;;  %v4138_v27 = vpop.f32.mrf.mxu0  ;;  %v4157_v44 = vpop.f32.mrf.mxu1  ;;  %v9345_v34 = vld [vmem:[#allocation5 + $0x5cc] sm:$0xf]  ;;  %v7083_v42 = vor.u32 %v9313_v26, %v7080_v2  ;;  %v7320_v7 = vld [vmem:[#allocation5 + $0x6b8] sm:$0xf0] }
 0x212   : > { %4565 = vmatpush.bf16.msra.mxu3 %v6875_v38  ;;  %v4193_v31 = vpop.f32.mrf.mxu3  ;;  %v4139_v41 = vadd.f32 %v4138_v27, %v10788_v33  ;;  %v9409_v21 = vld [vmem:[#allocation5 + $0x7cc] sm:$0xf]  ;;  %v7464_v38 = vld [vmem:[#allocation5 + $0x7d8] sm:$0xf0]  ;;  %v7211_v47 = vor.u32 %v9345_v34, %v7208_v30 }
 0x213   : > { %4547 = vmatpush.bf16.msra.mxu2 %v6731_v4  ;;  %v4194_v36 = vadd.f32 %v4193_v31, %v4175_v63  ;;  %v7467_v10 = vor.u32 %v9409_v21, %v7464_v38  ;;  %v9373_v33 = vld [vmem:[#allocation5 + $0x6ac] sm:$0xf]  ;;  %v7064_v4 = vld [vmem:[#allocation5 + $0x4b8] sm:$0xf0] }
 0x214   : > { %v4158_v16 = vadd.f32 %v4157_v44, %v4139_v41  ;;  %v9309_v35 = vld [vmem:[#allocation5 + $0x4ac] sm:$0xf]  ;;  %v7192_v12 = vld [vmem:[#allocation5 + $0x5b8] sm:$0xf0]  ;;  %v7323_v57 = vor.u32 %v9373_v33, %v7320_v7 }
 0x215   : > { %4509 = vmatpush.bf16.msra.mxu0 %v6475_v52  ;;  %4528 = vmatpush.bf16.msra.mxu1 %v6603_v61  ;;  %v9341_v52 = vld [vmem:[#allocation5 + $0x5ac] sm:$0xf]  ;;  %v7067_v20 = vor.u32 %v9309_v35, %v7064_v4  ;;  %v7304_v27 = vld [vmem:[#allocation5 + $0x698] sm:$0xf0] }
 0x216   : > { %4566 = vmatpush.bf16.msra.mxu3 %v6859_v32  ;;  %v9405_v61 = vld [vmem:[#allocation5 + $0x7ac] sm:$0xf]  ;;  %v7448_v32 = vld [vmem:[#allocation5 + $0x7b8] sm:$0xf0] }
 0x217   : > { %4616 = vmatpush.bf16.msrb.mxu2 %v7355_v11  ;;  %v4176_v51 = vpop.f32.mrf.mxu2  ;;  %v9369_v63 = vld [vmem:[#allocation5 + $0x68c] sm:$0xf]  ;;  %v7048_v2 = vld [vmem:[#allocation5 + $0x498] sm:$0xf0] }
 0x218   : > { %v4177_v3 = vadd.f32 %v4176_v51, %v4158_v16  ;;  %v9305_v26 = vld [vmem:[#allocation5 + $0x48c] sm:$0xf]  ;;  %v7176_v30 = vld [vmem:[#allocation5 + $0x598] sm:$0xf0]  ;;  %v4815_v16 = vmax.f32 %v4194_v36, 0.0 }
 0x219   : > { %4578 = vmatpush.bf16.msrb.mxu0 %v7099_v15  ;;  %4597 = vmatpush.bf16.msrb.mxu1 %v7227_v56  ;;  %v4207_v31 = vpop.f32.mrf.mxu0  ;;  %v4226_v11 = vpop.f32.mrf.mxu1  ;;  %v7195_v56 = vor.u32 %v9341_v52, %v7192_v12  ;;  %v9337_v34 = vld [vmem:[#allocation5 + $0x58c] sm:$0xf]  ;;  %v7432_v38 = vld [vmem:[#allocation5 + $0x798] sm:$0xf0] }
 0x21a   : > { %4635 = vmatpush.bf16.msrb.mxu3 %v7483_v19  ;;  %v4195_v50 = vpop.f32.mrf.mxu3  ;;  %v4208_v15 = vadd.f32 %v4207_v31, %v10806_v59  ;;  %v7451_v19 = vor.u32 %v9405_v61, %v7448_v32  ;;  %v9401_v21 = vld [vmem:[#allocation5 + $0x78c] sm:$0xf]  ;;  %v7288_v33 = vld [vmem:[#allocation5 + $0x678] sm:$0xf0] }
 0x21b   : > { %4617 = vmatpush.bf16.msrb.mxu2 %v7339_v37  ;;  %v4196_v44 = vadd.f32 %v4195_v50, %v4177_v3  ;;  %v9365_v60 = vld [vmem:[#allocation5 + $0x66c] sm:$0xf]  ;;  %v7032_v4 = vld [vmem:[#allocation5 + $0x478] sm:$0xf0] }
 0x21c   : > { %v4227_v41 = vadd.f32 %v4226_v11, %v4208_v15  ;;  %v9301_v35 = vld [vmem:[#allocation5 + $0x46c] sm:$0xf]  ;;  %v7416_v12 = vld [vmem:[#allocation5 + $0x778] sm:$0xf0]  ;;  %v7291_v11 = vor.u32 %v9365_v60, %v7288_v33 }
 0x21d   : > { %4579 = vmatpush.bf16.msrb.mxu0 %v7083_v42  ;;  %4598 = vmatpush.bf16.msrb.mxu1 %v7211_v47  ;;  %v4819_v37 = vmax.f32 %v4196_v44, 0.0  ;;  %v11227_v42 = vld [vmem:[#allocation23_spill] sm:$0xff]  ;;  %v7307_v47 = vor.u32 %v9369_v63, %v7304_v27  ;;  %v7035_v15 = vor.u32 %v9301_v35, %v7032_v4  ;;  %v7000_v60 = vld [vmem:[#allocation5 + $0x438] sm:$0xf0] }
 0x21e   : > { %4636 = vmatpush.bf16.msrb.mxu3 %v7467_v10  ;;  %4510 = vmatmul.bf16.vlgmr.msra.gmra.mxu0 %v10494_v48  ;;  %v7051_v10 = vor.u32 %v9305_v26, %v7048_v2  ;;  %v7179_v48 = vor.u32 %v9337_v34, %v7176_v30  ;;  %v9333_v36 = vld [vmem:[#allocation5 + $0x56c] sm:$0xf]  ;;  %v7144_v34 = vld [vmem:[#allocation5 + $0x558] sm:$0xf0] }
 0x21f   : > { %4529 = vmatmul.bf16.vlgmr.msra.gmra.mxu1 %v10496_v53  ;;  %4618 = vmatpush.bf16.msrb.mxu2 %v7323_v57  ;;  %v10813_v7 = vpack.c.bf16 %v4819_v37, %v4815_v16  ;;  %v7435_v53 = vor.u32 %v9401_v21, %v7432_v38  ;;  %v4245_v52 = vpop.f32.mrf.mxu2  ;;  %v9397_v50 = vld [vmem:[#allocation5 + $0x76c] sm:$0xf]  ;;  %v7400_v30 = vld [vmem:[#allocation5 + $0x758] sm:$0xf0] }
 0x220   : > { %4548 = vmatmul.bf16.vlgmr.msra.gmra.mxu2 %v10498_v54  ;;  %4567 = vmatmul.bf16.vlgmr.msra.gmra.mxu3 %v11227_v42  ;;  %v7160_v54 = vld [vmem:[#allocation5 + $0x578] sm:$0xf0]  ;;  %v4246_v61 = vadd.f32 %v4245_v52, %v4227_v41  ;;  %v9361_v57 = vld [vmem:[#allocation5 + $0x64c] sm:$0xf]  ;;  %v7419_v44 = vor.u32 %v9397_v50, %v7416_v12 }
 0x221   : > { %4580 = vmatpush.bf16.msrb.mxu0 %v7067_v20  ;;  %4599 = vmatpush.bf16.msrb.mxu1 %v7195_v56  ;;  %v4209_v32 = vpop.f32.mrf.mxu0  ;;  %v4228_v3 = vpop.f32.mrf.mxu1  ;;  %v7272_v20 = vld [vmem:[#allocation5 + $0x658] sm:$0xf0]  ;;  %v7163_v27 = vor.u32 %v9333_v36, %v7160_v54  ;;  %v9297_v56 = vld [vmem:[#allocation5 + $0x44c] sm:$0xf] }
 0x222   : > { %4637 = vmatpush.bf16.msrb.mxu3 %v7451_v19  ;;  %v4264_v51 = vpop.f32.mrf.mxu3  ;;  %v4210_v31 = vadd.f32 %v4209_v32, %v10806_v59  ;;  %v7016_v19 = vld [vmem:[#allocation5 + $0x458] sm:$0xf0]  ;;  %v9329_v26 = vld [vmem:[#allocation5 + $0x54c] sm:$0xf]  ;;  %v7275_v21 = vor.u32 %v9361_v57, %v7272_v20 }
 0x223   : > { %4619 = vmatpush.bf16.msrb.mxu2 %v7307_v47  ;;  %v10816_v63 = vadd.f32 %v4264_v51, %v4246_v61  ;;  %v9393_v41 = vld [vmem:[#allocation5 + $0x74c] sm:$0xf]  ;;  %v7019_v38 = vor.u32 %v9297_v56, %v7016_v19  ;;  %v7256_v37 = vld [vmem:[#allocation5 + $0x638] sm:$0xf0]  ;;  %v7147_v42 = vor.u32 %v9329_v26, %v7144_v34  ;;  %v11228_v26 = vld [vmem:[#allocation24_spill] sm:$0xff] }
 0x224   : > { %v4229_v2 = vadd.f32 %v4228_v3, %v4210_v31  ;;  %v9357_v16 = vld [vmem:[#allocation5 + $0x62c] sm:$0xf]  ;;  %v7403_v47 = vor.u32 %v9393_v41, %v7400_v30  ;;  %v7128_v35 = vld [vmem:[#allocation5 + $0x538] sm:$0xf0] }
 0x225   : > { %4581 = vmatpush.bf16.msrb.mxu0 %v7051_v10  ;;  %4600 = vmatpush.bf16.msrb.mxu1 %v7179_v48  ;;  %v9293_v10 = vld [vmem:[#allocation5 + $0x42c] sm:$0xf]  ;;  %v7384_v36 = vld [vmem:[#allocation5 + $0x738] sm:$0xf0]  ;;  %v7259_v61 = vor.u32 %v9357_v16, %v7256_v37 }
 0x226   : > { %4638 = vmatpush.bf16.msrb.mxu3 %v7435_v53  ;;  %v9325_v33 = vld [vmem:[#allocation5 + $0x52c] sm:$0xf]  ;;  %v7003_v32 = vor.u32 %v9293_v10, %v7000_v60  ;;  %v7240_v3 = vld [vmem:[#allocation5 + $0x618] sm:$0xf0] }
 0x227   : > { %4620 = vmatpush.bf16.msrb.mxu2 %v7291_v11  ;;  %v4247_v48 = vpop.f32.mrf.mxu2  ;;  %v9389_v4 = vld [vmem:[#allocation5 + $0x72c] sm:$0xf]  ;;  %v6984_v11 = vld [vmem:[#allocation5 + $0x418] sm:$0xf0]  ;;  %v7131_v57 = vor.u32 %v9325_v33, %v7128_v35 }
 0x228   : > { %v4248_v52 = vadd.f32 %v4247_v48, %v4229_v2  ;;  %v9353_v50 = vld [vmem:[#allocation5 + $0x60c] sm:$0xf]  ;;  %v7387_v20 = vor.u32 %v9389_v4, %v7384_v36  ;;  %v11229_v2 = vld [vmem:[#allocation25_spill] sm:$0xff] }
 0x229   : > { %4582 = vmatpush.bf16.msrb.mxu0 %v7035_v15  ;;  %4601 = vmatpush.bf16.msrb.mxu1 %v7163_v27  ;;  %v9289_v31 = vld [vmem:[#allocation5 + $0x40c] sm:$0xf]  ;;  %v7368_v34 = vld [vmem:[#allocation5 + $0x718] sm:$0xf0] }
 0x22a   : > { %4639 = vmatpush.bf16.msrb.mxu3 %v7419_v44  ;;  %v4266_v53 = vpop.f32.mrf.mxu3  ;;  %v9321_v27 = vld [vmem:[#allocation5 + $0x50c] sm:$0xf]  ;;  %v7112_v44 = vld [vmem:[#allocation5 + $0x518] sm:$0xf0]  ;;  %v6987_v10 = vor.u32 %v9289_v31, %v6984_v11 }
 0x22b   : > { %v4212_v51 = vpop.f32.mrf.mxu0  ;;  %4621 = vmatpush.bf16.msrb.mxu2 %v7275_v21  ;;  %v10819_v15 = vadd.f32 %v4266_v53, %v4248_v52  ;;  %v9385_v56 = vld [vmem:[#allocation5 + $0x70c] sm:$0xf]  ;;  %v7864_v30 = vld [vmem:[#allocation5 + $0xaf8] sm:$0xf0]  ;;  %v11230_v21 = vld [vmem:[#allocation26_spill] sm:$0xff]  ;;  %v7115_v53 = vor.u32 %v9321_v27, %v7112_v44 }
 0x22c   : > { %v4231_v54 = vpop.f32.mrf.mxu1  ;;  %v4213_v12 = vadd.f32 %v4212_v51, %v10806_v59  ;;  %v9509_v41 = vld [vmem:[#allocation5 + $0xaec] sm:$0xf]  ;;  %v7608_v37 = vld [vmem:[#allocation5 + $0x8f8] sm:$0xf0]  ;;  %v7371_v35 = vor.u32 %v9385_v56, %v7368_v34 }
 0x22d   : > { %4583 = vmatpush.bf16.msrb.mxu0 %v7019_v38  ;;  %4602 = vmatpush.bf16.msrb.mxu1 %v7147_v42  ;;  %v11231_v38 = vld [vmem:[#allocation27_spill] sm:$0xff]  ;;  %v7736_v60 = vld [vmem:[#allocation5 + $0x9f8] sm:$0xf0]  ;;  %v7867_v52 = vor.u32 %v9509_v41, %v7864_v30 }
 0x22e   : > { %4640 = vmatpush.bf16.msrb.mxu3 %v7403_v47  ;;  %v4232_v19 = vadd.f32 %v4231_v54, %v4213_v12  ;;  %4515 = vmatmul.bf16.gmra.mxu0 %v11228_v26  ;;  %v9445_v16 = vld [vmem:[#allocation5 + $0x8ec] sm:$0xf]  ;;  %v7243_v47 = vor.u32 %v9353_v50, %v7240_v3  ;;  %v7992_v48 = vld [vmem:[#allocation5 + $0xbf8] sm:$0xf0] }
 0x22f   : > { %4534 = vmatmul.bf16.gmra.mxu1 %v11229_v2  ;;  %v9477_v42 = vld [vmem:[#allocation5 + $0x9ec] sm:$0xf]  ;;  %4622 = vmatpush.bf16.msrb.mxu2 %v7259_v61  ;;  %v7611_v51 = vor.u32 %v9445_v16, %v7608_v37  ;;  %v7848_v12 = vld [vmem:[#allocation5 + $0xad8] sm:$0xf0] }
 0x230   : > { %4553 = vmatmul.bf16.gmra.mxu2 %v11230_v21  ;;  %4572 = vmatmul.bf16.gmra.mxu3 %v11231_v38  ;;  %v9541_v33 = vld [vmem:[#allocation5 + $0xbec] sm:$0xf]  ;;  %v7739_v61 = vor.u32 %v9477_v42, %v7736_v60  ;;  %v7592_v3 = vld [vmem:[#allocation5 + $0x8d8] sm:$0xf0] }
 0x231   : > { %4584 = vmatpush.bf16.msrb.mxu0 %v7003_v32  ;;  %4603 = vmatpush.bf16.msrb.mxu1 %v7131_v57  ;;  %v9505_v54 = vld [vmem:[#allocation5 + $0xacc] sm:$0xf]  ;;  %v7995_v32 = vor.u32 %v9541_v33, %v7992_v48  ;;  %v7720_v57 = vld [vmem:[#allocation5 + $0x9d8] sm:$0xf0] }
 0x232   : > { %4641 = vmatpush.bf16.msrb.mxu3 %v7387_v20  ;;  %v9441_v50 = vld [vmem:[#allocation5 + $0x8cc] sm:$0xf]  ;;  %v7976_v27 = vld [vmem:[#allocation5 + $0xbd8] sm:$0xf0] }
 0x233   : > { %v4250_v4 = vpop.f32.mrf.mxu2  ;;  %v4269_v36 = vpop.f32.mrf.mxu3  ;;  %v9473_v31 = vld [vmem:[#allocation5 + $0x9cc] sm:$0xf]  ;;  %4623 = vmatpush.bf16.msrb.mxu2 %v7243_v47  ;;  %v7595_v34 = vor.u32 %v9441_v50, %v7592_v3  ;;  %v7576_v37 = vld [vmem:[#allocation5 + $0x8b8] sm:$0xf0] }
 0x234   : > { %v4251_v26 = vadd.f32 %v4250_v4, %v4232_v19  ;;  %v4214_v2 = vpop.f32.mrf.mxu0  ;;  %v4233_v21 = vpop.f32.mrf.mxu1  ;;  %v9537_v20 = vld [vmem:[#allocation5 + $0xbcc] sm:$0xf]  ;;  %v7851_v19 = vor.u32 %v9505_v54, %v7848_v12  ;;  %v7723_v41 = vor.u32 %v9473_v31, %v7720_v57  ;;  %v7704_v60 = vld [vmem:[#allocation5 + $0x9b8] sm:$0xf0] }
 0x235   : > { %v4215_v11 = vadd.f32 %v4214_v2, %v10806_v59  ;;  %4585 = vmatpush.bf16.msrb.mxu0 %v6987_v10  ;;  %4604 = vmatpush.bf16.msrb.mxu1 %v7115_v53  ;;  %v7979_v30 = vor.u32 %v9537_v20, %v7976_v27  ;;  %v9501_v38 = vld [vmem:[#allocation5 + $0xaac] sm:$0xf]  ;;  %v7832_v59 = vld [vmem:[#allocation5 + $0xab8] sm:$0xf0] }
 0x236   : > { %v10826_v44 = vadd.f32 %v4269_v36, %v4251_v26  ;;  %4642 = vmatpush.bf16.msrb.mxu3 %v7371_v35  ;;  %v9437_v16 = vld [vmem:[#allocation5 + $0x8ac] sm:$0xf]  ;;  %v7960_v48 = vld [vmem:[#allocation5 + $0xbb8] sm:$0xf0] }
 0x237   : > { %v4234_v56 = vadd.f32 %v4233_v21, %v4215_v11  ;;  %4692 = vmatpush.bf16.msra.mxu2 %v7867_v52  ;;  %v9469_v42 = vld [vmem:[#allocation5 + $0x9ac] sm:$0xf]  ;;  %v7835_v52 = vor.u32 %v9501_v38, %v7832_v59  ;;  %v7816_v12 = vld [vmem:[#allocation5 + $0xa98] sm:$0xf0] }
 0x238   : > { %v9533_v33 = vld [vmem:[#allocation5 + $0xbac] sm:$0xf]  ;;  %v7707_v2 = vor.u32 %v9469_v42, %v7704_v60  ;;  %v7688_v31 = vld [vmem:[#allocation5 + $0x998] sm:$0xf0] }
 0x239   : > { %4654 = vmatpush.bf16.msra.mxu0 %v7611_v51  ;;  %4673 = vmatpush.bf16.msra.mxu1 %v7739_v61  ;;  %v7579_v51 = vor.u32 %v9437_v16, %v7576_v37  ;;  %v9497_v54 = vld [vmem:[#allocation5 + $0xa8c] sm:$0xf]  ;;  %v7963_v21 = vor.u32 %v9533_v33, %v7960_v48  ;;  %v7944_v57 = vld [vmem:[#allocation5 + $0xb98] sm:$0xf0] }
 0x23a   : > { %4711 = vmatpush.bf16.msra.mxu3 %v7995_v32  ;;  %v9433_v61 = vld [vmem:[#allocation5 + $0x88c] sm:$0xf]  ;;  %v7560_v32 = vld [vmem:[#allocation5 + $0x898] sm:$0xf0] }
 0x23b   : > { %v4252_v47 = vpop.f32.mrf.mxu2  ;;  %v4271_v10 = vpop.f32.mrf.mxu3  ;;  %4693 = vmatpush.bf16.msra.mxu2 %v7851_v19  ;;  %v9465_v50 = vld [vmem:[#allocation5 + $0x98c] sm:$0xf]  ;;  %v7563_v20 = vor.u32 %v9433_v61, %v7560_v32  ;;  %v7672_v59 = vld [vmem:[#allocation5 + $0x978] sm:$0xf0] }
 0x23c   : > { %v4253_v53 = vadd.f32 %v4252_v47, %v4234_v56  ;;  %v4283_v35 = vpop.f32.mrf.mxu0  ;;  %v4302_v4 = vpop.f32.mrf.mxu1  ;;  %v9529_v11 = vld [vmem:[#allocation5 + $0xb8c] sm:$0xf]  ;;  %v7800_v56 = vld [vmem:[#allocation5 + $0xa78] sm:$0xf0]  ;;  %v7691_v19 = vor.u32 %v9465_v50, %v7688_v31 }
 0x23d   : > { %4655 = vmatpush.bf16.msra.mxu0 %v7595_v34  ;;  %4674 = vmatpush.bf16.msra.mxu1 %v7723_v41  ;;  %v4284_v36 = vadd.f32 %v4283_v35, %v10816_v63  ;;  %v7819_v63 = vor.u32 %v9497_v54, %v7816_v12  ;;  %v9493_v27 = vld [vmem:[#allocation5 + $0xa6c] sm:$0xf]  ;;  %v7947_v34 = vor.u32 %v9529_v11, %v7944_v57  ;;  %v7544_v41 = vld [vmem:[#allocation5 + $0x878] sm:$0xf0] }
 0x23e   : > { %4712 = vmatpush.bf16.msra.mxu3 %v7979_v30  ;;  %v10829_v26 = vadd.f32 %v4271_v10, %v4253_v53  ;;  %4586 = vmatmul.bf16.vlgmr.msrb.gmra.mxu0 %v10534_v0  ;;  %v9429_v0 = vld [vmem:[#allocation5 + $0x86c] sm:$0xf]  ;;  %v7803_v47 = vor.u32 %v9493_v27, %v7800_v56  ;;  %v7784_v33 = vld [vmem:[#allocation5 + $0xa58] sm:$0xf0] }
 0x23f   : > { %v4303_v3 = vadd.f32 %v4302_v4, %v4284_v36  ;;  %4605 = vmatmul.bf16.vlgmr.msrb.gmra.mxu1 %v10536_v1  ;;  %4694 = vmatpush.bf16.msra.mxu2 %v7835_v52  ;;  %v9461_v1 = vld [vmem:[#allocation5 + $0x96c] sm:$0xf]  ;;  %v7547_v10 = vor.u32 %v9429_v0, %v7544_v41  ;;  %v7528_v36 = vld [vmem:[#allocation5 + $0x858] sm:$0xf0] }
 0x240   : > { %4624 = vmatmul.bf16.vlgmr.msrb.gmra.mxu2 %v10538_v5  ;;  %4643 = vmatmul.bf16.vlgmr.msrb.gmra.mxu3 %v10540_v6  ;;  %v9525_v16 = vld [vmem:[#allocation5 + $0xb6c] sm:$0xf]  ;;  %v7928_v5 = vld [vmem:[#allocation5 + $0xb78] sm:$0xf0]  ;;  %v7675_v53 = vor.u32 %v9461_v1, %v7672_v59 }
 0x241   : > { %4656 = vmatpush.bf16.msra.mxu0 %v7579_v51  ;;  %4675 = vmatpush.bf16.msra.mxu1 %v7707_v2  ;;  %v9489_v60 = vld [vmem:[#allocation5 + $0xa4c] sm:$0xf]  ;;  %v7931_v35 = vor.u32 %v9525_v16, %v7928_v5  ;;  %v7656_v51 = vld [vmem:[#allocation5 + $0x958] sm:$0xf0] }
 0x242   : > { %4713 = vmatpush.bf16.msra.mxu3 %v7963_v21  ;;  %v9425_v4 = vld [vmem:[#allocation5 + $0x84c] sm:$0xf]  ;;  %v7912_v12 = vld [vmem:[#allocation5 + $0xb58] sm:$0xf0]  ;;  %v7787_v2 = vor.u32 %v9489_v60, %v7784_v33 }
 0x243   : > { %v4321_v30 = vpop.f32.mrf.mxu2  ;;  %v4340_v38 = vpop.f32.mrf.mxu3  ;;  %4695 = vmatpush.bf16.msra.mxu2 %v7819_v63  ;;  %v9457_v52 = vld [vmem:[#allocation5 + $0x94c] sm:$0xf]  ;;  %v7531_v21 = vor.u32 %v9425_v4, %v7528_v36  ;;  %v7768_v32 = vld [vmem:[#allocation5 + $0xa38] sm:$0xf0] }
 0x244   : > { %v4322_v37 = vadd.f32 %v4321_v30, %v4303_v3  ;;  %v10835_v6 = vpop.f32.mrf.mxu0  ;;  %v10837_v42 = vpop.f32.mrf.mxu1  ;;  %v9521_v54 = vld [vmem:[#allocation5 + $0xb4c] sm:$0xf]  ;;  %v7659_v50 = vor.u32 %v9457_v52, %v7656_v51  ;;  %v7512_v11 = vld [vmem:[#allocation5 + $0x838] sm:$0xf0] }
 0x245   : > { %4657 = vmatpush.bf16.msra.mxu0 %v7563_v20  ;;  %4676 = vmatpush.bf16.msra.mxu1 %v7691_v19  ;;  %v9485_v61 = vld [vmem:[#allocation5 + $0xa2c] sm:$0xf]  ;;  %v7915_v3 = vor.u32 %v9521_v54, %v7912_v12  ;;  %v7640_v27 = vld [vmem:[#allocation5 + $0x938] sm:$0xf0] }
 0x246   : > { %v10839_v48 = vadd.f32 %v4340_v38, %v4322_v37  ;;  %4714 = vmatpush.bf16.msra.mxu3 %v7947_v34  ;;  %v9421_v31 = vld [vmem:[#allocation5 + $0x82c] sm:$0xf]  ;;  %v7896_v19 = vld [vmem:[#allocation5 + $0xb38] sm:$0xf0]  ;;  %v7771_v30 = vor.u32 %v9485_v61, %v7768_v32 }
 0x247   : > { %4696 = vmatpush.bf16.msra.mxu2 %v7803_v47  ;;  %v9453_v57 = vld [vmem:[#allocation5 + $0x92c] sm:$0xf]  ;;  %v7515_v38 = vor.u32 %v9421_v31, %v7512_v11  ;;  %v7752_v59 = vld [vmem:[#allocation5 + $0xa18] sm:$0xf0] }
 0x248   : > { %v9517_v56 = vld [vmem:[#allocation5 + $0xb2c] sm:$0xf]  ;;  %v7496_v5 = vld [vmem:[#allocation5 + $0x818] sm:$0xf0]  ;;  %v7643_v37 = vor.u32 %v9453_v57, %v7640_v27 }
 0x249   : > { %4658 = vmatpush.bf16.msra.mxu0 %v7547_v10  ;;  %4677 = vmatpush.bf16.msra.mxu1 %v7675_v53  ;;  %v9481_v41 = vld [vmem:[#allocation5 + $0xa0c] sm:$0xf]  ;;  %v7899_v47 = vor.u32 %v9517_v56, %v7896_v19  ;;  %v7624_v60 = vld [vmem:[#allocation5 + $0x918] sm:$0xf0] }
 0x24a   : > { %4715 = vmatpush.bf16.msra.mxu3 %v7931_v35  ;;  %v9417_v16 = vld [vmem:[#allocation5 + $0x80c] sm:$0xf]  ;;  %v8376_v4 = vld [vmem:[#allocation5 + $0xef8] sm:$0xf0]  ;;  %v7755_v54 = vor.u32 %v9481_v41, %v7752_v59 }
 0x24b   : > { %v10841_v63 = vpop.f32.mrf.mxu2  ;;  %v10843_v20 = vpop.f32.mrf.mxu3  ;;  %4697 = vmatpush.bf16.msra.mxu2 %v7787_v2  ;;  %v9449_v10 = vld [vmem:[#allocation5 + $0x90c] sm:$0xf]  ;;  %v8120_v52 = vld [vmem:[#allocation5 + $0xcf8] sm:$0xf0]  ;;  %v7499_v12 = vor.u32 %v9417_v16, %v7496_v5 }
 0x24c   : > { %v4288_v34 = vpop.f32.mrf.mxu0  ;;  %v4307_v0 = vpop.f32.mrf.mxu1  ;;  %v9513_v33 = vld [vmem:[#allocation5 + $0xb0c] sm:$0xf]  ;;  %v8248_v2 = vld [vmem:[#allocation5 + $0xdf8] sm:$0xf0] }
 0x24d   : > { %v4289_v1 = vadd.f32 %v4288_v34, %v10826_v44  ;;  %4659 = vmatpush.bf16.msra.mxu0 %v7531_v21  ;;  %4678 = vmatpush.bf16.msra.mxu1 %v7659_v50  ;;  %v7880_v44 = vld [vmem:[#allocation5 + $0xb18] sm:$0xf0]  ;;  %v9637_v35 = vld [vmem:[#allocation5 + $0xeec] sm:$0xf] }
 0x24e   : > { %4716 = vmatpush.bf16.msra.mxu3 %v7915_v3  ;;  %4591 = vmatmul.bf16.gmra.mxu0 %v10554_v8  ;;  %v9573_v36 = vld [vmem:[#allocation5 + $0xcec] sm:$0xf]  ;;  %v8504_v61 = vld [vmem:[#allocation5 + $0xff8] sm:$0xf0]  ;;  %v7627_v8 = vor.u32 %v9449_v10, %v7624_v60  ;;  %v8379_v3 = vor.u32 %v9637_v35, %v8376_v4 }
 0x24f   : > { %v4308_v53 = vadd.f32 %v4307_v0, %v4289_v1  ;;  %4610 = vmatmul.bf16.gmra.mxu1 %v10556_v9  ;;  %v9605_v51 = vld [vmem:[#allocation5 + $0xdec] sm:$0xf]  ;;  %4698 = vmatpush.bf16.msra.mxu2 %v7771_v30  ;;  %v7883_v9 = vor.u32 %v9513_v33, %v7880_v44  ;;  %v8104_v0 = vld [vmem:[#allocation5 + $0xcd8] sm:$0xf0] }
 0x250   : > { %4629 = vmatmul.bf16.gmra.mxu2 %v10558_v13  ;;  %4648 = vmatmul.bf16.gmra.mxu3 %v10560_v14  ;;  %v9669_v21 = vld [vmem:[#allocation5 + $0xfec] sm:$0xf]  ;;  %v8123_v13 = vor.u32 %v9573_v36, %v8120_v52  ;;  %v8360_v14 = vld [vmem:[#allocation5 + $0xed8] sm:$0xf0]  ;;  %v8251_v56 = vor.u32 %v9605_v51, %v8248_v2 }
 0x251   : > { %4660 = vmatpush.bf16.msra.mxu0 %v7515_v38  ;;  %4679 = vmatpush.bf16.msra.mxu1 %v7643_v37  ;;  %v9633_v31 = vld [vmem:[#allocation5 + $0xecc] sm:$0xf]  ;;  %v8507_v19 = vor.u32 %v9669_v21, %v8504_v61  ;;  %v8232_v1 = vld [vmem:[#allocation5 + $0xdd8] sm:$0xf0] }
 0x252   : > { %4717 = vmatpush.bf16.msra.mxu3 %v7899_v47  ;;  %v9569_v34 = vld [vmem:[#allocation5 + $0xccc] sm:$0xf]  ;;  %v8488_v38 = vld [vmem:[#allocation5 + $0xfd8] sm:$0xf0]  ;;  %v8363_v16 = vor.u32 %v9633_v31, %v8360_v14 }
 0x253   : > { %v4326_v32 = vpop.f32.mrf.mxu2  ;;  %v4345_v50 = vpop.f32.mrf.mxu3  ;;  %v9601_v41 = vld [vmem:[#allocation5 + $0xdcc] sm:$0xf]  ;;  %4699 = vmatpush.bf16.msra.mxu2 %v7755_v54  ;;  %v8107_v5 = vor.u32 %v9569_v34, %v8104_v0  ;;  %v8344_v60 = vld [vmem:[#allocation5 + $0xeb8] sm:$0xf0] }
 0x254   : > { %v4327_v11 = vadd.f32 %v4326_v32, %v4308_v53  ;;  %v10850_v57 = vpop.f32.mrf.mxu0  ;;  %v10852_v27 = vpop.f32.mrf.mxu1  ;;  %v9665_v30 = vld [vmem:[#allocation5 + $0xfcc] sm:$0xf]  ;;  %v8235_v37 = vor.u32 %v9601_v41, %v8232_v1  ;;  %v8088_v53 = vld [vmem:[#allocation5 + $0xcb8] sm:$0xf0] }
 0x255   : > { %4661 = vmatpush.bf16.msra.mxu0 %v7499_v12  ;;  %4680 = vmatpush.bf16.msra.mxu1 %v7627_v8  ;;  %v8491_v47 = vor.u32 %v9665_v30, %v8488_v38  ;;  %v9629_v10 = vld [vmem:[#allocation5 + $0xeac] sm:$0xf]  ;;  %v8216_v36 = vld [vmem:[#allocation5 + $0xdb8] sm:$0xf0] }
 0x256   : > { %v10854_v59 = vadd.f32 %v4345_v50, %v4327_v11  ;;  %4718 = vmatpush.bf16.msra.mxu3 %v7883_v9  ;;  %v9565_v33 = vld [vmem:[#allocation5 + $0xcac] sm:$0xf]  ;;  %v8472_v51 = vld [vmem:[#allocation5 + $0xfb8] sm:$0xf0]  ;;  %v8347_v2 = vor.u32 %v9629_v10, %v8344_v60 }
 0x257   : > { %4768 = vmatpush.bf16.msrb.mxu2 %v8379_v3  ;;  %v9597_v44 = vld [vmem:[#allocation5 + $0xdac] sm:$0xf]  ;;  %v8091_v21 = vor.u32 %v9565_v33, %v8088_v53  ;;  %v8328_v8 = vld [vmem:[#allocation5 + $0xe98] sm:$0xf0] }
 0x258   : > { %v9661_v52 = vld [vmem:[#allocation5 + $0xfac] sm:$0xf]  ;;  %v8219_v9 = vor.u32 %v9597_v44, %v8216_v36  ;;  %v8072_v3 = vld [vmem:[#allocation5 + $0xc98] sm:$0xf0] }
 0x259   : > { %4730 = vmatpush.bf16.msrb.mxu0 %v8123_v13  ;;  %4749 = vmatpush.bf16.msrb.mxu1 %v8251_v56  ;;  %v9625_v61 = vld [vmem:[#allocation5 + $0xe8c] sm:$0xf]  ;;  %v8475_v32 = vor.u32 %v9661_v52, %v8472_v51  ;;  %v8200_v31 = vld [vmem:[#allocation5 + $0xd98] sm:$0xf0] }
 0x25a   : > { %4787 = vmatpush.bf16.msrb.mxu3 %v8507_v19  ;;  %v9561_v50 = vld [vmem:[#allocation5 + $0xc8c] sm:$0xf]  ;;  %v8456_v11 = vld [vmem:[#allocation5 + $0xf98] sm:$0xf0]  ;;  %v8331_v56 = vor.u32 %v9625_v61, %v8328_v8 }
 0x25b   : > { %v10856_v35 = vpop.f32.mrf.mxu2  ;;  %v10858_v4 = vpop.f32.mrf.mxu3  ;;  %4769 = vmatpush.bf16.msrb.mxu2 %v8363_v16  ;;  %v9593_v13 = vld [vmem:[#allocation5 + $0xd8c] sm:$0xf]  ;;  %v8075_v19 = vor.u32 %v9561_v50, %v8072_v3  ;;  %v8312_v0 = vld [vmem:[#allocation5 + $0xe78] sm:$0xf0] }
 0x25c   : > { %v10860_v54 = vpop.f32.mrf.mxu0  ;;  %v10862_v12 = vpop.f32.mrf.mxu1  ;;  %v9657_v14 = vld [vmem:[#allocation5 + $0xf8c] sm:$0xf]  ;;  %v8203_v41 = vor.u32 %v9593_v13, %v8200_v31  ;;  %v8056_v30 = vld [vmem:[#allocation5 + $0xc78] sm:$0xf0] }
 0x25d   : > { %4731 = vmatpush.bf16.msrb.mxu0 %v8107_v5  ;;  %4750 = vmatpush.bf16.msrb.mxu1 %v8235_v37  ;;  %v9621_v34 = vld [vmem:[#allocation5 + $0xe6c] sm:$0xf]  ;;  %v8459_v1 = vor.u32 %v9657_v14, %v8456_v11  ;;  %v8296_v53 = vld [vmem:[#allocation5 + $0xe58] sm:$0xf0] }
 0x25e   : > { %4788 = vmatpush.bf16.msrb.mxu3 %v8491_v47  ;;  %4662 = vmatmul.bf16.vlgmr.msra.gmra.mxu0 %v10574_v23  ;;  %v9557_v23 = vld [vmem:[#allocation5 + $0xc6c] sm:$0xf]  ;;  %v8315_v10 = vor.u32 %v9621_v34, %v8312_v0  ;;  %v8040_v51 = vld [vmem:[#allocation5 + $0xc58] sm:$0xf0] }
 0x25f   : > { %4681 = vmatmul.bf16.vlgmr.msra.gmra.mxu1 %v10576_v24  ;;  %4770 = vmatpush.bf16.msrb.mxu2 %v8347_v2  ;;  %v9589_v24 = vld [vmem:[#allocation5 + $0xd6c] sm:$0xf]  ;;  %v8059_v60 = vor.u32 %v9557_v23, %v8056_v30  ;;  %v8424_v8 = vld [vmem:[#allocation5 + $0xf58] sm:$0xf0] }
 0x260   : > { %4700 = vmatmul.bf16.vlgmr.msra.gmra.mxu2 %v10578_v28  ;;  %4719 = vmatmul.bf16.vlgmr.msra.gmra.mxu3 %v10580_v29  ;;  %v8184_v28 = vld [vmem:[#allocation5 + $0xd78] sm:$0xf0]  ;;  %v9653_v5 = vld [vmem:[#allocation5 + $0xf6c] sm:$0xf] }
 0x261   : > { %4732 = vmatpush.bf16.msrb.mxu0 %v8091_v21  ;;  %4751 = vmatpush.bf16.msrb.mxu1 %v8219_v9  ;;  %v8440_v29 = vld [vmem:[#allocation5 + $0xf78] sm:$0xf0]  ;;  %v9617_v33 = vld [vmem:[#allocation5 + $0xe4c] sm:$0xf]  ;;  %v8187_v44 = vor.u32 %v9589_v24, %v8184_v28 }
 0x262   : > { %4789 = vmatpush.bf16.msrb.mxu3 %v8475_v32  ;;  %v8443_v36 = vor.u32 %v9653_v5, %v8440_v29  ;;  %v9553_v52 = vld [vmem:[#allocation5 + $0xc4c] sm:$0xf]  ;;  %v8168_v21 = vld [vmem:[#allocation5 + $0xd58] sm:$0xf0]  ;;  %v8299_v9 = vor.u32 %v9617_v33, %v8296_v53 }
 0x263   : > { %v10868_v38 = vpop.f32.mrf.mxu2  ;;  %v10870_v16 = vpop.f32.mrf.mxu3  ;;  %4771 = vmatpush.bf16.msrb.mxu2 %v8331_v56  ;;  %v9585_v2 = vld [vmem:[#allocation5 + $0xd4c] sm:$0xf]  ;;  %v8043_v32 = vor.u32 %v9553_v52, %v8040_v51  ;;  %v8280_v3 = vld [vmem:[#allocation5 + $0xe38] sm:$0xf0] }
 0x264   : > { %v10872_v37 = vpop.f32.mrf.mxu0  ;;  %v10874_v47 = vpop.f32.mrf.mxu1  ;;  %v9649_v61 = vld [vmem:[#allocation5 + $0xf4c] sm:$0xf]  ;;  %v8171_v13 = vor.u32 %v9585_v2, %v8168_v21  ;;  %v8024_v11 = vld [vmem:[#allocation5 + $0xc38] sm:$0xf0]  ;;  %v8622_v21 = vld [vmem:[#allocation8 + $0xe0] sm:$0xf] }
 0x265   : > { %4733 = vmatpush.bf16.msrb.mxu0 %v8075_v19  ;;  %4752 = vmatpush.bf16.msrb.mxu1 %v8203_v41  ;;  %v9613_v50 = vld [vmem:[#allocation5 + $0xe2c] sm:$0xf]  ;;  %v8427_v31 = vor.u32 %v9649_v61, %v8424_v8  ;;  %v8152_v0 = vld [vmem:[#allocation5 + $0xd38] sm:$0xf0]  ;;  %v9702_v61 = vld [vmem:[#allocation8 + $0xec] sm:$0xf0] }
 0x266   : > { %4790 = vmatpush.bf16.msrb.mxu3 %v8459_v1  ;;  %v9549_v14 = vld [vmem:[#allocation5 + $0xc2c] sm:$0xf]  ;;  %v8408_v1 = vld [vmem:[#allocation5 + $0xf38] sm:$0xf0]  ;;  %v8283_v24 = vor.u32 %v9613_v50, %v8280_v3  ;;  %v9766_v50 = vld [vmem:[#allocation8 + $0x2ec] sm:$0xf0] }
 0x267   : > { %4772 = vmatpush.bf16.msrb.mxu2 %v8315_v10  ;;  %v9581_v56 = vld [vmem:[#allocation5 + $0xd2c] sm:$0xf]  ;;  %v8027_v28 = vor.u32 %v9549_v14, %v8024_v11  ;;  %v8264_v29 = vld [vmem:[#allocation5 + $0xe18] sm:$0xf0]  ;;  %v8606_v14 = vld [vmem:[#allocation8 + $0xc0] sm:$0xf] }
 0x268   : > { %v9645_v41 = vld [vmem:[#allocation5 + $0xf2c] sm:$0xf]  ;;  %v8155_v33 = vor.u32 %v9581_v56, %v8152_v0  ;;  %v8136_v52 = vld [vmem:[#allocation5 + $0xd18] sm:$0xf0] }
 0x269   : > { %4734 = vmatpush.bf16.msrb.mxu0 %v8059_v60  ;;  %4753 = vmatpush.bf16.msrb.mxu1 %v8187_v44  ;;  %v9609_v5 = vld [vmem:[#allocation5 + $0xe0c] sm:$0xf]  ;;  %v4286_v60 = vadd.f32 %v10835_v6, %v10819_v15  ;;  %v8411_v53 = vor.u32 %v9645_v41, %v8408_v1  ;;  %v8008_v44 = vld [vmem:[#allocation5 + $0xc18] sm:$0xf0]  ;;  %v8750_v15 = vld [vmem:[#allocation8 + $0x1e0] sm:$0xf] }
 0x26a   : > { %4791 = vmatpush.bf16.msrb.mxu3 %v8443_v36  ;;  %v9545_v10 = vld [vmem:[#allocation5 + $0xc0c] sm:$0xf]  ;;  %v8392_v2 = vld [vmem:[#allocation5 + $0xf18] sm:$0xf0]  ;;  %v9734_v6 = vld [vmem:[#allocation8 + $0x1ec] sm:$0xf0]  ;;  %v8267_v8 = vor.u32 %v9609_v5, %v8264_v29  ;;  %v4360_v29 = vadd.f32 %v10860_v54, %v10839_v48 }
 0x26b   : > { %v10876_v19 = vpop.f32.mrf.mxu2  ;;  %v10878_v34 = vpop.f32.mrf.mxu3  ;;  %4773 = vmatpush.bf16.msrb.mxu2 %v8299_v9  ;;  %v9577_v36 = vld [vmem:[#allocation5 + $0xd0c] sm:$0xf]  ;;  %v8011_v9 = vor.u32 %v9545_v10, %v8008_v44  ;;  %v9698_v1 = vld [vmem:[#allocation8 + $0xcc] sm:$0xf0]  ;;  %v8846_v54 = vld [vmem:[#allocation8 + $0x2a0] sm:$0xf] }
 0x26c   : > { %v10880_v23 = vpop.f32.mrf.mxu0  ;;  %v10882_v30 = vpop.f32.mrf.mxu1  ;;  %v9641_v51 = vld [vmem:[#allocation5 + $0xf0c] sm:$0xf]  ;;  %v9762_v5 = vld [vmem:[#allocation8 + $0x2cc] sm:$0xf0]  ;;  %v4379_v44 = vadd.f32 %v10862_v12, %v4360_v29 }
 0x26d   : > { %4735 = vmatpush.bf16.msrb.mxu0 %v8043_v32  ;;  %4754 = vmatpush.bf16.msrb.mxu1 %v8171_v13  ;;  %v8878_v32 = vld [vmem:[#allocation8 + $0x2e0] sm:$0xf]  ;;  %v8395_v3 = vor.u32 %v9641_v51, %v8392_v2  ;;  %v9726_v2 = vld [vmem:[#allocation8 + $0x1ac] sm:$0xf0] }
 0x26e   : > { %4792 = vmatpush.bf16.msrb.mxu3 %v8427_v31  ;;  %4667 = vmatmul.bf16.gmra.mxu0 %v10594_v39  ;;  %v4305_v39 = vadd.f32 %v10837_v42, %v4286_v60  ;;  %v8751_v31 = vor.u32 %v9734_v6, %v8750_v15  ;;  %v8879_v41 = vor.u32 %v9766_v50, %v8878_v32  ;;  %v8734_v42 = vld [vmem:[#allocation8 + $0x1c0] sm:$0xf] }
 0x26f   : > { %4686 = vmatmul.bf16.gmra.mxu1 %v10596_v40  ;;  %4774 = vmatpush.bf16.msrb.mxu2 %v8283_v24  ;;  %v8139_v40 = vor.u32 %v9577_v36, %v8136_v52  ;;  %v9730_v24 = vld [vmem:[#allocation8 + $0x1cc] sm:$0xf0]  ;;  %v8718_v51 = vld [vmem:[#allocation8 + $0x1a0] sm:$0xf] }
 0x270   : > { %4705 = vmatmul.bf16.gmra.mxu2 %v10598_v45  ;;  %4724 = vmatmul.bf16.gmra.mxu3 %v10600_v46  ;;  %v8623_v46 = vor.u32 %v9702_v61, %v8622_v21  ;;  %v4324_v11 = vadd.f32 %v10841_v63, %v4305_v39  ;;  %v8607_v63 = vor.u32 %v9698_v1, %v8606_v14  ;;  %v9694_v52 = vld [vmem:[#allocation8 + $0xac] sm:$0xf0]  ;;  %v8686_v1 = vld [vmem:[#allocation8 + $0x160] sm:$0xf] }
 0x271   : > { %4736 = vmatpush.bf16.msrb.mxu0 %v8027_v28  ;;  %4755 = vmatpush.bf16.msrb.mxu1 %v8155_v33  ;;  %v8862_v28 = vld [vmem:[#allocation8 + $0x2c0] sm:$0xf]  ;;  %v8735_v10 = vor.u32 %v9730_v24, %v8734_v42  ;;  %v9758_v61 = vld [vmem:[#allocation8 + $0x2ac] sm:$0xf0]  ;;  %v8719_v12 = vor.u32 %v9726_v2, %v8718_v51 }
 0x272   : > { %4793 = vmatpush.bf16.msrb.mxu3 %v8411_v53  ;;  %v4343_v60 = vadd.f32 %v10843_v20, %v4324_v11  ;;  %v8863_v33 = vor.u32 %v9762_v5, %v8862_v28  ;;  %v8590_v53 = vld [vmem:[#allocation8 + $0xa0] sm:$0xf]  ;;  %v4398_v20 = vadd.f32 %v10868_v38, %v4379_v44  ;;  %v8847_v50 = vor.u32 %v9758_v61, %v8846_v54  ;;  %v9690_v39 = vld [vmem:[#allocation8 + $0x8c] sm:$0xf0] }
 0x273   : > { %v10891_v13 = vpop.f32.mrf.mxu2  ;;  %v10893_v45 = vpop.f32.mrf.mxu3  ;;  %4775 = vmatpush.bf16.msrb.mxu2 %v8267_v8  ;;  %v8591_v8 = vor.u32 %v9694_v52, %v8590_v53  ;;  %v8830_v38 = vld [vmem:[#allocation8 + $0x280] sm:$0xf]  ;;  %v9718_v42 = vld [vmem:[#allocation8 + $0x16c] sm:$0xf0] }
 0x274   : > { %v10896_v56 = vpop.f32.mrf.mxu0  ;;  %v10898_v0 = vpop.f32.mrf.mxu1  ;;  %v4362_v36 = vadd.f32 %v10872_v37, %v4343_v60  ;;  %v4291_v37 = vadd.f32 %v10850_v57, %v10829_v26  ;;  %v9750_v28 = vld [vmem:[#allocation8 + $0x26c] sm:$0xf0]  ;;  %v4365_v60 = vadd.f32 %v10880_v23, %v10854_v59  ;;  %v8670_v52 = vld [vmem:[#allocation8 + $0x140] sm:$0xf] }
 0x275   : > { %4737 = vmatpush.bf16.msrb.mxu0 %v8011_v9  ;;  %4756 = vmatpush.bf16.msrb.mxu1 %v8139_v40  ;;  %v8574_v9 = vld [vmem:[#allocation8 + $0x80] sm:$0xf]  ;;  %v9714_v51 = vld [vmem:[#allocation8 + $0x14c] sm:$0xf0] }
 0x276   : > { %4794 = vmatpush.bf16.msrb.mxu3 %v8395_v3  ;;  %v4381_v32 = vadd.f32 %v10874_v47, %v4362_v36  ;;  %v8702_v40 = vld [vmem:[#allocation8 + $0x180] sm:$0xf]  ;;  %v9722_v3 = vld [vmem:[#allocation8 + $0x18c] sm:$0xf0]  ;;  %v8575_v26 = vor.u32 %v9690_v39, %v8574_v9  ;;  %v4310_v11 = vadd.f32 %v10852_v27, %v4291_v37  ;;  %v8687_v27 = vor.u32 %v9718_v42, %v8686_v1  ;;  %v8624_v42 = vld [vmem:[#allocation8 + $0xf0] sm:$0xf0] }
 0x277   : > { %5646 = vmatpush.bf16.msra.mxu2 %v8879_v41  ;;  %v8703_v57 = vor.u32 %v9722_v3, %v8702_v40  ;;  %v8558_v47 = vld [vmem:[#allocation8 + $0x60] sm:$0xf]  ;;  %v9686_v41 = vld [vmem:[#allocation8 + $0x6c] sm:$0xf0] }
 0x278   : > { %v4400_v14 = vadd.f32 %v10876_v19, %v4381_v32  ;;  %v8814_v19 = vld [vmem:[#allocation8 + $0x260] sm:$0xf]  ;;  %v9682_v36 = vld [vmem:[#allocation8 + $0x4c] sm:$0xf0] }
 0x279   : > { %5608 = vmatpush.bf16.msra.mxu0 %v8623_v46  ;;  %5627 = vmatpush.bf16.msra.mxu1 %v8751_v31  ;;  %v9754_v46 = vld [vmem:[#allocation8 + $0x28c] sm:$0xf0]  ;;  %v4417_v31 = vadd.f32 %v10870_v16, %v4398_v20  ;;  %v8815_v44 = vor.u32 %v9750_v28, %v8814_v19  ;;  %v8671_v20 = vor.u32 %v9714_v51, %v8670_v52  ;;  %v8654_v9 = vld [vmem:[#allocation8 + $0x120] sm:$0xf]  ;;  %v8736_v51 = vld [vmem:[#allocation8 + $0x1d0] sm:$0xf0] }
 0x27a   : > { %v9746_v2 = vld [vmem:[#allocation8 + $0x24c] sm:$0xf0]  ;;  %v8782_v39 = vld [vmem:[#allocation8 + $0x220] sm:$0xf] }
 0x27b   : > { %v10905_v21 = vpop.f32.mrf.mxu2  ;;  %v10907_v48 = vpop.f32.mrf.mxu3  ;;  %5647 = vmatpush.bf16.msra.mxu2 %v8863_v33  ;;  %v9710_v37 = vld [vmem:[#allocation8 + $0x12c] sm:$0xf0] }
 0x27c   : > { %v4435_v15 = vpop.f32.mrf.mxu0  ;;  %v4454_v6 = vpop.f32.mrf.mxu1  ;;  %v9738_v1 = vld [vmem:[#allocation8 + $0x20c] sm:$0xf0] }
 0x27d   : > { %5609 = vmatpush.bf16.msra.mxu0 %v8607_v63  ;;  %5628 = vmatpush.bf16.msra.mxu1 %v8735_v10  ;;  %v8559_v63 = vor.u32 %v9686_v41, %v8558_v47  ;;  %v8542_v10 = vld [vmem:[#allocation8 + $0x40] sm:$0xf]  ;;  %v9706_v47 = vld [vmem:[#allocation8 + $0x10c] sm:$0xf0] }
 0x27e   : > { %4738 = vmatmul.bf16.vlgmr.msrb.gmra.mxu0 %v10614_v17  ;;  %v4436_v17 = vadd.f32 %v4435_v15, %v4417_v31  ;;  %v8543_v61 = vor.u32 %v9682_v36, %v8542_v10  ;;  %v8526_v15 = vld [vmem:[#allocation8 + $0x20] sm:$0xf] }
 0x27f   : > { %4757 = vmatmul.bf16.vlgmr.msrb.gmra.mxu1 %v10616_v18  ;;  %5648 = vmatpush.bf16.msra.mxu2 %v8847_v50  ;;  %v8831_v18 = vor.u32 %v9754_v46, %v8830_v38  ;;  %v8766_v41 = vld [vmem:[#allocation8 + $0x200] sm:$0xf] }
 0x280   : > { %4776 = vmatmul.bf16.vlgmr.msrb.gmra.mxu2 %v10618_v22  ;;  %4795 = vmatmul.bf16.vlgmr.msrb.gmra.mxu3 %v10620_v25  ;;  %v4329_v22 = vadd.f32 %v10856_v35, %v4310_v11  ;;  %v4419_v25 = vadd.f32 %v10878_v34, %v4400_v14  ;;  %v4455_v33 = vadd.f32 %v4454_v6, %v4436_v17  ;;  %v8798_v35 = vld [vmem:[#allocation8 + $0x240] sm:$0xf] }
 0x281   : > { %5610 = vmatpush.bf16.msra.mxu0 %v8591_v8  ;;  %5629 = vmatpush.bf16.msra.mxu1 %v8719_v12  ;;  %v4384_v8 = vadd.f32 %v10882_v30, %v4365_v60  ;;  %v8799_v6 = vor.u32 %v9746_v2, %v8798_v35  ;;  %v9678_v12 = vld [vmem:[#allocation8 + $0x2c] sm:$0xf0]  ;;  %v8510_v14 = vld [vmem:[#allocation8] sm:$0xf]  ;;  %v9760_v35 = vld [vmem:[#allocation8 + $0x2c4] sm:$0xf] }
 0x282   : > { %v4348_v34 = vadd.f32 %v10858_v4, %v4329_v22  ;;  %v9742_v4 = vld [vmem:[#allocation8 + $0x22c] sm:$0xf0]  ;;  %v8527_v30 = vor.u32 %v9678_v12, %v8526_v15  ;;  %v8864_v2 = vld [vmem:[#allocation8 + $0x2d0] sm:$0xf0]  ;;  %v9724_v12 = vld [vmem:[#allocation8 + $0x1a4] sm:$0xf] }
 0x283   : > { %v4473_v16 = vpop.f32.mrf.mxu2  ;;  %v4492_v24 = vpop.f32.mrf.mxu3  ;;  %5649 = vmatpush.bf16.msra.mxu2 %v8831_v18  ;;  %v4403_v40 = vadd.f32 %v10891_v13, %v4384_v8  ;;  %v8783_v18 = vor.u32 %v9742_v4, %v8782_v39  ;;  %v9700_v13 = vld [vmem:[#allocation8 + $0xe4] sm:$0xf]  ;;  %v8867_v15 = vor.u32 %v9760_v35, %v8864_v2  ;;  %v8848_v39 = vld [vmem:[#allocation8 + $0x2b0] sm:$0xf0] }
 0x284   : > { %v4437_v5 = vpop.f32.mrf.mxu0  ;;  %v4456_v29 = vpop.f32.mrf.mxu1  ;;  %v4474_v54 = vadd.f32 %v4473_v16, %v4455_v33  ;;  %v4367_v59 = vadd.f32 %v10896_v56, %v4348_v34  ;;  %v8655_v56 = vor.u32 %v9710_v37, %v8654_v9  ;;  %v9732_v16 = vld [vmem:[#allocation8 + $0x1e4] sm:$0xf]  ;;  %v8720_v9 = vld [vmem:[#allocation8 + $0x1b0] sm:$0xf0] }
 0x285   : > { %5611 = vmatpush.bf16.msra.mxu0 %v8575_v26  ;;  %5630 = vmatpush.bf16.msra.mxu1 %v8703_v57  ;;  %v4438_v53 = vadd.f32 %v4437_v5, %v4419_v25  ;;  %v9674_v26 = vld [vmem:[#allocation8 + $0xc] sm:$0xf0]  ;;  %v8638_v57 = vld [vmem:[#allocation8 + $0x100] sm:$0xf]  ;;  %v4422_v19 = vadd.f32 %v10893_v45, %v4403_v40  ;;  %v8880_v5 = vld [vmem:[#allocation8 + $0x2f0] sm:$0xf0]  ;;  %v8627_v45 = vor.u32 %v9700_v13, %v8624_v42 }
 0x286   : > { %v4493_v3 = vadd.f32 %v4492_v24, %v4474_v54  ;;  %v4386_v11 = vadd.f32 %v10898_v0, %v4367_v59  ;;  %v8752_v24 = vld [vmem:[#allocation8 + $0x1f0] sm:$0xf0]  ;;  %v9764_v0 = vld [vmem:[#allocation8 + $0x2e4] sm:$0xf] }
 0x287   : > { %v4457_v23 = vadd.f32 %v4456_v29, %v4438_v53  ;;  %5650 = vmatpush.bf16.msra.mxu2 %v8815_v44  ;;  %v8639_v29 = vor.u32 %v9706_v47, %v8638_v57  ;;  %v8755_v60 = vor.u32 %v9732_v16, %v8752_v24  ;;  %v8883_v33 = vor.u32 %v9764_v0, %v8880_v5  ;;  %v9696_v53 = vld [vmem:[#allocation8 + $0xc4] sm:$0xf]  ;;  %v8592_v59 = vld [vmem:[#allocation8 + $0xb0] sm:$0xf0] }
 0x288   : > { %v4405_v28 = vadd.f32 %v10905_v21, %v4386_v11  ;;  %v4808_v22 = vmax.f32 %v4493_v3, 0.0  ;;  %v9728_v44 = vld [vmem:[#allocation8 + $0x1c4] sm:$0xf]  ;;  %v8704_v11 = vld [vmem:[#allocation8 + $0x190] sm:$0xf0] }
 0x289   : > { %5612 = vmatpush.bf16.msra.mxu0 %v8559_v63  ;;  %5631 = vmatpush.bf16.msra.mxu1 %v8687_v27  ;;  %v8767_v27 = vor.u32 %v9738_v1, %v8766_v41  ;;  %v9692_v8 = vld [vmem:[#allocation8 + $0xa4] sm:$0xf]  ;;  %v8832_v1 = vld [vmem:[#allocation8 + $0x290] sm:$0xf0] }
 0x28a   : > { %v9688_v3 = vld [vmem:[#allocation8 + $0x84] sm:$0xf]  ;;  %v11232_v42 = vld [vmem:[#allocation28_spill] sm:$0xff] }
 0x28b   : > { %v4475_v32 = vpop.f32.mrf.mxu2  ;;  %v4494_v50 = vpop.f32.mrf.mxu3  ;;  %5651 = vmatpush.bf16.msra.mxu2 %v8799_v6  ;;  %v9720_v47 = vld [vmem:[#allocation8 + $0x184] sm:$0xf]  ;;  %v8560_v24 = vld [vmem:[#allocation8 + $0x70] sm:$0xf0] }
 0x28c   : > { %v4476_v38 = vadd.f32 %v4475_v32, %v4457_v23  ;;  %v4440_v46 = vpop.f32.mrf.mxu0  ;;  %v4459_v31 = vpop.f32.mrf.mxu1  ;;  %v8595_v32 = vor.u32 %v9692_v8, %v8592_v59  ;;  %v9752_v41 = vld [vmem:[#allocation8 + $0x284] sm:$0xf]  ;;  %v8688_v5 = vld [vmem:[#allocation8 + $0x170] sm:$0xf0] }
 0x28d   : > { %5613 = vmatpush.bf16.msra.mxu0 %v8543_v61  ;;  %5632 = vmatpush.bf16.msra.mxu1 %v8671_v20  ;;  %v4441_v63 = vadd.f32 %v4440_v46, %v4422_v19  ;;  %v8739_v20 = vor.u32 %v9728_v44, %v8736_v51  ;;  %v9684_v16 = vld [vmem:[#allocation8 + $0x64] sm:$0xf]  ;;  %v8672_v51 = vld [vmem:[#allocation8 + $0x150] sm:$0xf0] }
 0x28e   : > { %v4495_v17 = vadd.f32 %v4494_v50, %v4476_v38  ;;  %4743 = vmatmul.bf16.gmra.mxu0 %v10634_v55  ;;  %v8511_v55 = vor.u32 %v9674_v26, %v8510_v14  ;;  %v9756_v50 = vld [vmem:[#allocation8 + $0x2a4] sm:$0xf]  ;;  %v8576_v38 = vld [vmem:[#allocation8 + $0x90] sm:$0xf0] }
 0x28f   : > { %4762 = vmatmul.bf16.gmra.mxu1 %v10636_v58  ;;  %5652 = vmatpush.bf16.msra.mxu2 %v8783_v18  ;;  %v4460_v34 = vadd.f32 %v4459_v31, %v4441_v63  ;;  %v8851_v57 = vor.u32 %v9756_v50, %v8848_v39  ;;  %v8579_v18 = vor.u32 %v9688_v3, %v8576_v38  ;;  %v9716_v0 = vld [vmem:[#allocation8 + $0x164] sm:$0xf] }
 0x290   : > { %v4812_v25 = vmax.f32 %v4495_v17, 0.0  ;;  %4781 = vmatmul.bf16.gmra.mxu2 %v10638_v62  ;;  %4800 = vmatmul.bf16.gmra.mxu3 %v11219_v49  ;;  %v8608_v62 = vld [vmem:[#allocation8 + $0xd0] sm:$0xf0]  ;;  %v4424_v49 = vadd.f32 %v10907_v48, %v4405_v28  ;;  %v9944_v48 = vld [vmem:[#allocation7] sm:$0xf]  ;;  %v8691_v44 = vor.u32 %v9716_v0, %v8688_v5 }
 0x291   : > { %5614 = vmatpush.bf16.msra.mxu0 %v8527_v30  ;;  %5633 = vmatpush.bf16.msra.mxu1 %v8655_v56  ;;  %v8611_v61 = vor.u32 %v9696_v53, %v8608_v62  ;;  %v10938_v6 = vperm.slane %v9944_v48, 3  ;;  %v8723_v56 = vor.u32 %v9724_v12, %v8720_v9  ;;  %v9748_v63 = vld [vmem:[#allocation8 + $0x264] sm:$0xf]  ;;  %v8656_v48 = vld [vmem:[#allocation8 + $0x130] sm:$0xf0] }
 0x292   : > { %v10935_v58 = vpack.c.bf16 %v4812_v25, %v4808_v22  ;;  %v8707_v22 = vor.u32 %v9720_v47, %v8704_v11  ;;  %v8835_v25 = vor.u32 %v9752_v41, %v8832_v1  ;;  %v9740_v9 = vld [vmem:[#allocation8 + $0x224] sm:$0xf]  ;;  %v9735_v41 = vld [vmem:[#allocation8 + $0x1f4] sm:$0xf0] }
 0x293   : > { %v4478_v10 = vpop.f32.mrf.mxu2  ;;  %v4497_v21 = vpop.f32.mrf.mxu3  ;;  %5653 = vmatpush.bf16.msra.mxu2 %v8767_v27  ;;  %v8816_v27 = vld [vmem:[#allocation8 + $0x270] sm:$0xf0]  ;;  %v9672_v39 = vld [vmem:[#allocation8 + $0x4] sm:$0xf] }
 0x294   : > { %v4442_v36 = vpop.f32.mrf.mxu0  ;;  %v4461_v52 = vpop.f32.mrf.mxu1  ;;  %v4479_v23 = vadd.f32 %v4478_v10, %v4460_v34  ;;  %v9744_v34 = vld [vmem:[#allocation8 + $0x244] sm:$0xf] }
 0x295   : > { %5615 = vmatpush.bf16.msra.mxu0 %v8511_v55  ;;  %5634 = vmatpush.bf16.msra.mxu1 %v8639_v29  ;;  %v4443_v54 = vadd.f32 %v4442_v36, %v4424_v49  ;;  %v8563_v29 = vor.u32 %v9684_v16, %v8560_v24  ;;  %v8819_v36 = vor.u32 %v9748_v63, %v8816_v27  ;;  %v9736_v47 = vld [vmem:[#allocation8 + $0x204] sm:$0xf]  ;;  %v8886_v24 = vld [vmem:[#allocation8 + $0x2e8] sm:$0xf]  ;;  %v9731_v27 = vld [vmem:[#allocation8 + $0x1d4] sm:$0xf0] }
 0x296   : > { %v4498_v46 = vadd.f32 %v4497_v21, %v4479_v23  ;;  %v9680_v21 = vld [vmem:[#allocation8 + $0x44] sm:$0xf]  ;;  %v8742_v63 = vld [vmem:[#allocation8 + $0x1c8] sm:$0xf] }
 0x297   : > { %5722 = vmatpush.bf16.msrb.mxu2 %v8883_v33  ;;  %v4462_v37 = vadd.f32 %v4461_v52, %v4443_v54  ;;  %v9712_v52 = vld [vmem:[#allocation8 + $0x144] sm:$0xf]  ;;  %v8800_v54 = vld [vmem:[#allocation8 + $0x250] sm:$0xf0] }
 0x298   : > { %v4816_v19 = vmax.f32 %v4498_v46, 0.0  ;;  %v8675_v8 = vor.u32 %v9712_v52, %v8672_v51  ;;  %v8803_v59 = vor.u32 %v9744_v34, %v8800_v54  ;;  %v9708_v23 = vld [vmem:[#allocation8 + $0x124] sm:$0xf]  ;;  %v8743_v51 = vor.u32 %v9731_v27, %v8742_v63  ;;  %v8726_v54 = vld [vmem:[#allocation8 + $0x1a8] sm:$0xf] }
 0x299   : > { %5684 = vmatpush.bf16.msrb.mxu0 %v8627_v45  ;;  %5703 = vmatpush.bf16.msrb.mxu1 %v8755_v60  ;;  %v8544_v60 = vld [vmem:[#allocation8 + $0x50] sm:$0xf0]  ;;  %v8659_v46 = vor.u32 %v9708_v23, %v8656_v48  ;;  %v8582_v48 = vld [vmem:[#allocation8 + $0x88] sm:$0xf] }
 0x29a   : > { %v8547_v2 = vor.u32 %v9680_v21, %v8544_v60  ;;  %v8870_v60 = vld [vmem:[#allocation8 + $0x2c8] sm:$0xf] }
 0x29b   : > { %v4480_v4 = vpop.f32.mrf.mxu2  ;;  %v4499_v40 = vpop.f32.mrf.mxu3  ;;  %5723 = vmatpush.bf16.msrb.mxu2 %v8867_v15  ;;  %v8528_v15 = vld [vmem:[#allocation8 + $0x30] sm:$0xf0] }
 0x29c   : > { %v4481_v31 = vadd.f32 %v4480_v4, %v4462_v37  ;;  %v4511_v14 = vpop.f32.mrf.mxu0  ;;  %v4530_v30 = vpop.f32.mrf.mxu1  ;;  %v8784_v37 = vld [vmem:[#allocation8 + $0x230] sm:$0xf0] }
 0x29d   : > { %5685 = vmatpush.bf16.msrb.mxu0 %v8611_v61  ;;  %5704 = vmatpush.bf16.msrb.mxu1 %v8739_v20  ;;  %v4512_v26 = vadd.f32 %v4511_v14, %v10938_v6  ;;  %v9676_v20 = vld [vmem:[#allocation8 + $0x24] sm:$0xf]  ;;  %v8512_v4 = vld [vmem:[#allocation8 + $0x10] sm:$0xf0]  ;;  %v9703_v14 = vld [vmem:[#allocation8 + $0xf4] sm:$0xf0] }
 0x29e   : > { %v4500_v17 = vadd.f32 %v4499_v40, %v4481_v31  ;;  %5616 = vmatmul.bf16.vlgmr.msra.gmra.mxu0 %v11232_v42  ;;  %v8531_v12 = vor.u32 %v9676_v20, %v8528_v15  ;;  %v8630_v31 = vld [vmem:[#allocation8 + $0xe8] sm:$0xf]  ;;  %v8515_v11 = vor.u32 %v9672_v39, %v8512_v4 }
 0x29f   : > { %v4531_v13 = vadd.f32 %v4530_v30, %v4512_v26  ;;  %5635 = vmatmul.bf16.vlgmr.msra.gmra.mxu1 %v10803_v43  ;;  %5724 = vmatpush.bf16.msrb.mxu2 %v8851_v57  ;;  %v9704_v26 = vld [vmem:[#allocation8 + $0x104] sm:$0xf]  ;;  %v8640_v57 = vld [vmem:[#allocation8 + $0x110] sm:$0xf0]  ;;  %v8631_v16 = vor.u32 %v9703_v14, %v8630_v31  ;;  %v8838_v4 = vld [vmem:[#allocation8 + $0x288] sm:$0xf] }
 0x2a0   : > { %v4820_v28 = vmax.f32 %v4500_v17, 0.0  ;;  %5654 = vmatmul.bf16.vlgmr.msra.gmra.mxu2 %v10935_v58  ;;  %v8768_v17 = vld [vmem:[#allocation8 + $0x210] sm:$0xf0] }
 0x2a1   : > { %5686 = vmatpush.bf16.msrb.mxu0 %v8595_v32  ;;  %5705 = vmatpush.bf16.msrb.mxu1 %v8723_v56  ;;  %v8787_v56 = vor.u32 %v9740_v9, %v8784_v37  ;;  %v8771_v0 = vor.u32 %v9736_v47, %v8768_v17  ;;  %v8710_v9 = vld [vmem:[#allocation8 + $0x188] sm:$0xf]  ;;  %v9723_v37 = vld [vmem:[#allocation8 + $0x194] sm:$0xf0] }
 0x2a2   : > { %v10944_v55 = vpack.c.bf16 %v4820_v28, %v4816_v19  ;;  %v9767_v19 = vld [vmem:[#allocation8 + $0x2f4] sm:$0xf0]  ;;  %v8643_v28 = vor.u32 %v9704_v26, %v8640_v57  ;;  %v8694_v47 = vld [vmem:[#allocation8 + $0x168] sm:$0xf] }
 0x2a3   : > { %v4549_v45 = vpop.f32.mrf.mxu2  ;;  %v4568_v10 = vpop.f32.mrf.mxu3  ;;  %5725 = vmatpush.bf16.msrb.mxu2 %v8835_v25  ;;  %v9699_v25 = vld [vmem:[#allocation8 + $0xd4] sm:$0xf0]  ;;  %v8822_v17 = vld [vmem:[#allocation8 + $0x268] sm:$0xf] }
 0x2a4   : > { %v4550_v33 = vadd.f32 %v4549_v45, %v4531_v13  ;;  %v4513_v53 = vpop.f32.mrf.mxu0  ;;  %v4532_v62 = vpop.f32.mrf.mxu1  ;;  %v11233_v13 = vld [vmem:[#allocation29_spill] sm:$0xff] }
 0x2a5   : > { %5687 = vmatpush.bf16.msrb.mxu0 %v8579_v18  ;;  %5706 = vmatpush.bf16.msrb.mxu1 %v8707_v22  ;;  %v4514_v49 = vadd.f32 %v4513_v53, %v10938_v6  ;;  %v8758_v18 = vld [vmem:[#allocation8 + $0x1e8] sm:$0xf]  ;;  %v9687_v26 = vld [vmem:[#allocation8 + $0x74] sm:$0xf0] }
 0x2a6   : > { %v10947_v35 = vadd.f32 %v4568_v10, %v4550_v33  ;;  %v8614_v22 = vld [vmem:[#allocation8 + $0xc8] sm:$0xf]  ;;  %v8759_v5 = vor.u32 %v9735_v41, %v8758_v18  ;;  %v9763_v33 = vld [vmem:[#allocation8 + $0x2d4] sm:$0xf0] }
 0x2a7   : > { %v4533_v61 = vadd.f32 %v4532_v62, %v4514_v49  ;;  %5726 = vmatpush.bf16.msrb.mxu2 %v8819_v36  ;;  %v8615_v21 = vor.u32 %v9699_v25, %v8614_v22  ;;  %v8598_v49 = vld [vmem:[#allocation8 + $0xa8] sm:$0xf]  ;;  %v9695_v36 = vld [vmem:[#allocation8 + $0xb4] sm:$0xf0]  ;;  %v8871_v34 = vor.u32 %v9763_v33, %v8870_v60 }
 0x2a8   : > { %v8599_v15 = vor.u32 %v9695_v36, %v8598_v49  ;;  %v9751_v18 = vld [vmem:[#allocation8 + $0x274] sm:$0xf0] }
 0x2a9   : > { %5688 = vmatpush.bf16.msrb.mxu0 %v8563_v29  ;;  %5707 = vmatpush.bf16.msrb.mxu1 %v8691_v44  ;;  %v8887_v29 = vor.u32 %v9767_v19, %v8886_v24  ;;  %v9683_v24 = vld [vmem:[#allocation8 + $0x54] sm:$0xf0]  ;;  %v8823_v19 = vor.u32 %v9751_v18, %v8822_v17  ;;  %v9729_v18 = vld [vmem:[#allocation8 + $0x1cc] sm:$0xf] }
 0x2aa   : > { %v9715_v22 = vld [vmem:[#allocation8 + $0x154] sm:$0xf0] }
 0x2ab   : > { %v4551_v32 = vpop.f32.mrf.mxu2  ;;  %v10949_v50 = vpop.f32.mrf.mxu3  ;;  %5727 = vmatpush.bf16.msrb.mxu2 %v8803_v59  ;;  %v9759_v59 = vld [vmem:[#allocation8 + $0x2b4] sm:$0xf0] }
 0x2ac   : > { %v10951_v40 = vadd.f32 %v4551_v32, %v4533_v61  ;;  %v4516_v3 = vpop.f32.mrf.mxu0  ;;  %v4535_v38 = vpop.f32.mrf.mxu1  ;;  %v9727_v61 = vld [vmem:[#allocation8 + $0x1b4] sm:$0xf0] }
 0x2ad   : > { %5689 = vmatpush.bf16.msrb.mxu0 %v8547_v2  ;;  %5708 = vmatpush.bf16.msrb.mxu1 %v8675_v8  ;;  %v4517_v30 = vadd.f32 %v4516_v3, %v10938_v6  ;;  %v8854_v8 = vld [vmem:[#allocation8 + $0x2a8] sm:$0xf]  ;;  %v8727_v23 = vor.u32 %v9727_v61, %v8726_v54  ;;  %v9755_v3 = vld [vmem:[#allocation8 + $0x294] sm:$0xf0] }
 0x2ae   : > { %5621 = vmatmul.bf16.gmra.mxu0 %v11233_v13  ;;  %v8839_v57 = vor.u32 %v9755_v3, %v8838_v4  ;;  %v9679_v60 = vld [vmem:[#allocation8 + $0x34] sm:$0xf0]  ;;  %v8646_v54 = vld [vmem:[#allocation8 + $0x108] sm:$0xf]  ;;  %v9765_v3 = vld [vmem:[#allocation8 + $0x2ec] sm:$0xf] }
 0x2af   : > { %v4536_v1 = vadd.f32 %v4535_v38, %v4517_v30  ;;  %5640 = vmatmul.bf16.gmra.mxu1 %v10813_v7  ;;  %5728 = vmatpush.bf16.msrb.mxu2 %v8787_v56  ;;  %v8711_v30 = vor.u32 %v9723_v37, %v8710_v9  ;;  %v8566_v56 = vld [vmem:[#allocation8 + $0x68] sm:$0xf]  ;;  %v9743_v49 = vld [vmem:[#allocation8 + $0x234] sm:$0xf0]  ;;  %v8760_v9 = vld [vmem:[#allocation8 + $0x1f8] sm:$0xf0] }
 0x2b0   : > { %5659 = vmatmul.bf16.gmra.mxu2 %v10944_v55  ;;  %v8567_v41 = vor.u32 %v9687_v26, %v8566_v56  ;;  %v9707_v61 = vld [vmem:[#allocation8 + $0x114] sm:$0xf0] }
 0x2b1   : > { %5690 = vmatpush.bf16.msrb.mxu0 %v8531_v12  ;;  %5709 = vmatpush.bf16.msrb.mxu1 %v8659_v46  ;;  %v9691_v12 = vld [vmem:[#allocation8 + $0x94] sm:$0xf0] }
 0x2b2   : > { %v8583_v14 = vor.u32 %v9691_v12, %v8582_v48  ;;  %v9739_v12 = vld [vmem:[#allocation8 + $0x214] sm:$0xf0] }
 0x2b3   : > { %v4554_v45 = vpop.f32.mrf.mxu2  ;;  %v4573_v10 = vpop.f32.mrf.mxu3  ;;  %5729 = vmatpush.bf16.msrb.mxu2 %v8771_v0 }
 0x2b4   : > { %v4555_v53 = vadd.f32 %v4554_v45, %v4536_v1  ;;  %v4518_v62 = vpop.f32.mrf.mxu0  ;;  %v4537_v44 = vpop.f32.mrf.mxu1 }
 0x2b5   : > { %5691 = vmatpush.bf16.msrb.mxu0 %v8515_v11  ;;  %5710 = vmatpush.bf16.msrb.mxu1 %v8643_v28  ;;  %v4519_v52 = vadd.f32 %v4518_v62, %v10938_v6  ;;  %v8855_v6 = vor.u32 %v9759_v59, %v8854_v8  ;;  %v9719_v11 = vld [vmem:[#allocation8 + $0x174] sm:$0xf0]  ;;  %v8678_v28 = vld [vmem:[#allocation8 + $0x148] sm:$0xf]  ;;  %v9701_v8 = vld [vmem:[#allocation8 + $0xec] sm:$0xf] }
 0x2b6   : > { %v10958_v2 = vadd.f32 %v4573_v10, %v4555_v53  ;;  %v8695_v1 = vor.u32 %v9719_v11, %v8694_v47  ;;  %v8679_v10 = vor.u32 %v9715_v22, %v8678_v28  ;;  %v8662_v53 = vld [vmem:[#allocation8 + $0x128] sm:$0xf]  ;;  %v9711_v62 = vld [vmem:[#allocation8 + $0x134] sm:$0xf0]  ;;  %v8632_v59 = vld [vmem:[#allocation8 + $0xf8] sm:$0xf0] }
 0x2b7   : > { %5798 = vmatpush.bf16.msra.mxu2 %v8887_v29  ;;  %v4538_v20 = vadd.f32 %v4537_v44, %v4519_v52  ;;  %v9747_v29 = vld [vmem:[#allocation8 + $0x254] sm:$0xf0]  ;;  %v8790_v44 = vld [vmem:[#allocation8 + $0x228] sm:$0xf]  ;;  %v8635_v56 = vor.u32 %v9701_v8, %v8632_v59  ;;  %v9697_v47 = vld [vmem:[#allocation8 + $0xcc] sm:$0xf] }
 0x2b8   : > { %v8518_v52 = vld [vmem:[#allocation8 + $0x8] sm:$0xf]  ;;  %v8616_v11 = vld [vmem:[#allocation8 + $0xd8] sm:$0xf0]  ;;  %v9721_v8 = vld [vmem:[#allocation8 + $0x18c] sm:$0xf] }
 0x2b9   : > { %5760 = vmatpush.bf16.msra.mxu0 %v8631_v16  ;;  %5779 = vmatpush.bf16.msra.mxu1 %v8759_v5  ;;  %v8550_v16 = vld [vmem:[#allocation8 + $0x48] sm:$0xf]  ;;  %v8600_v22 = vld [vmem:[#allocation8 + $0xb8] sm:$0xf0] }
 0x2ba   : > { %v8806_v5 = vld [vmem:[#allocation8 + $0x248] sm:$0xf]  ;;  %v8551_v45 = vor.u32 %v9683_v24, %v8550_v16  ;;  %v8872_v16 = vld [vmem:[#allocation8 + $0x2d8] sm:$0xf0]  ;;  %v8619_v24 = vor.u32 %v9697_v47, %v8616_v11  ;;  %v9717_v11 = vld [vmem:[#allocation8 + $0x16c] sm:$0xf] }
 0x2bb   : > { %5799 = vmatpush.bf16.msra.mxu2 %v8871_v34  ;;  %v4556_v32 = vpop.f32.mrf.mxu2  ;;  %v10960_v39 = vpop.f32.mrf.mxu3  ;;  %v8807_v33 = vor.u32 %v9747_v29, %v8806_v5  ;;  %v9675_v34 = vld [vmem:[#allocation8 + $0x14] sm:$0xf0]  ;;  %v9006_v5 = vld [vmem:[#allocation8 + $0x3e0] sm:$0xf]  ;;  %v9798_v29 = vld [vmem:[#allocation8 + $0x3ec] sm:$0xf0] }
 0x2bc   : > { %v10962_v38 = vadd.f32 %v4556_v32, %v4538_v20  ;;  %v10964_v46 = vpop.f32.mrf.mxu0  ;;  %v10966_v31 = vpop.f32.mrf.mxu1  ;;  %v8791_v20 = vor.u32 %v9743_v49, %v8790_v44  ;;  %v8519_v4 = vor.u32 %v9675_v34, %v8518_v52  ;;  %v9757_v49 = vld [vmem:[#allocation8 + $0x2ac] sm:$0xf]  ;;  %v8712_v59 = vld [vmem:[#allocation8 + $0x198] sm:$0xf0] }
 0x2bd   : > { %5761 = vmatpush.bf16.msra.mxu0 %v8615_v21  ;;  %5780 = vmatpush.bf16.msra.mxu1 %v8743_v51  ;;  %v8534_v21 = vld [vmem:[#allocation8 + $0x28] sm:$0xf]  ;;  %v8663_v51 = vor.u32 %v9711_v62, %v8662_v53  ;;  %v9007_v53 = vor.u32 %v9798_v29, %v9006_v5  ;;  %v8552_v29 = vld [vmem:[#allocation8 + $0x58] sm:$0xf0] }
 0x2be   : > { %5692 = vmatmul.bf16.vlgmr.msrb.gmra.mxu0 %v11232_v42  ;;  %v8535_v36 = vor.u32 %v9679_v60, %v8534_v21  ;;  %v9725_v60 = vld [vmem:[#allocation8 + $0x1ac] sm:$0xf] }
 0x2bf   : > { %5800 = vmatpush.bf16.msra.mxu2 %v8855_v6  ;;  %5711 = vmatmul.bf16.vlgmr.msrb.gmra.mxu1 %v10803_v43  ;;  %v9733_v6 = vld [vmem:[#allocation8 + $0x1ec] sm:$0xf] }
 0x2c0   : > { %5730 = vmatmul.bf16.vlgmr.msrb.gmra.mxu2 %v10935_v58  ;;  %5665 = vmatpush.bf16.msra.mxu3 %v9007_v53  ;;  %v8680_v53 = vld [vmem:[#allocation8 + $0x158] sm:$0xf0] }
 0x2c1   : > { %5762 = vmatpush.bf16.msra.mxu0 %v8599_v15  ;;  %5781 = vmatpush.bf16.msra.mxu1 %v8727_v23  ;;  %v8774_v15 = vld [vmem:[#allocation8 + $0x208] sm:$0xf] }
 0x2c2   : > { %v8775_v26 = vor.u32 %v9739_v12, %v8774_v15 }
 0x2c3   : > { %5801 = vmatpush.bf16.msra.mxu2 %v8839_v57  ;;  %v10971_v25 = vpop.f32.mrf.mxu2  ;;  %v10973_v0 = vpop.f32.mrf.mxu3  ;;  %v8763_v57 = vor.u32 %v9733_v6, %v8760_v9  ;;  %v9753_v9 = vld [vmem:[#allocation8 + $0x28c] sm:$0xf] }
 0x2c4   : > { %v10975_v63 = vpop.f32.mrf.mxu0  ;;  %v10977_v27 = vpop.f32.mrf.mxu1 }
 0x2c5   : > { %5763 = vmatpush.bf16.msra.mxu0 %v8583_v14  ;;  %5782 = vmatpush.bf16.msra.mxu1 %v8711_v30  ;;  %v8888_v14 = vld [vmem:[#allocation8 + $0x2f8] sm:$0xf0]  ;;  %v8647_v30 = vor.u32 %v9707_v61, %v8646_v54  ;;  %v8990_v61 = vld [vmem:[#allocation8 + $0x3c0] sm:$0xf] }
 0x2c6   : > { %v8891_v17 = vor.u32 %v9765_v3, %v8888_v14  ;;  %v8584_v54 = vld [vmem:[#allocation8 + $0x98] sm:$0xf0]  ;;  %v9685_v3 = vld [vmem:[#allocation8 + $0x6c] sm:$0xf]  ;;  %v8715_v14 = vor.u32 %v9721_v8, %v8712_v59  ;;  %v9782_v8 = vld [vmem:[#allocation8 + $0x36c] sm:$0xf0] }
 0x2c7   : > { %5802 = vmatpush.bf16.msra.mxu2 %v8823_v19  ;;  %v9693_v19 = vld [vmem:[#allocation8 + $0xac] sm:$0xf] }
 0x2c8   : > { %v8603_v52 = vor.u32 %v9693_v19, %v8600_v22  ;;  %v9749_v19 = vld [vmem:[#allocation8 + $0x26c] sm:$0xf] }
 0x2c9   : > { %5764 = vmatpush.bf16.msra.mxu0 %v8567_v41  ;;  %5783 = vmatpush.bf16.msra.mxu1 %v8695_v1  ;;  %v8744_v41 = vld [vmem:[#allocation8 + $0x1d8] sm:$0xf0]  ;;  %v9761_v1 = vld [vmem:[#allocation8 + $0x2cc] sm:$0xf] }
 0x2ca   : > { %v8747_v28 = vor.u32 %v9729_v18, %v8744_v41  ;;  %v8875_v21 = vor.u32 %v9761_v1, %v8872_v16  ;;  %v9681_v22 = vld [vmem:[#allocation8 + $0x4c] sm:$0xf] }
 0x2cb   : > { %5803 = vmatpush.bf16.msra.mxu2 %v8807_v33  ;;  %v10979_v23 = vpop.f32.mrf.mxu2  ;;  %v10981_v48 = vpop.f32.mrf.mxu3  ;;  %v8728_v33 = vld [vmem:[#allocation8 + $0x1b8] sm:$0xf0] }
 0x2cc   : > { %v10983_v37 = vpop.f32.mrf.mxu0  ;;  %v10985_v32 = vpop.f32.mrf.mxu1  ;;  %v8731_v34 = vor.u32 %v9725_v60, %v8728_v33  ;;  %v9786_v60 = vld [vmem:[#allocation8 + $0x38c] sm:$0xf0]  ;;  %v9713_v33 = vld [vmem:[#allocation8 + $0x14c] sm:$0xf] }
 0x2cd   : > { %5765 = vmatpush.bf16.msra.mxu0 %v8551_v45  ;;  %5784 = vmatpush.bf16.msra.mxu1 %v8679_v10 }
 0x2ce   : > { %5697 = vmatmul.bf16.gmra.mxu0 %v11233_v13 }
 0x2cf   : > { %5804 = vmatpush.bf16.msra.mxu2 %v8791_v20  ;;  %5716 = vmatmul.bf16.gmra.mxu1 %v10813_v7  ;;  %v9794_v20 = vld [vmem:[#allocation8 + $0x3cc] sm:$0xf0] }
 0x2d0   : > { %5735 = vmatmul.bf16.gmra.mxu2 %v10944_v55  ;;  %v8991_v12 = vor.u32 %v9794_v20, %v8990_v61  ;;  %v8683_v61 = vor.u32 %v9713_v33, %v8680_v53  ;;  %v8536_v20 = vld [vmem:[#allocation8 + $0x38] sm:$0xf0]  ;;  %v4588_v33 = vadd.f32 %v10964_v46, %v10947_v35 }
 0x2d1   : > { %5766 = vmatpush.bf16.msra.mxu0 %v8535_v36  ;;  %5785 = vmatpush.bf16.msra.mxu1 %v8663_v51  ;;  %v8856_v36 = vld [vmem:[#allocation8 + $0x2b8] sm:$0xf0]  ;;  %v9689_v51 = vld [vmem:[#allocation8 + $0x8c] sm:$0xf] }
 0x2d2   : > { %v8859_v15 = vor.u32 %v9757_v49, %v8856_v36  ;;  %v8587_v6 = vor.u32 %v9689_v51, %v8584_v54  ;;  %5666 = vmatpush.bf16.msra.mxu3 %v8991_v12  ;;  %v9745_v51 = vld [vmem:[#allocation8 + $0x24c] sm:$0xf]  ;;  %v4607_v46 = vadd.f32 %v10966_v31, %v4588_v33  ;;  %v9796_v31 = vld [vmem:[#allocation8 + $0x3e4] sm:$0xf]  ;;  %v4576_v33 = vadd.f32 %v10960_v39, %v10962_v38 }
 0x2d3   : > { %5805 = vmatpush.bf16.msra.mxu2 %v8775_v26  ;;  %v10990_v45 = vpop.f32.mrf.mxu2  ;;  %v10992_v10 = vpop.f32.mrf.mxu3  ;;  %v9790_v26 = vld [vmem:[#allocation8 + $0x3ac] sm:$0xf0]  ;;  %v9677_v54 = vld [vmem:[#allocation8 + $0x2c] sm:$0xf] }
 0x2d4   : > { %v10994_v62 = vpop.f32.mrf.mxu0  ;;  %v10996_v44 = vpop.f32.mrf.mxu1 }
 0x2d5   : > { %5767 = vmatpush.bf16.msra.mxu0 %v8519_v4  ;;  %5786 = vmatpush.bf16.msra.mxu1 %v8647_v30  ;;  %v8840_v4 = vld [vmem:[#allocation8 + $0x298] sm:$0xf0] }
 0x2d6   : > { %v8568_v30 = vld [vmem:[#allocation8 + $0x78] sm:$0xf0]  ;;  %v8843_v16 = vor.u32 %v9753_v9, %v8840_v4 }
 0x2d7   : > { %5874 = vmatpush.bf16.msrb.mxu2 %v8891_v17  ;;  %v8696_v17 = vld [vmem:[#allocation8 + $0x178] sm:$0xf0] }
 0x2d8   : > { %v8699_v5 = vor.u32 %v9717_v11, %v8696_v17  ;;  %v8664_v9 = vld [vmem:[#allocation8 + $0x138] sm:$0xf0]  ;;  %v9673_v17 = vld [vmem:[#allocation8 + $0xc] sm:$0xf] }
 0x2d9   : > { %5836 = vmatpush.bf16.msrb.mxu0 %v8635_v56  ;;  %5855 = vmatpush.bf16.msrb.mxu1 %v8763_v57  ;;  %v8974_v56 = vld [vmem:[#allocation8 + $0x3a0] sm:$0xf]  ;;  %v8792_v11 = vld [vmem:[#allocation8 + $0x238] sm:$0xf0] }
 0x2da   : > { %v8975_v18 = vor.u32 %v9790_v26, %v8974_v56  ;;  %v8539_v56 = vor.u32 %v9677_v54, %v8536_v20  ;;  %v9741_v26 = vld [vmem:[#allocation8 + $0x22c] sm:$0xf] }
 0x2db   : > { %5875 = vmatpush.bf16.msrb.mxu2 %v8875_v21  ;;  %v10998_v57 = vpop.f32.mrf.mxu2  ;;  %v11000_v47 = vpop.f32.mrf.mxu3  ;;  %v8958_v21 = vld [vmem:[#allocation8 + $0x380] sm:$0xf] }
 0x2dc   : > { %v11002_v41 = vpop.f32.mrf.mxu0  ;;  %v11004_v1 = vpop.f32.mrf.mxu1  ;;  %5667 = vmatpush.bf16.msra.mxu3 %v8975_v18  ;;  %v8959_v49 = vor.u32 %v9786_v60, %v8958_v21  ;;  %v9737_v60 = vld [vmem:[#allocation8 + $0x20c] sm:$0xf] }
 0x2dd   : > { %5837 = vmatpush.bf16.msrb.mxu0 %v8619_v24  ;;  %5856 = vmatpush.bf16.msrb.mxu1 %v8747_v28  ;;  %v8571_v24 = vor.u32 %v9685_v3, %v8568_v30  ;;  %v8824_v28 = vld [vmem:[#allocation8 + $0x278] sm:$0xf0] }
 0x2de   : > { %5768 = vmatmul.bf16.vlgmr.msra.gmra.mxu0 %v11232_v42  ;;  %v8827_v36 = vor.u32 %v9749_v19, %v8824_v28  ;;  %v9778_v19 = vld [vmem:[#allocation8 + $0x34c] sm:$0xf0]  ;;  %v9705_v28 = vld [vmem:[#allocation8 + $0x10c] sm:$0xf] }
 0x2df   : > { %5876 = vmatpush.bf16.msrb.mxu2 %v8859_v15  ;;  %5787 = vmatmul.bf16.vlgmr.msra.gmra.mxu1 %v10803_v43  ;;  %v8942_v15 = vld [vmem:[#allocation8 + $0x360] sm:$0xf] }
 0x2e0   : > { %5806 = vmatmul.bf16.vlgmr.msra.gmra.mxu2 %v10935_v58  ;;  %5668 = vmatpush.bf16.msra.mxu3 %v8959_v49  ;;  %v8943_v4 = vor.u32 %v9782_v8, %v8942_v15  ;;  %v8776_v49 = vld [vmem:[#allocation8 + $0x218] sm:$0xf0] }
 0x2e1   : > { %5838 = vmatpush.bf16.msrb.mxu0 %v8603_v52  ;;  %5857 = vmatpush.bf16.msrb.mxu1 %v8731_v34  ;;  %v8555_v52 = vor.u32 %v9681_v22, %v8552_v29  ;;  %v8808_v34 = vld [vmem:[#allocation8 + $0x258] sm:$0xf0]  ;;  %v8795_v29 = vor.u32 %v9741_v26, %v8792_v11  ;;  %v8779_v35 = vor.u32 %v9737_v60, %v8776_v49 }
 0x2e2   : > { %v8811_v30 = vor.u32 %v9745_v51, %v8808_v34  ;;  %v8648_v22 = vld [vmem:[#allocation8 + $0x118] sm:$0xf0] }
 0x2e3   : > { %5877 = vmatpush.bf16.msrb.mxu2 %v8843_v16  ;;  %v11009_v59 = vpop.f32.mrf.mxu2  ;;  %v11011_v12 = vpop.f32.mrf.mxu3  ;;  %v8520_v16 = vld [vmem:[#allocation8 + $0x18] sm:$0xf0]  ;;  %v8651_v53 = vor.u32 %v9705_v28, %v8648_v22  ;;  %v4593_v22 = vadd.f32 %v10983_v37, %v10958_v2  ;;  %v4595_v37 = vadd.f32 %v10994_v62, %v4576_v33  ;;  %v9799_v33 = vld [vmem:[#allocation8 + $0x3f4] sm:$0xf0] }
 0x2e4   : > { %v11013_v3 = vpop.f32.mrf.mxu0  ;;  %5669 = vmatpush.bf16.msra.mxu3 %v8943_v4  ;;  %v8523_v21 = vor.u32 %v9673_v17, %v8520_v16 }
 0x2e5   : > { %5839 = vmatpush.bf16.msrb.mxu0 %v8587_v6  ;;  %5858 = vmatpush.bf16.msrb.mxu1 %v8715_v14  ;;  %v9709_v6 = vld [vmem:[#allocation8 + $0x12c] sm:$0xf]  ;;  %v11015_v14 = vpop.f32.mrf.mxu1  ;;  %v4612_v2 = vadd.f32 %v10985_v32, %v4593_v22  ;;  %v4614_v32 = vadd.f32 %v10996_v44, %v4595_v37  ;;  %v9776_v44 = vld [vmem:[#allocation8 + $0x344] sm:$0xf]  ;;  %v8896_v22 = vld [vmem:[#allocation8 + $0x310] sm:$0xf0] }
 0x2e6   : > { %v8667_v18 = vor.u32 %v9709_v6, %v8664_v9  ;;  %v8894_v6 = vld [vmem:[#allocation8 + $0x300] sm:$0xf]  ;;  %v9770_v9 = vld [vmem:[#allocation8 + $0x30c] sm:$0xf0]  ;;  %v9795_v37 = vld [vmem:[#allocation8 + $0x3d4] sm:$0xf0] }
 0x2e7   : > { %5878 = vmatpush.bf16.msrb.mxu2 %v8827_v36  ;;  %v8910_v36 = vld [vmem:[#allocation8 + $0x320] sm:$0xf]  ;;  %v4631_v39 = vadd.f32 %v10990_v45, %v4612_v2  ;;  %v8998_v2 = vld [vmem:[#allocation8 + $0x3c8] sm:$0xf] }
 0x2e9   : > { %5840 = vmatpush.bf16.msrb.mxu0 %v8571_v24  ;;  %5859 = vmatpush.bf16.msrb.mxu1 %v8699_v5  ;;  %v8926_v24 = vld [vmem:[#allocation8 + $0x340] sm:$0xf] }
 0x2ea   : > { %v8927_v5 = vor.u32 %v9778_v19, %v8926_v24  ;;  %v9792_v24 = vld [vmem:[#allocation8 + $0x3c4] sm:$0xf] }
 0x2eb   : > { %5879 = vmatpush.bf16.msrb.mxu2 %v8811_v30  ;;  %v4703_v51 = vpop.f32.mrf.mxu2  ;;  %v11019_v34 = vpop.f32.mrf.mxu3  ;;  %v9008_v30 = vld [vmem:[#allocation8 + $0x3f0] sm:$0xf0] }
 0x2ec   : > { %5670 = vmatpush.bf16.msra.mxu3 %v8927_v5  ;;  %v11023_v20 = vpop.f32.mrf.mxu0  ;;  %v9011_v26 = vor.u32 %v9796_v31, %v9008_v30  ;;  %v9772_v30 = vld [vmem:[#allocation8 + $0x324] sm:$0xf] }
 0x2ed   : > { %5841 = vmatpush.bf16.msrb.mxu0 %v8555_v52  ;;  %5860 = vmatpush.bf16.msrb.mxu1 %v8683_v61  ;;  %v9774_v52 = vld [vmem:[#allocation8 + $0x32c] sm:$0xf0]  ;;  %v4571_v61 = vadd.f32 %v10949_v50, %v10951_v40  ;;  %v11025_v15 = vpop.f32.mrf.mxu1  ;;  %v8895_v50 = vor.u32 %v9770_v9, %v8894_v6  ;;  %v4626_v40 = vadd.f32 %v10971_v25, %v4607_v46  ;;  %v8928_v9 = vld [vmem:[#allocation8 + $0x350] sm:$0xf0] }
 0x2ee   : > { %v8911_v54 = vor.u32 %v9774_v52, %v8910_v36  ;;  %5773 = vmatmul.bf16.gmra.mxu0 %v11233_v13  ;;  %v8960_v36 = vld [vmem:[#allocation8 + $0x390] sm:$0xf0] }
 0x2ef   : > { %5880 = vmatpush.bf16.msrb.mxu2 %v8795_v29  ;;  %v4590_v8 = vadd.f32 %v10975_v63, %v4571_v61  ;;  %5792 = vmatmul.bf16.gmra.mxu1 %v10813_v7  ;;  %v4645_v11 = vadd.f32 %v10973_v0, %v4626_v40  ;;  %v8976_v29 = vld [vmem:[#allocation8 + $0x3b0] sm:$0xf0] }
 0x2f0   : > { %5671 = vmatpush.bf16.msra.mxu3 %v8911_v54  ;;  %5811 = vmatmul.bf16.gmra.mxu2 %v10944_v55  ;;  %v9780_v54 = vld [vmem:[#allocation8 + $0x364] sm:$0xf] }
 0x2f1   : > { %5842 = vmatpush.bf16.msrb.mxu0 %v8539_v56  ;;  %5861 = vmatpush.bf16.msrb.mxu1 %v8667_v18  ;;  %v4609_v4 = vadd.f32 %v10977_v27, %v4590_v8  ;;  %v4664_v25 = vadd.f32 %v11002_v41, %v4645_v11  ;;  %v8992_v27 = vld [vmem:[#allocation8 + $0x3d0] sm:$0xf0] }
 0x2f2   : > { %v8995_v19 = vor.u32 %v9792_v24, %v8992_v27 }
 0x2f3   : > { %5881 = vmatpush.bf16.msrb.mxu2 %v8779_v35  ;;  %v11034_v63 = vpop.f32.mrf.mxu2  ;;  %v11036_v56 = vpop.f32.mrf.mxu3  ;;  %v4628_v17 = vadd.f32 %v10979_v23, %v4609_v4  ;;  %v4683_v5 = vadd.f32 %v11004_v1, %v4664_v25  ;;  %v9788_v23 = vld [vmem:[#allocation8 + $0x3a4] sm:$0xf] }
 0x2f4   : > { %5672 = vmatpush.bf16.msra.mxu3 %v8895_v50  ;;  %v4670_v18 = vpop.f32.mrf.mxu0  ;;  %v8979_v41 = vor.u32 %v9788_v23, %v8976_v29  ;;  %v8931_v50 = vor.u32 %v9776_v44, %v8928_v9  ;;  %v8918_v44 = vld [vmem:[#allocation8 + $0x328] sm:$0xf]  ;;  %v9775_v9 = vld [vmem:[#allocation8 + $0x334] sm:$0xf0] }
 0x2f5   : > { %5843 = vmatpush.bf16.msrb.mxu0 %v8523_v21  ;;  %5862 = vmatpush.bf16.msrb.mxu1 %v8651_v53  ;;  %v11040_v16 = vpop.f32.mrf.mxu1  ;;  %v4647_v28 = vadd.f32 %v10981_v48, %v4628_v17  ;;  %v4702_v48 = vadd.f32 %v11009_v59, %v4683_v5 }
 0x2f7   : > { %v4666_v0 = vadd.f32 %v11013_v3, %v4647_v28  ;;  %v9784_v3 = vld [vmem:[#allocation8 + $0x384] sm:$0xf]  ;;  %v4721_v38 = vadd.f32 %v11011_v12, %v4702_v48 }
 0x2f8   : > { %5741 = vmatpush.bf16.msrb.mxu3 %v9011_v26  ;;  %v8963_v52 = vor.u32 %v9784_v3, %v8960_v36  ;;  %v9768_v28 = vld [vmem:[#allocation8 + $0x304] sm:$0xf] }
 0x2f9   : > { %v4685_v1 = vadd.f32 %v11015_v14, %v4666_v0  ;;  %v8944_v14 = vld [vmem:[#allocation8 + $0x370] sm:$0xf0] }
 0x2fa   : > { %v8947_v46 = vor.u32 %v9780_v54, %v8944_v14  ;;  %v8966_v14 = vld [vmem:[#allocation8 + $0x388] sm:$0xf] }
 0x2fb   : > { %v11048_v21 = vpop.f32.mrf.mxu2  ;;  %v11050_v60 = vpop.f32.mrf.mxu3  ;;  %v4704_v59 = vadd.f32 %v4703_v51, %v4685_v1 }
 0x2fc   : > { %5742 = vmatpush.bf16.msrb.mxu3 %v8995_v19  ;;  %v4739_v53 = vpop.f32.mrf.mxu0 }
 0x2fd   : > { %v4758_v49 = vpop.f32.mrf.mxu1  ;;  %v4740_v62 = vadd.f32 %v4739_v53, %v4721_v38  ;;  %v4723_v45 = vadd.f32 %v11019_v34, %v4704_v59  ;;  %v8912_v34 = vld [vmem:[#allocation8 + $0x330] sm:$0xf0] }
 0x2fe   : > { %5844 = vmatmul.bf16.vlgmr.msrb.gmra.mxu0 %v11232_v42  ;;  %v4650_v42 = vadd.f32 %v10992_v10, %v4631_v39  ;;  %v8915_v17 = vor.u32 %v9772_v30, %v8912_v34  ;;  %v9791_v39 = vld [vmem:[#allocation8 + $0x3b4] sm:$0xf0]  ;;  %v9793_v34 = vld [vmem:[#allocation8 + $0x3cc] sm:$0xf] }
 0x2ff   : > { %5863 = vmatmul.bf16.vlgmr.msrb.gmra.mxu1 %v10803_v43  ;;  %v4633_v43 = vadd.f32 %v10998_v57, %v4614_v32  ;;  %v4759_v51 = vadd.f32 %v4758_v49, %v4740_v62 }
 0x300   : > { %5743 = vmatpush.bf16.msrb.mxu3 %v8979_v41  ;;  %5882 = vmatmul.bf16.vlgmr.msrb.gmra.mxu2 %v10935_v58  ;;  %v4669_v58 = vadd.f32 %v11023_v20, %v4650_v42  ;;  %v9014_v41 = vld [vmem:[#allocation8 + $0x3e8] sm:$0xf] }
 0x301   : > { %v4652_v40 = vadd.f32 %v11000_v47, %v4633_v43 }
 0x302   : > { %v4688_v10 = vadd.f32 %v11025_v15, %v4669_v58  ;;  %v8899_v15 = vor.u32 %v9768_v28, %v8896_v22  ;;  %v8934_v58 = vld [vmem:[#allocation8 + $0x348] sm:$0xf]  ;;  %v8952_v28 = vld [vmem:[#allocation8 + $0x378] sm:$0xf0] }
 0x303   : > { %v4777_v61 = vpop.f32.mrf.mxu2  ;;  %v4796_v35 = vpop.f32.mrf.mxu3  ;;  %v4671_v31 = vadd.f32 %v4670_v18, %v4652_v40  ;;  %v8902_v40 = vld [vmem:[#allocation8 + $0x308] sm:$0xf] }
 0x304   : > { %5744 = vmatpush.bf16.msrb.mxu3 %v8963_v52  ;;  %v4741_v8 = vpop.f32.mrf.mxu0  ;;  %v4778_v4 = vadd.f32 %v4777_v61, %v4759_v51  ;;  %v4707_v20 = vadd.f32 %v11034_v63, %v4688_v10  ;;  %v8982_v52 = vld [vmem:[#allocation8 + $0x3a8] sm:$0xf]  ;;  %v9787_v61 = vld [vmem:[#allocation8 + $0x394] sm:$0xf0] }
 0x305   : > { %v4760_v12 = vpop.f32.mrf.mxu1  ;;  %v4742_v6 = vadd.f32 %v4741_v8, %v4723_v45  ;;  %v4690_v19 = vadd.f32 %v11040_v16, %v4671_v31  ;;  %v8983_v59 = vor.u32 %v9791_v39, %v8982_v52  ;;  %v8950_v45 = vld [vmem:[#allocation8 + $0x368] sm:$0xf]  ;;  %v9783_v8 = vld [vmem:[#allocation8 + $0x374] sm:$0xf0]  ;;  %v9797_v31 = vld [vmem:[#allocation8 + $0x3ec] sm:$0xf] }
 0x306   : > { %v4797_v25 = vadd.f32 %v4796_v35, %v4778_v4  ;;  %v4726_v18 = vadd.f32 %v11036_v56, %v4707_v20  ;;  %v8967_v35 = vor.u32 %v9787_v61, %v8966_v14  ;;  %v9779_v51 = vld [vmem:[#allocation8 + $0x354] sm:$0xf0]  ;;  %v8984_v20 = vld [vmem:[#allocation8 + $0x3b8] sm:$0xf0]  ;;  %v9800_v52 = vld [vmem:[#allocation11] sm:$0xff] }
 0x307   : > { %v4761_v57 = vadd.f32 %v4760_v12, %v4742_v6  ;;  %v4709_v0 = vadd.f32 %v11048_v21, %v4690_v19  ;;  %v8951_v12 = vor.u32 %v9783_v8, %v8950_v45  ;;  %v8935_v6 = vor.u32 %v9779_v51, %v8934_v58  ;;  %v9771_v4 = vld [vmem:[#allocation8 + $0x314] sm:$0xf0]  ;;  %v9812_v14 = vld [vmem:[#allocation11 + $0x60] sm:$0xff] }
 0x308   : > { %5745 = vmatpush.bf16.msrb.mxu3 %v8947_v46  ;;  %v4809_v63 = vmax.f32 %v4797_v25, 0.0  ;;  %v8903_v10 = vor.u32 %v9771_v4, %v8902_v40  ;;  %v9810_v58 = vld [vmem:[#allocation11 + $0x50] sm:$0xff]  ;;  %v9809_v40 = vld [vmem:[#allocation11 + $0x48] sm:$0xff] }
 0x30b   : > { %v4779_v26 = vpop.f32.mrf.mxu2  ;;  %v4798_v11 = vpop.f32.mrf.mxu3 }
 0x30c   : > { %5746 = vmatpush.bf16.msrb.mxu3 %v8931_v50  ;;  %v4780_v24 = vadd.f32 %v4779_v26, %v4761_v57  ;;  %v4744_v27 = vpop.f32.mrf.mxu0  ;;  %v8919_v50 = vor.u32 %v9775_v9, %v8918_v44  ;;  %v9016_v57 = vld [vmem:[#allocation8 + $0x3f8] sm:$0xf0] }
 0x30d   : > { %v4763_v5 = vpop.f32.mrf.mxu1  ;;  %v4745_v16 = vadd.f32 %v4744_v27, %v4726_v18  ;;  %v9019_v30 = vor.u32 %v9797_v31, %v9016_v57  ;;  %v9000_v26 = vld [vmem:[#allocation8 + $0x3d8] sm:$0xf0] }
 0x30e   : > { %v4799_v47 = vadd.f32 %v4798_v11, %v4780_v24  ;;  %5849 = vmatmul.bf16.gmra.mxu0 %v11233_v13  ;;  %v9015_v13 = vor.u32 %v9799_v33, %v9014_v41  ;;  %v9003_v11 = vor.u32 %v9793_v34, %v9000_v26  ;;  %v9785_v24 = vld [vmem:[#allocation8 + $0x38c] sm:$0xf]  ;;  %v8968_v27 = vld [vmem:[#allocation8 + $0x398] sm:$0xf0]  ;;  %v9808_v34 = vld [vmem:[#allocation11 + $0x40] sm:$0xff] }
 0x30f   : > { %5868 = vmatmul.bf16.gmra.mxu1 %v10813_v7  ;;  %v4728_v7 = vadd.f32 %v11050_v60, %v4709_v0  ;;  %v4764_v21 = vadd.f32 %v4763_v5, %v4745_v16  ;;  %v8971_v19 = vor.u32 %v9785_v24, %v8968_v27  ;;  %v9777_v5 = vld [vmem:[#allocation8 + $0x34c] sm:$0xf]  ;;  %v8904_v41 = vld [vmem:[#allocation8 + $0x318] sm:$0xf0] }
 0x310   : > { %5747 = vmatpush.bf16.msrb.mxu3 %v8915_v17  ;;  %v4813_v23 = vmax.f32 %v4799_v47, 0.0  ;;  %5887 = vmatmul.bf16.gmra.mxu2 %v10944_v55  ;;  %v8999_v55 = vor.u32 %v9795_v37, %v8998_v2  ;;  %v9789_v17 = vld [vmem:[#allocation8 + $0x3ac] sm:$0xf]  ;;  %v9803_v2 = vld [vmem:[#allocation11 + $0x18] sm:$0xff] }
 0x311   : > { %v8987_v25 = vor.u32 %v9789_v17, %v8984_v20  ;;  %v9781_v47 = vld [vmem:[#allocation8 + $0x36c] sm:$0xf]  ;;  %v9823_v20 = vld [vmem:[#allocation11 + $0xb8] sm:$0xff] }
 0x312   : > { %v11077_v29 = vpack.c.bf16 %v4813_v23, %v4809_v63  ;;  %v8955_v22 = vor.u32 %v9781_v47, %v8952_v28  ;;  %v9773_v0 = vld [vmem:[#allocation8 + $0x32c] sm:$0xf]  ;;  %v8920_v63 = vld [vmem:[#allocation8 + $0x338] sm:$0xf0]  ;;  %6234 = vmatpush.bf16.msra.mxu2 %v9823_v20  ;;  %v9822_v28 = vld [vmem:[#allocation11 + $0xb0] sm:$0xff] }
 0x313   : > { %v4782_v48 = vpop.f32.mrf.mxu2  ;;  %v4801_v53 = vpop.f32.mrf.mxu3  ;;  %v8923_v23 = vor.u32 %v9773_v0, %v8920_v63  ;;  %v9769_v16 = vld [vmem:[#allocation8 + $0x30c] sm:$0xf] }
 0x314   : > { %5748 = vmatpush.bf16.msrb.mxu3 %v8899_v15  ;;  %v4746_v56 = vpop.f32.mrf.mxu0  ;;  %v4783_v1 = vadd.f32 %v4782_v48, %v4764_v21  ;;  %v8936_v15 = vld [vmem:[#allocation8 + $0x358] sm:$0xf0]  ;;  %v8907_v33 = vor.u32 %v9769_v16, %v8904_v41  ;;  %v9821_v0 = vld [vmem:[#allocation11 + $0xa8] sm:$0xff] }
 0x315   : > { %5673 = vmatmul.bf16.vlgmr.msra.gmra.mxu3 %v11077_v29  ;;  %v4747_v49 = vadd.f32 %v4746_v56, %v4728_v7  ;;  %v4765_v3 = vpop.f32.mrf.mxu1  ;;  %v8939_v18 = vor.u32 %v9777_v5, %v8936_v15  ;;  %v9807_v48 = vld [vmem:[#allocation11 + $0x38] sm:$0xff]  ;;  %v9804_v56 = vld [vmem:[#allocation11 + $0x20] sm:$0xff] }
 0x316   : > { %v4802_v32 = vadd.f32 %v4801_v53, %v4783_v1  ;;  %6196 = vmatpush.bf16.msra.mxu0 %v9807_v48  ;;  %v9806_v53 = vld [vmem:[#allocation11 + $0x30] sm:$0xff]  ;;  %v9801_v1 = vld [vmem:[#allocation11 + $0x8] sm:$0xff]  ;;  %6235 = vmatpush.bf16.msra.mxu2 %v9822_v28 }
 0x317   : > { %v4766_v36 = vadd.f32 %v4765_v3, %v4747_v49 }
 0x318   : > { %5817 = vmatpush.bf16.msra.mxu3 %v9015_v13  ;;  %v4817_v46 = vmax.f32 %v4802_v32, 0.0  ;;  %v9805_v13 = vld [vmem:[#allocation11 + $0x28] sm:$0xff] }
 0x31a   : > { %6197 = vmatpush.bf16.msra.mxu0 %v9806_v53  ;;  %6236 = vmatpush.bf16.msra.mxu2 %v9821_v0  ;;  %v9820_v53 = vld [vmem:[#allocation11 + $0xa0] sm:$0xff]  ;;  %v9826_v0 = vld [vmem:[#allocation11 + $0xd0] sm:$0xff] }
 0x31b   : > { %v4784_v38 = vpop.f32.mrf.mxu2  ;;  %v4803_v60 = vpop.f32.mrf.mxu3 }
 0x31c   : > { %5818 = vmatpush.bf16.msra.mxu3 %v8999_v55  ;;  %v4785_v62 = vadd.f32 %v4784_v38, %v4766_v36  ;;  %v5617_v7 = vpop.f32.mrf.mxu0  ;;  %v9802_v55 = vld [vmem:[#allocation11 + $0x10] sm:$0xff]  ;;  %v9815_v38 = vld [vmem:[#allocation11 + $0x78] sm:$0xff] }
 0x31d   : > { %v5636_v21 = vpop.f32.mrf.mxu1  ;;  %6215 = vmatpush.bf16.msra.mxu1 %v9815_v38 }
 0x31e   : > { %v4804_v54 = vadd.f32 %v4803_v60, %v4785_v62  ;;  %6198 = vmatpush.bf16.msra.mxu0 %v9805_v13  ;;  %v9813_v60 = vld [vmem:[#allocation11 + $0x68] sm:$0xff]  ;;  %6237 = vmatpush.bf16.msra.mxu2 %v9820_v53 }
 0x320   : > { %5819 = vmatpush.bf16.msra.mxu3 %v8983_v59  ;;  %v4821_v42 = vmax.f32 %v4804_v54, 0.0  ;;  %v11090_v54 = vld [vmem:[#allocation10] sm:$0xf] }
 0x321   : > { %v4960_v61 = vperm.slane %v11090_v54, 0  ;;  %v4961_v13 = vperm.slane %v11090_v54, 1  ;;  %v4962_v20 = vperm.slane %v11090_v54, 2 }
 0x322   : > { %v11081_v43 = vpack.c.bf16 %v4821_v42, %v4817_v46  ;;  %6199 = vmatpush.bf16.msra.mxu0 %v9804_v56  ;;  %v9811_v42 = vld [vmem:[#allocation11 + $0x58] sm:$0xff] }
 0x323   : > { %v5655_v49 = vpop.f32.mrf.mxu2  ;;  %v5618_v45 = vadd.f32 %v5617_v7, %v4960_v61 }
 0x324   : > { %5820 = vmatpush.bf16.msra.mxu3 %v8967_v35  ;;  %v5619_v37 = vpop.f32.mrf.mxu0 }
 0x325   : > { %5678 = vmatmul.bf16.gmra.mxu3 %v11081_v43  ;;  %v5638_v3 = vpop.f32.mrf.mxu1  ;;  %v5637_v51 = vadd.f32 %v5636_v21, %v5618_v45 }
 0x326   : > { %6200 = vmatpush.bf16.msra.mxu0 %v9803_v2  ;;  %v9819_v2 = vld [vmem:[#allocation11 + $0x98] sm:$0xff] }
 0x327   : > { %6238 = vmatpush.bf16.msra.mxu2 %v9819_v2 }
 0x328   : > { %5821 = vmatpush.bf16.msra.mxu3 %v8951_v12  ;;  %v5620_v12 = vadd.f32 %v5619_v37, %v4960_v61 }
 0x32a   : > { %6201 = vmatpush.bf16.msra.mxu0 %v9802_v55  ;;  %v5639_v44 = vadd.f32 %v5638_v3, %v5620_v12  ;;  %v9818_v3 = vld [vmem:[#allocation11 + $0x90] sm:$0xff]  ;;  %v9831_v12 = vld [vmem:[#allocation11 + $0xf8] sm:$0xff] }
 0x32b   : > { %v5657_v36 = vpop.f32.mrf.mxu2  ;;  %6239 = vmatpush.bf16.msra.mxu2 %v9818_v3 }
 0x32c   : > { %5822 = vmatpush.bf16.msra.mxu3 %v8935_v6  ;;  %v5622_v39 = vpop.f32.mrf.mxu0  ;;  %v5656_v6 = vadd.f32 %v5655_v49, %v5637_v51  ;;  %v5658_v4 = vadd.f32 %v5657_v36, %v5639_v44 }
 0x32d   : > { %v5641_v59 = vpop.f32.mrf.mxu1 }
 0x32e   : > { %6202 = vmatpush.bf16.msra.mxu0 %v9801_v1 }
 0x330   : > { %5823 = vmatpush.bf16.msra.mxu3 %v8919_v50 }
 0x332   : > { %6203 = vmatpush.bf16.msra.mxu0 %v9800_v52 }
 0x333   : > { %v5660_v32 = vpop.f32.mrf.mxu2 }
 0x334   : > { %5824 = vmatpush.bf16.msra.mxu3 %v8903_v10  ;;  %v5624_v62 = vpop.f32.mrf.mxu0 }
 0x335   : > { %5749 = vmatmul.bf16.vlgmr.msrb.gmra.mxu3 %v11077_v29  ;;  %v5643_v35 = vpop.f32.mrf.mxu1  ;;  %v5625_v47 = vadd.f32 %v5624_v62, %v4960_v61 }
 0x338   : > { %5893 = vmatpush.bf16.msrb.mxu3 %v9019_v30 }
 0x33b   : > { %v5662_v46 = vpop.f32.mrf.mxu2 }
 0x33c   : > { %5894 = vmatpush.bf16.msrb.mxu3 %v9003_v11 }
 0x33d   : > { %v5712_v9 = vpop.f32.mrf.mxu1 }
 0x340   : > { %5895 = vmatpush.bf16.msrb.mxu3 %v8987_v25  ;;  %v5623_v25 = vadd.f32 %v5622_v39, %v4960_v61 }
 0x343   : > { %v5731_v50 = vpop.f32.mrf.mxu2 }
 0x344   : > { %5896 = vmatpush.bf16.msrb.mxu3 %v8971_v19 }
 0x345   : > { %5754 = vmatmul.bf16.gmra.mxu3 %v11081_v43  ;;  %v5714_v24 = vpop.f32.mrf.mxu1 }
 0x348   : > { %5897 = vmatpush.bf16.msrb.mxu3 %v8955_v22  ;;  %v5642_v22 = vadd.f32 %v5641_v59, %v5623_v25 }
 0x34a   : > { %v5661_v15 = vadd.f32 %v5660_v32, %v5642_v22  ;;  %v9817_v32 = vld [vmem:[#allocation11 + $0x88] sm:$0xff] }
 0x34b   : > { %v5733_v27 = vpop.f32.mrf.mxu2  ;;  %6240 = vmatpush.bf16.msra.mxu2 %v9817_v32 }
 0x34c   : > { %5898 = vmatpush.bf16.msrb.mxu3 %v8939_v18  ;;  %v5644_v18 = vadd.f32 %v5643_v35, %v5625_v47  ;;  %v9816_v35 = vld [vmem:[#allocation11 + $0x80] sm:$0xff]  ;;  %v9827_v47 = vld [vmem:[#allocation11 + $0xd8] sm:$0xff] }
 0x34d   : > { %v5717_v41 = vpop.f32.mrf.mxu1 }
 0x34e   : > { %v5663_v63 = vadd.f32 %v5662_v46, %v5644_v18 }
 0x34f   : > { %6241 = vmatpush.bf16.msra.mxu2 %v9816_v35 }
 0x350   : > { %5899 = vmatpush.bf16.msrb.mxu3 %v8923_v23 }
 0x353   : > { %v5736_v48 = vpop.f32.mrf.mxu2 }
 0x354   : > { %5900 = vmatpush.bf16.msrb.mxu3 %v8907_v33 }
 0x355   : > { %5825 = vmatmul.bf16.vlgmr.msra.gmra.mxu3 %v11077_v29  ;;  %v5719_v52 = vpop.f32.mrf.mxu1 }
 0x358   : > { %6253 = vmatpush.bf16.msra.mxu3 %v9831_v12 }
 0x35b   : > { %v5738_v39 = vpop.f32.mrf.mxu2 }
 0x35d   : > { %v5788_v45 = vpop.f32.mrf.mxu1 }
 0x365   : > { %5830 = vmatmul.bf16.gmra.mxu3 %v11081_v43 }
 0x375   : > { %5901 = vmatmul.bf16.vlgmr.msrb.gmra.mxu3 %v11077_v29  ;;  %v9814_v29 = vld [vmem:[#allocation11 + $0x70] sm:$0xff] }
 0x376   : > { %6216 = vmatpush.bf16.msra.mxu1 %v9814_v29 }
 0x37a   : > { %6217 = vmatpush.bf16.msra.mxu1 %v9813_v60 }
 0x37e   : > { %6218 = vmatpush.bf16.msra.mxu1 %v9812_v14 }
 0x382   : > { %6219 = vmatpush.bf16.msra.mxu1 %v9811_v42 }
 0x385   : > { %5906 = vmatmul.bf16.gmra.mxu3 %v11081_v43  ;;  %v5693_v43 = vpop.f32.mrf.mxu0 }
 0x386   : > { %6220 = vmatpush.bf16.msra.mxu1 %v9810_v58  ;;  %v5694_v37 = vadd.f32 %v5693_v43, %v4961_v13 }
 0x388   : > { %v5713_v36 = vadd.f32 %v5712_v9, %v5694_v37  ;;  %v9830_v9 = vld [vmem:[#allocation11 + $0xf0] sm:$0xff] }
 0x389   : > { %6254 = vmatpush.bf16.msra.mxu3 %v9830_v9 }
 0x38a   : > { %6221 = vmatpush.bf16.msra.mxu1 %v9809_v40  ;;  %v5732_v38 = vadd.f32 %v5731_v50, %v5713_v36  ;;  %v9829_v40 = vld [vmem:[#allocation11 + $0xe8] sm:$0xff] }
 0x38d   : > { %v5695_v30 = vpop.f32.mrf.mxu0  ;;  %6255 = vmatpush.bf16.msra.mxu3 %v9829_v40 }
 0x38e   : > { %6222 = vmatpush.bf16.msra.mxu1 %v9808_v34  ;;  %v5696_v1 = vadd.f32 %v5695_v30, %v4961_v13 }
 0x390   : > { %v5715_v59 = vadd.f32 %v5714_v24, %v5696_v1 }
 0x392   : > { %v5734_v29 = vadd.f32 %v5733_v27, %v5715_v59 }
 0x395   : > { %v5698_v5 = vpop.f32.mrf.mxu0 }
 0x396   : > { %v5699_v58 = vadd.f32 %v5698_v5, %v4961_v13 }
 0x398   : > { %v5674_v8 = vpop.f32.mrf.mxu3  ;;  %v5718_v50 = vadd.f32 %v5717_v41, %v5699_v58 }
 0x399   : > { %v5675_v10 = vadd.f32 %v5674_v8, %v5656_v6  ;;  %v5807_v8 = vpop.f32.mrf.mxu2 }
 0x39b   : > { %v5912_v26 = vmax.f32 %v5675_v10, 0.0 }
 0x39d   : > { %v5700_v49 = vpop.f32.mrf.mxu0 }
 0x39e   : > { %v5701_v6 = vadd.f32 %v5700_v49, %v4961_v13 }
 0x3a0   : > { %v5676_v31 = vpop.f32.mrf.mxu3  ;;  %v5720_v10 = vadd.f32 %v5719_v52, %v5701_v6 }
 0x3a1   : > { %v5677_v57 = vadd.f32 %v5676_v31, %v5658_v4  ;;  %v5737_v4 = vadd.f32 %v5736_v48, %v5718_v50  ;;  %v5809_v34 = vpop.f32.mrf.mxu2 }
 0x3a2   : > { %v5739_v31 = vadd.f32 %v5738_v39, %v5720_v10 }
 0x3a3   : > { %v5916_v11 = vmax.f32 %v5677_v57, 0.0  ;;  %v5790_v57 = vpop.f32.mrf.mxu1 }
 0x3a5   : > { %v5928_v17 = vpack.c.bf16 %v5916_v11, %v5912_v26  ;;  %v5769_v60 = vpop.f32.mrf.mxu0 }
 0x3a6   : > { %v5770_v28 = vadd.f32 %v5769_v60, %v4962_v20 }
 0x3a7   : > { %6204 = vmatmul.bf16.vlgmr.msra.gmra.mxu0 %v5928_v17  ;;  %v9828_v17 = vld [vmem:[#allocation11 + $0xe0] sm:$0xff] }
 0x3a8   : > { %v5679_v19 = vpop.f32.mrf.mxu3  ;;  %6256 = vmatpush.bf16.msra.mxu3 %v9828_v17 }
 0x3a9   : > { %v5680_v23 = vadd.f32 %v5679_v19, %v5661_v15  ;;  %v5812_v18 = vpop.f32.mrf.mxu2 }
 0x3ab   : > { %v5920_v7 = vmax.f32 %v5680_v23, 0.0  ;;  %v5793_v15 = vpop.f32.mrf.mxu1  ;;  %v9825_v23 = vld [vmem:[#allocation11 + $0xc8] sm:$0xff] }
 0x3ac   : > { %6257 = vmatpush.bf16.msra.mxu3 %v9827_v47 }
 0x3ad   : > { %v5771_v44 = vpop.f32.mrf.mxu0 }
 0x3ae   : > { %v5772_v5 = vadd.f32 %v5771_v44, %v4962_v20 }
 0x3b0   : > { %v5681_v16 = vpop.f32.mrf.mxu3  ;;  %6258 = vmatpush.bf16.msra.mxu3 %v9826_v0  ;;  %v5791_v41 = vadd.f32 %v5790_v57, %v5772_v5 }
 0x3b1   : > { %v5682_v33 = vadd.f32 %v5681_v16, %v5663_v63  ;;  %v5789_v63 = vadd.f32 %v5788_v45, %v5770_v28  ;;  %v5814_v37 = vpop.f32.mrf.mxu2 }
 0x3b2   : > { %v5810_v48 = vadd.f32 %v5809_v34, %v5791_v41 }
 0x3b3   : > { %v5924_v56 = vmax.f32 %v5682_v33, 0.0  ;;  %v5808_v16 = vadd.f32 %v5807_v8, %v5789_v63 }
 0x3b4   : > { %6259 = vmatpush.bf16.msra.mxu3 %v9825_v23 }
 0x3b5   : > { %v5932_v21 = vpack.c.bf16 %v5924_v56, %v5920_v7  ;;  %v5774_v27 = vpop.f32.mrf.mxu0  ;;  %v9824_v56 = vld [vmem:[#allocation11 + $0xc0] sm:$0xff] }
 0x3b6   : > { %v5775_v1 = vadd.f32 %v5774_v27, %v4962_v20 }
 0x3b7   : > { %6209 = vmatmul.bf16.gmra.mxu0 %v5932_v21  ;;  %v5795_v21 = vpop.f32.mrf.mxu1 }
 0x3b8   : > { %v5750_v55 = vpop.f32.mrf.mxu3  ;;  %6260 = vmatpush.bf16.msra.mxu3 %v9824_v56  ;;  %v5794_v39 = vadd.f32 %v5793_v15, %v5775_v1 }
 0x3b9   : > { %v5751_v62 = vadd.f32 %v5750_v55, %v5732_v38 }
 0x3ba   : > { %v5813_v38 = vadd.f32 %v5812_v18, %v5794_v39 }
 0x3bb   : > { %v5913_v46 = vmax.f32 %v5751_v62, 0.0 }
 0x3bd   : > { %v5776_v33 = vpop.f32.mrf.mxu0 }
 0x3be   : > { %v5777_v52 = vadd.f32 %v5776_v33, %v4962_v20 }
 0x3bf   : > { %v5864_v32 = vpop.f32.mrf.mxu1 }
 0x3c0   : > { %v5752_v14 = vpop.f32.mrf.mxu3  ;;  %v5796_v59 = vadd.f32 %v5795_v21, %v5777_v52 }
 0x3c1   : > { %v5753_v61 = vadd.f32 %v5752_v14, %v5734_v29  ;;  %v5883_v29 = vpop.f32.mrf.mxu2 }
 0x3c2   : > { %v5815_v62 = vadd.f32 %v5814_v37, %v5796_v59 }
 0x3c3   : > { %v5917_v42 = vmax.f32 %v5753_v61, 0.0 }
 0x3c5   : > { %v5929_v43 = vpack.c.bf16 %v5917_v42, %v5913_v46  ;;  %v5845_v3 = vpop.f32.mrf.mxu0  ;;  %v4963_v46 = vperm.slane %v11090_v54, 3 }
 0x3c7   : > { %6223 = vmatmul.bf16.vlgmr.msra.gmra.mxu1 %v5929_v43  ;;  %v5846_v8 = vadd.f32 %v5845_v3, %v4963_v46  ;;  %v5866_v12 = vpop.f32.mrf.mxu1 }
 0x3c8   : > { %v5755_v51 = vpop.f32.mrf.mxu3 }
 0x3c9   : > { %v5756_v30 = vadd.f32 %v5755_v51, %v5737_v4  ;;  %v5885_v58 = vpop.f32.mrf.mxu2  ;;  %v5865_v44 = vadd.f32 %v5864_v32, %v5846_v8 }
 0x3cb   : > { %v5921_v25 = vmax.f32 %v5756_v30, 0.0  ;;  %v5884_v50 = vadd.f32 %v5883_v29, %v5865_v44 }
 0x3cd   : > { %v5847_v35 = vpop.f32.mrf.mxu0 }
 0x3ce   : > { %v5848_v6 = vadd.f32 %v5847_v35, %v4963_v46 }
 0x3cf   : > { %v5869_v30 = vpop.f32.mrf.mxu1 }
 0x3d0   : > { %v5757_v26 = vpop.f32.mrf.mxu3  ;;  %v5867_v40 = vadd.f32 %v5866_v12, %v5848_v6 }
 0x3d1   : > { %v5758_v11 = vadd.f32 %v5757_v26, %v5739_v31  ;;  %v5888_v34 = vpop.f32.mrf.mxu2 }
 0x3d2   : > { %v5886_v4 = vadd.f32 %v5885_v58, %v5867_v40 }
 0x3d3   : > { %v5925_v24 = vmax.f32 %v5758_v11, 0.0 }
 0x3d5   : > { %v5933_v19 = vpack.c.bf16 %v5925_v24, %v5921_v25  ;;  %v5850_v9 = vpop.f32.mrf.mxu0 }
 0x3d6   : > { %v5851_v20 = vadd.f32 %v5850_v9, %v4963_v46 }
 0x3d7   : > { %6228 = vmatmul.bf16.gmra.mxu1 %v5933_v19  ;;  %v5871_v19 = vpop.f32.mrf.mxu1 }
 0x3d8   : > { %v5826_v22 = vpop.f32.mrf.mxu3  ;;  %v5870_v27 = vadd.f32 %v5869_v30, %v5851_v20 }
 0x3d9   : > { %v5827_v53 = vadd.f32 %v5826_v22, %v5808_v16  ;;  %v5890_v47 = vpop.f32.mrf.mxu2 }
 0x3da   : > { %v5889_v28 = vadd.f32 %v5888_v34, %v5870_v27 }
 0x3db   : > { %v5914_v49 = vmax.f32 %v5827_v53, 0.0  ;;  %v9941_v53 = vld [vmem:[#allocation13] ss:$0 sm:$0xff] }
 0x3dd   : > { %v5852_v17 = vpop.f32.mrf.mxu0 }
 0x3de   : > { %v5853_v24 = vadd.f32 %v5852_v17, %v4963_v46 }
 0x3e0   : > { %v5828_v13 = vpop.f32.mrf.mxu3  ;;  %v5872_v22 = vadd.f32 %v5871_v19, %v5853_v24 }
 0x3e1   : > { %v5829_v7 = vadd.f32 %v5828_v13, %v5810_v48 }
 0x3e2   : > { %v5891_v5 = vadd.f32 %v5890_v47, %v5872_v22 }
 0x3e3   : > { %v5918_v2 = vmax.f32 %v5829_v7, 0.0 }
 0x3e5   : > { %v5930_v55 = vpack.c.bf16 %v5918_v2, %v5914_v49 }
 0x3e7   : > { %6242 = vmatmul.bf16.vlgmr.msra.gmra.mxu2 %v5930_v55 }
 0x3e8   : > { %v5831_v36 = vpop.f32.mrf.mxu3 }
 0x3e9   : > { %v5832_v60 = vadd.f32 %v5831_v36, %v5813_v38 }
 0x3eb   : > { %v5922_v42 = vmax.f32 %v5832_v60, 0.0 }
 0x3f0   : > { %v5833_v14 = vpop.f32.mrf.mxu3 }
 0x3f1   : > { %v5834_v61 = vadd.f32 %v5833_v14, %v5815_v62 }
 0x3f3   : > { %v5926_v45 = vmax.f32 %v5834_v61, 0.0 }
 0x3f5   : > { %v5934_v43 = vpack.c.bf16 %v5926_v45, %v5922_v42 }
 0x3f7   : > { %6247 = vmatmul.bf16.gmra.mxu2 %v5934_v43 }
 0x3f8   : > { %v5902_v51 = vpop.f32.mrf.mxu3 }
 0x3f9   : > { %v5903_v10 = vadd.f32 %v5902_v51, %v5884_v50 }
 0x3fb   : > { %v5915_v54 = vmax.f32 %v5903_v10, 0.0 }
 0x400   : > { %v5904_v31 = vpop.f32.mrf.mxu3 }
 0x401   : > { %v5905_v57 = vadd.f32 %v5904_v31, %v5886_v4 }
 0x403   : > { %v5919_v26 = vmax.f32 %v5905_v57, 0.0 }
 0x405   : > { %v5931_v11 = vpack.c.bf16 %v5919_v26, %v5915_v54 }
 0x407   : > { %6261 = vmatmul.bf16.vlgmr.msra.gmra.mxu3 %v5931_v11 }
 0x408   : > { %v5907_v25 = vpop.f32.mrf.mxu3 }
 0x409   : > { %v5908_v15 = vadd.f32 %v5907_v25, %v5889_v28 }
 0x40b   : > { %v5923_v63 = vmax.f32 %v5908_v15, 0.0 }
 0x410   : > { %v5909_v18 = vpop.f32.mrf.mxu3 }
 0x411   : > { %v5910_v0 = vadd.f32 %v5909_v18, %v5891_v5 }
 0x413   : > { %v5927_v23 = vmax.f32 %v5910_v0, 0.0 }
 0x415   : > { %v5935_v16 = vpack.c.bf16 %v5927_v23, %v5923_v63 }
 0x417   : > { %6266 = vmatmul.bf16.gmra.mxu3 %v5935_v16 }
 0x424   : > { %v6205_v41 = vpop.f32.mrf.mxu0 }
 0x425   : > { %v6206_v13 = vadd.f32 %v9941_v53, %v6205_v41 }
 0x42c   : > { %v6207_v7 = vpop.f32.mrf.mxu0 }
 0x42d   : > { %v6208_v1 = vadd.f32 %v9941_v53, %v6207_v7 }
 0x434   : > { %v6210_v52 = vpop.f32.mrf.mxu0 }
 0x435   : > { %v6211_v62 = vadd.f32 %v9941_v53, %v6210_v52 }
 0x43c   : > { %v6212_v35 = vpop.f32.mrf.mxu0 }
 0x43d   : > { %v6213_v43 = vadd.f32 %v9941_v53, %v6212_v35 }
 0x444   : > { %v6224_v33 = vpop.f32.mrf.mxu1 }
 0x445   : > { %v6225_v56 = vadd.f32 %v6224_v33, %v6206_v13 }
 0x44c   : > { %v6226_v21 = vpop.f32.mrf.mxu1 }
 0x44d   : > { %v6227_v36 = vadd.f32 %v6226_v21, %v6208_v1 }
 0x454   : > { %v6229_v38 = vpop.f32.mrf.mxu1 }
 0x455   : > { %v6230_v14 = vadd.f32 %v6229_v38, %v6211_v62 }
 0x45c   : > { %v6231_v45 = vpop.f32.mrf.mxu1 }
 0x45d   : > { %v6232_v58 = vadd.f32 %v6231_v45, %v6213_v43 }
 0x46a   : > { %v6243_v48 = vpop.f32.mrf.mxu2 }
 0x46b   : > { %v6244_v49 = vadd.f32 %v6243_v48, %v6225_v56 }
 0x472   : > { %v6245_v2 = vpop.f32.mrf.mxu2 }
 0x473   : > { %v6246_v39 = vadd.f32 %v6245_v2, %v6227_v36 }
 0x47a   : > { %v6248_v29 = vpop.f32.mrf.mxu2 }
 0x47b   : > { %v6249_v61 = vadd.f32 %v6248_v29, %v6230_v14 }
 0x482   : > { %v6250_v12 = vpop.f32.mrf.mxu2 }
 0x483   : > { %v6251_v51 = vadd.f32 %v6250_v12, %v6232_v58 }
 0x48a   : > { %v6262_v37 = vpop.f32.mrf.mxu3 }
 0x48b   : > { %v6263_v55 = vadd.f32 %v6262_v37, %v6244_v49 }
 0x48d   : > { %v6272_v3 = vmax.f32 %v6263_v55, 0.0 }
 0x48f   : > { %6276 = vst [vmem:[%s11097_s15] sm:$0xff] %v6272_v3 }
 0x492   : > { %v6264_v59 = vpop.f32.mrf.mxu3 }
 0x493   : > { %v6265_v32 = vadd.f32 %v6264_v59, %v6246_v39 }
 0x495   : > { %v6273_v60 = vmax.f32 %v6265_v32, 0.0 }
 0x497   : > { %6277 = vst [vmem:[%s11097_s15 + $0x8] sm:$0xff] %v6273_v60 }
 0x49a   : > { %v6267_v46 = vpop.f32.mrf.mxu3 }
 0x49b   : > { %v6268_v42 = vadd.f32 %v6267_v46, %v6249_v61 }
 0x49d   : > { %v6274_v8 = vmax.f32 %v6268_v42, 0.0 }
 0x49f   : > { %6278 = vst [vmem:[%s11097_s15 + $0x10] sm:$0xff] %v6274_v8 }
 0x4a2   : > { %v6269_v6 = vpop.f32.mrf.mxu3 }
 0x4a3   : > { %v6270_v44 = vadd.f32 %v6269_v6, %v6251_v51  ;;  %6287 = sbr.rel (!%p10363_p11) target bundleno = 1223 (0x4c7), region = 80 }
 0x4a5   : > { %v6275_v9 = vmax.f32 %v6270_v44, 0.0 }
 0x4a7   : > { %6279 = vst [vmem:[%s11097_s15 + $0x18] sm:$0xff] %v6275_v9 }
 0x4a8   : > { %s11245_s11 = smov (!%p6290_p6, %s6289_s11), 4 }
 0x4a9   : > { %s9150_s3 = sshll.u32 %s11245_s11, 3 }
 0x4aa   : > { %s6293_s30 = ssub.s32 32, %s9150_s3 }
 0x4ab   : > { %s6294_s19 = sshll.u32 %s6293_s30, 4 }
 0x4ac   : > { %6295 = vsyncadd %s6281_s18, %s6294_s19  ;;  %p11112_p1 = scmp.ne.s32.totalorder %s9150_s3, 0  ;;  %s9832_s21 = sshll.u32 %s10332_s28, 5 }
 0x4ad   : > { %s6298_s29 = scalar_lea.hbm %s11172_s7, %s9832_s21  ;;  %s6300_s8 = sshll.u32 %s11097_s15, 4  ;;  %s11121_s8 = int_to_ptr.vmem [resolvable:$true] %s6300_s8 }
 0x4ae   : > { %s6302_s9 = sshll.u32 %s6298_s29, 4  ;;  %s9154_s22 = sshll.u32 %s11245_s11, 7  ;;  %s11123_s9 = int_to_ptr.hbm [resolvable:$true] %s6302_s9 }
 0x4af   : > { %s10164_s14 = sshra.s32 %s11121_s8, 4  ;;  %s10166_s23 = sshrl.u32 %s9154_s22, 4  ;;  %s10165_s14 = int_to_ptr.vmem [resolvable:$true] %s10164_s14 }
 0x4b0   : > { %s10171_s20 = scalar_lea.vmem %s10165_s14, %s10166_s23  ;;  %s10268_s28 = smov [#allocation14]  }
 0x4b1   : > { %p10172_p11 = scmp.ne.s32.totalorder %s10165_s14, %s10171_s20  ;;  %s10175_s16 = scalar_lea.vmem %s10268_s28, 64 }
 0x4b2   : > { %p10177_p3 = scmp.lt.s32.totalorder %s10175_s16, %s10171_s20 }
 0x4b3   : > { %p10173_p0 = pnand %p10172_p11, %p11112_p1 }
 0x4b5   : > { %p10174_p2 = pneg %p10173_p0 }
 0x4b7   : > { %p10179_p7 = pnand %p10177_p3, %p10174_p2 }
 0x4b9   : > { %10182 = shalt.err (!%p10179_p7)
}
 0x4ba   : > { %s10183_s12 = sshra.s32 %s11123_s9, 4  ;;  %s10194_s30 = scalar_lea.hbm %s11172_s7, 72  ;;  %s10184_s12 = int_to_ptr.hbm [resolvable:$true] %s10183_s12 }
 0x4bb   : > { %s10190_s15 = scalar_lea.hbm %s10184_s12, %s10166_s23  ;;  %p10195_p13 = scmp.lt.s32.totalorder %s10184_s12, %s11172_s7 }
 0x4bc   : > { %p10191_p8 = scmp.ne.s32.totalorder %s10184_s12, %s10190_s15  ;;  %p10196_p5 = scmp.lt.s32.totalorder %s10194_s30, %s10190_s15 }
 0x4be   : > { %p10192_p4 = pnand %p10191_p8, %p11112_p1  ;;  %p10197_p9 = por %p10196_p5, %p10195_p13 }
 0x4c0   : > { %p10193_p12 = pneg %p10192_p4 }
 0x4c2   : > { %p10198_p10 = pnand %p10197_p9, %p10193_p12 }
 0x4c4   : > { %10201 = shalt.err (!%p10198_p10)
}
 0x4c5   : > { %s10269_s17 = smov 128   ;;  %s10270_s10 = smov 8  }
 0x4c6   : > { %6308 = dma.vmem_to_hbm [thread:$0]  (%p11112_p1), %s11121_s8, %s9154_s22, %s11123_s9, %s6281_s18, %s10269_s17, %s10269_s17, %s10270_s10  }
 0x4c7 PF: > { %s11235_s29 = sld [smem:[#allocation22_spill]]  ;;  %p9894_p6 = scmp.ge.s32.totalorder %s10253_s27, 2 }
 0x4c8   : > { %s6317_s14 = sand.u32 1, %s10241_s24  }
 0x4c9   : > { %s6318_s23 = scalar_lea.sflag [#allocation4], %s6317_s14 }
 0x4cd   : > { %p11236_p11 = scmp.ne.s32.totalorder %s11235_s29, 0 }
 0x4cf   : > { %p9879_p0 = pnand %p9894_p6, %p11236_p11 }
 0x4d1   : > { %p9880_p2 = pneg %p9879_p0 }
 0x4d3   : > { %10236 = dma.done.wait (%p9880_p2), %s6318_s23, 512  }
 0x4d4   : > { %10238 = vsyncadd (%p9880_p2), %s6318_s23, 4294966784  ;;  %s11237_s27 = sld [smem:[#allocation20_spill]]  ;;  %s11239_s24 = smov %s10245_s25 }
 0x4d5   : > { %s11238_s13 = sld [smem:[#allocation21_spill]]  ;;  %s11240_s25 = smov %s10249_s26 }
 0x4da   : > { %p23_p3 = scmp.ge.s32.totalorder %s11237_s27, 5  }
 0x4db   : > { %s11241_s26 = smov %s11238_s13 }
 0x4dc   :  { %25 = sbr.rel (!%p23_p3) target bundleno = 12 (0xc), region = 117 }
 0x4e1   :  { %6324 = vsyncpa [#allocation3], 1 }
 0x4e2   :  { %6326 = vsyncpa [#allocation3 + $0x1], 1 }
 0x4e3   :  { %6327 = vsyncpa [#allocation6], 1 }
 0x4e4   :  { %6328 = vsyncpa [#allocation9], 1 }
 0x4e5   :  { %6329 = vsyncpa [#allocation12], 1 }
 0x4e6   :  { %6330 = vsyncpa [#allocation4], 1 }
 0x4e7   :  { %6332 = vsyncpa [#allocation4 + $0x1], 1 }

</bundles_post_ra>
